<compile_context>
chip_gen: v7x
topology: tpu7x:2x2x1
jax: 0.10.0
libtpu: 0.0.40
codegen_flags: <defaults>
</compile_context>

<pallas_src>
import functools
import math

import jax
import jax.numpy as jnp
from jax import lax
from jax.experimental import pallas as pl
from jax.experimental.pallas import tpu as pltpu

BODY_DIM = 4 + 21 * 3 + 22 * 3     # 133
HAND_DIM = 30 * 3 + 30 * 3         # 180


# ----------------------------------------------------------------------------
# In-kernel primitives (pure f32, everything lives in vregs / VMEM)
# ----------------------------------------------------------------------------
def _conv1d(x, w_flat, b, *, n_batch, k, pad, dil, stride=1):
    """Channels-last Conv1d on a batch-flattened activation.

    x      : (n_batch * t_in, c_in) f32, batch-major rows
    w_flat : (k * c_in, c_out)      f32, tap-major rows [w_tap0; w_tap1; ...]
    b      : (1, c_out)             f32
    returns (n_batch * t_out, c_out) f32
    """
    nt_in, c_in = x.shape
    t_in = nt_in // n_batch

    if k == 1 and pad == 0 and stride == 1:
        return jnp.dot(x, w_flat, preferred_element_type=jnp.float32) + b

    t_s1 = t_in + 2 * pad - dil * (k - 1)            # stride-1 output length
    t_out = (t_s1 - 1) // stride + 1

    dsel = None
    if stride > 1:
        # 0/1 row-downselect, built once per conv (no vector int division).
        rows = lax.broadcasted_iota(jnp.int32, (t_out, t_s1), 0)
        cols = lax.broadcasted_iota(jnp.int32, (t_out, t_s1), 1)
        dsel = jnp.where(cols == rows * stride, 1.0, 0.0)

    slabs = []
    for bi in range(n_batch):
        xb = lax.slice(x, (bi * t_in, 0), ((bi + 1) * t_in, c_in))
        if pad > 0:
            z = jnp.zeros((pad, c_in), jnp.float32)
            xp = jnp.concatenate([z, xb, z], axis=0)
        else:
            xp = xb
        taps = [lax.slice(xp, (kk * dil, 0), (kk * dil + t_s1, c_in)) for kk in range(k)]
        slab = taps[0] if k == 1 else jnp.concatenate(taps, axis=1)   # (t_s1, k*c_in)
        if dsel is not None:
            slab = jnp.dot(dsel, slab, preferred_element_type=jnp.float32)
        slabs.append(slab)
    col = slabs[0] if n_batch == 1 else jnp.concatenate(slabs, axis=0)
    y = jnp.dot(col, w_flat, preferred_element_type=jnp.float32)      # one MXU push / conv
    return y + b


def _upsample2(x):
    """Nearest-neighbour x2 along (flattened, batch-contiguous) time: (R, C) -> (2R, C)."""
    r = x.shape[0]
    rows = lax.broadcasted_iota(jnp.int32, (2 * r, r), 0)
    cols = lax.broadcasted_iota(jnp.int32, (2 * r, r), 1)
    up = jnp.where((rows == 2 * cols) | (rows == 2 * cols + 1), 1.0, 0.0)
    return jnp.dot(up, x, preferred_element_type=jnp.float32)


def _vq_ema_reset(x, cb, *, nb_code):
    """QuantizeEMAReset eval-mode forward.  x: (M, D), cb: (nb, D)."""
    m, d = x.shape
    c2 = jnp.sum(cb * cb, axis=-1, keepdims=True)                     # (nb, 1)
    # score[i, j] = -2 x_i . c_j + |c_j|^2  via one augmented contraction (no transpose).
    x_aug = jnp.concatenate([x * (-2.0), jnp.ones((m, 1), jnp.float32)], axis=1)
    cb_aug = jnp.concatenate([cb, c2], axis=1)                        # (nb, D+1)
    score = lax.dot_general(x_aug, cb_aug, (((1,), (1,)), ((), ())),
                            preferred_element_type=jnp.float32)       # (M, nb)
    col = lax.broadcasted_iota(jnp.int32, (m, nb_code), 1).astype(jnp.float32)
    smin = jnp.min(score, axis=-1, keepdims=True)
    idx = jnp.min(jnp.where(score <= smin, col, float(nb_code)), axis=-1, keepdims=True)
    onehot = jnp.where(col == idx, 1.0, 0.0)                          # first argmin
    x_d = jnp.dot(onehot, cb, preferred_element_type=jnp.float32)     # (M, D) exact code rows

    diff = x - x_d
    commit = jnp.sum(jnp.sum(diff * diff, axis=-1, keepdims=True), axis=0,
                     keepdims=True) / float(m * d)                    # (1, 1)
    prob = jnp.sum(onehot, axis=0, keepdims=True) / float(m)          # (1, nb)
    perp = jnp.exp(-jnp.sum(prob * jnp.log(prob + 1e-7), axis=-1, keepdims=True))
    # TODO(synk): training-time EMA codebook update/reset and the straight-through
    # estimator (x + sg(x_d - x)) are omitted; forward values are identical (x_d).
    return x_d, commit, perp


# ----------------------------------------------------------------------------
# Fused per-branch kernel: encoder -> quantizer -> decoder, plan-driven
# ----------------------------------------------------------------------------
def _fused_branch_kernel(x_ref, w_in_ref, w3_ref, w1_ref, w4_ref, w_out_ref,
                         b32_ref, b_out_ref, cb_ref,
                         y_ref, commit_ref, perp_ref,
                         *, plan, n_batch, width, nb_code):
    h = x_ref[0]                                   # (N*T, c_pad) f32
    b32 = b32_ref[0]                               # (n_bias, width)

    def bias(i):
        return lax.slice(b32, (i, 0), (i + 1, width))   # (1, width)

    commit = perp = None
    for op in plan:
        kind = op["op"]
        if kind == "conv_in":                      # encoder stem (padded C_in) + ReLU
            h = _conv1d(h, w_in_ref[0], bias(op["b"]), n_batch=n_batch, k=3, pad=1, dil=1)
            h = jnp.maximum(h, 0.0)
        elif kind == "conv3":
            h = _conv1d(h, w3_ref[0, op["w"]], bias(op["b"]), n_batch=n_batch,
                        k=3, pad=op["pad"], dil=op["dil"])
            if op["relu"]:
                h = jnp.maximum(h, 0.0)
        elif kind == "down":                       # strided conv, k = 2*stride_t
            h = _conv1d(h, w4_ref[0, op["w"]], bias(op["b"]), n_batch=n_batch,
                        k=op["k"], pad=op["pad"], dil=1, stride=op["stride"])
        elif kind == "res":                        # pre-activation residual block
            r = jnp.maximum(h, 0.0)
            r = _conv1d(r, w3_ref[0, op["w3"]], bias(op["b3"]), n_batch=n_batch,
                        k=3, pad=op["dil"], dil=op["dil"])
            r = jnp.maximum(r, 0.0)
            r = _conv1d(r, w1_ref[0, op["w1"]], bias(op["b1"]), n_batch=n_batch,
                        k=1, pad=0, dil=1)
            h = h + r
        elif kind == "up":
            h = _upsample2(h)
        elif kind == "vq":
            h, commit, perp = _vq_ema_reset(h, cb_ref[0], nb_code=nb_code)
        elif kind == "conv_out":                   # decoder head (padded C_out, lane-dense)
            h = _conv1d(h, w_out_ref[0], b_out_ref[0], n_batch=n_batch, k=3, pad=1, dil=1)
        else:
            raise ValueError(kind)

    y_ref[0] = h.astype(y_ref.dtype)
    commit_ref[0] = commit
    perp_ref[0] = perp


def run_dual_branch(plan, packed, x_stack, *, n_batch, width, nb_code):
    """x_stack: (2, N*T, c_pad); packed: dict of (2, ...) branch-stacked parameter slabs."""
    n_branch, nt, c_pad = x_stack.shape
    kernel = functools.partial(_fused_branch_kernel, plan=plan, n_batch=n_batch,
                               width=width, nb_code=nb_code)

    def bspec(arr):
        r = arr.ndim
        return pl.BlockSpec((1,) + arr.shape[1:], lambda b, _r=r: (b,) + (0,) * (_r - 1))

    operands = (x_stack, packed["w_in"], packed["w3"], packed["w1"], packed["w4"],
                packed["w_out"], packed["b32"], packed["b_out"], packed["cb"])

    y, commit, perp = pl.pallas_call(
        kernel,
        out_shape=(jax.ShapeDtypeStruct((n_branch, nt, c_pad), jnp.float32),
                   jax.ShapeDtypeStruct((n_branch, 1, 1), jnp.float32),
                   jax.ShapeDtypeStruct((n_branch, 1, 1), jnp.float32)),
        grid=(n_branch,),
        in_specs=[bspec(a) for a in operands],
        out_specs=(pl.BlockSpec((1, nt, c_pad), lambda b: (b, 0, 0)),
                   pl.BlockSpec((1, 1, 1), lambda b: (b, 0, 0)),
                   pl.BlockSpec((1, 1, 1), lambda b: (b, 0, 0))),
        compiler_params=pltpu.CompilerParams(dimension_semantics=("parallel",)),
    )(*operands)
    return y, commit[:, 0, 0], perp[:, 0, 0]


# ----------------------------------------------------------------------------
# Forward pass (channels-last end to end; only slice/pad/concat glue in XLA)
# ----------------------------------------------------------------------------
def dual_vqvae_forward(plan, cfg, packed, x):
    x = x.astype(jnp.float32)
    n, t, _ = x.shape
    c_pad = cfg["c_pad"]
    body = jnp.concatenate([x[..., :67], x[..., 157:223]], axis=-1)        # (N, T, 133)
    hand = jnp.concatenate([x[..., 67:157], x[..., 223:]], axis=-1)        # (N, T, 180)
    body = jnp.pad(body, ((0, 0), (0, 0), (0, c_pad - BODY_DIM)))
    hand = jnp.pad(hand, ((0, 0), (0, 0), (0, c_pad - HAND_DIM)))
    x_stack = jnp.stack([body, hand], axis=0).reshape(2, n * t, c_pad)

    y, commit, perp = run_dual_branch(plan, packed, x_stack, n_batch=n,
                                      width=cfg["width"], nb_code=cfg["nb_code"])

    body_out = y[0].reshape(n, t, c_pad)[..., :BODY_DIM]
    hand_out = y[1].reshape(n, t, c_pad)[..., :HAND_DIM]
    x_out = jnp.concatenate([body_out, hand_out], axis=-1)                 # (N, T, 313)
    return x_out, commit[0], commit[1], perp[0], perp[1]


# ----------------------------------------------------------------------------
# Deterministic parameter construction + static execution plan
# ----------------------------------------------------------------------------
class KeyGen:
    def __init__(self, key):
        self.key = key

    def __call__(self):
        self.key, sub = jax.random.split(self.key)
        return sub


def _torch_conv_init(kg, cin, cout, k):
    bound = 1.0 / math.sqrt(cin * k)
    w = jax.random.uniform(kg(), (cout, cin, k), jnp.float32, -bound, bound)
    b = jax.random.uniform(kg(), (cout,), jnp.float32, -bound, bound)
    return w, b


def _flatten_w(w, cin_pad=None, cout_pad=None):
    """(cout, cin, k) torch layout -> (k*cin, cout) tap-major rows (im2col-compatible)."""
    cout, cin, k = w.shape
    wt = jnp.transpose(w, (2, 1, 0))                  # (k, cin, cout)
    if cin_pad is not None and cin_pad > cin:
        wt = jnp.pad(wt, ((0, 0), (0, cin_pad - cin), (0, 0)))
        cin = cin_pad
    if cout_pad is not None and cout_pad > cout:
        wt = jnp.pad(wt, ((0, 0), (0, 0), (0, cout_pad - cout)))
        cout = cout_pad
    return wt.reshape(k * cin, cout)


def build_branch(kg, c_in, c_out, *, width, depth, dgr, down_t, stride_t,
                 out_emb, code_dim, nb_code, c_pad):
    """Encoder + codebook + decoder for one branch; weights packed into slabs by shape."""
    assert out_emb == width == code_dim, "slab packing assumes out_emb == width == code_dim"
    plan, w3, w1, w4, b32 = [], [], [], [], []

    def add_bias(b):
        b32.append(b.reshape(1, width))
        return len(b32) - 1

    def conv3(relu, pad=1, dil=1):
        w, b = _torch_conv_init(kg, width, width, 3)
        w3.append(_flatten_w(w))
        plan.append(dict(op="conv3", w=len(w3) - 1, b=add_bias(b), pad=pad, dil=dil, relu=relu))

    def res(dil):
        wa, ba = _torch_conv_init(kg, width, width, 3)
        w3.append(_flatten_w(wa)); ia = add_bias(ba)
        wb, bb = _torch_conv_init(kg, width, width, 1)
        w1.append(_flatten_w(wb)); ib = add_bias(bb)
        plan.append(dict(op="res", w3=len(w3) - 1, b3=ia, w1=len(w1) - 1, b1=ib, dil=dil))

    dils = [dgr ** d for d in range(depth)][::-1]     # reverse_dilation

    # ------------------------ Encoder ------------------------
    w, b = _torch_conv_init(kg, c_in, width, 3)
    w_in = _flatten_w(w, cin_pad=c_pad)               # (3*c_pad, width)
    plan.append(dict(op="conv_in", b=add_bias(b)))    # + ReLU in kernel
    for _ in range(down_t):
        w, b = _torch_conv_init(kg, width, width, 2 * stride_t)
        w4.append(_flatten_w(w))
        plan.append(dict(op="down", w=len(w4) - 1, b=add_bias(b),
                         k=2 * stride_t, stride=stride_t, pad=stride_t // 2))
        for d in dils:
            res(d)
    conv3(relu=False)                                 # width -> output_emb_width

    # ------------------------ Quantizer ------------------------
    plan.append(dict(op="vq"))
    cb = jax.random.normal(kg(), (nb_code, code_dim), jnp.float32)

    # ------------------------ Decoder ------------------------
    conv3(relu=True)                                  # output_emb_width -> width
    for _ in range(down_t):
        for d in dils:
            res(d)
        plan.append(dict(op="up"))
        conv3(relu=False)
    conv3(relu=True)
    w, b = _torch_conv_init(kg, width, c_out, 3)
    w_out = _flatten_w(w, cout_pad=c_pad)             # (3*width, c_pad)
    b_out = jnp.pad(b, (0, c_pad - c_out)).reshape(1, c_pad)
    plan.append(dict(op="conv_out"))

    params = dict(w_in=w_in, w3=jnp.stack(w3), w1=jnp.stack(w1), w4=jnp.stack(w4),
                  w_out=w_out, b32=jnp.concatenate(b32, axis=0), b_out=b_out, cb=cb)
    return plan, params


# ----------------------------------------------------------------------------
if __name__ == "__main__":
    kg = KeyGen(jax.random.PRNGKey(0))

    # Small-but-faithful config (nfeats must be 313 per the module assert).
    nfeats, N, T = 313, 2, 16
    cfg = dict(width=32, depth=2, dgr=3, down_t=3, stride_t=2,
               out_emb=32, code_dim=32, nb_code=64, c_pad=256)

    common = dict(width=cfg["width"], depth=cfg["depth"], dgr=cfg["dgr"],
                  down_t=cfg["down_t"], stride_t=cfg["stride_t"], out_emb=cfg["out_emb"],
                  code_dim=cfg["code_dim"], nb_code=cfg["nb_code"], c_pad=cfg["c_pad"])
    plan_b, p_body = build_branch(kg, BODY_DIM, BODY_DIM, **common)
    plan_h, p_hand = build_branch(kg, HAND_DIM, HAND_DIM, **common)
    assert plan_b == plan_h
    packed = {k: jnp.stack([p_body[k], p_hand[k]], axis=0) for k in p_body}

    x = jax.random.normal(kg(), (N, T, nfeats), jnp.float32)

    fwd = jax.jit(functools.partial(dual_vqvae_forward, plan_b, cfg))
    x_out, body_loss, hand_loss, body_perp, hand_perp = fwd(packed, x)
    jax.block_until_ready(x_out)

    assert x_out.shape == (N, T, nfeats)
    assert body_loss.shape == () and hand_loss.shape == ()
    assert body_perp.shape == () and hand_perp.shape == ()
    print("KERNEL_OK")
</pallas_src>

<mosaic_0001>
module attributes {stable_mosaic.version = 11 : i64} {
  func.func @_fused_branch_kernel(%arg0: i32, %arg1: memref<1x32x256xf32, #tpu.memory_space<vmem>>, %arg2: memref<1x768x32xf32, #tpu.memory_space<vmem>>, %arg3: memref<1x18x96x32xf32, #tpu.memory_space<vmem>>, %arg4: memref<1x12x32x32xf32, #tpu.memory_space<vmem>>, %arg5: memref<1x3x128x32xf32, #tpu.memory_space<vmem>>, %arg6: memref<1x96x256xf32, #tpu.memory_space<vmem>>, %arg7: memref<1x34x32xf32, #tpu.memory_space<vmem>>, %arg8: memref<1x1x256xf32, #tpu.memory_space<vmem>>, %arg9: memref<1x64x32xf32, #tpu.memory_space<vmem>>, %arg10: memref<1x32x256xf32, #tpu.memory_space<vmem>>, %arg11: memref<1x1x1xf32, #tpu.memory_space<vmem>>, %arg12: memref<1x1x1xf32, #tpu.memory_space<vmem>>) attributes {dimension_semantics = [#tpu.dimension_semantics<parallel>], iteration_bounds = array<i64: 2>, scalar_prefetch = 0 : i64, scratch_operands = 0 : i64, tpu.core_type = #tpu.core_type<tc>, window_params = [{transform_indices = @transform_0, window_bounds = array<i64: 1, 32, 256>}, {transform_indices = @transform_1, window_bounds = array<i64: 1, 768, 32>}, {transform_indices = @transform_2, window_bounds = array<i64: 1, 18, 96, 32>}, {transform_indices = @transform_3, window_bounds = array<i64: 1, 12, 32, 32>}, {transform_indices = @transform_4, window_bounds = array<i64: 1, 3, 128, 32>}, {transform_indices = @transform_5, window_bounds = array<i64: 1, 96, 256>}, {transform_indices = @transform_6, window_bounds = array<i64: 1, 34, 32>}, {transform_indices = @transform_7, window_bounds = array<i64: 1, 1, 256>}, {transform_indices = @transform_8, window_bounds = array<i64: 1, 64, 32>}, {transform_indices = @transform_9, window_bounds = array<i64: 1, 32, 256>}, {transform_indices = @transform_10, window_bounds = array<i64: 1, 1, 1>}, {transform_indices = @transform_11, window_bounds = array<i64: 1, 1, 1>}]} {
    %c0 = arith.constant 0 : index
    %c0_0 = arith.constant 0 : index
    %c0_1 = arith.constant 0 : index
    %0 = vector.load %arg1[%c0, %c0_0, %c0_1] : memref<1x32x256xf32, #tpu.memory_space<vmem>>, vector<1x32x256xf32>
    %1 = vector.shape_cast %0 : vector<1x32x256xf32> to vector<32x256xf32>
    %c0_2 = arith.constant 0 : index
    %c0_3 = arith.constant 0 : index
    %c0_4 = arith.constant 0 : index
    %2 = vector.load %arg7[%c0_2, %c0_3, %c0_4] : memref<1x34x32xf32, #tpu.memory_space<vmem>>, vector<1x34x32xf32>
    %3 = vector.shape_cast %2 : vector<1x34x32xf32> to vector<34x32xf32>
    %c0_5 = arith.constant 0 : index
    %c0_6 = arith.constant 0 : index
    %c0_7 = arith.constant 0 : index
    %4 = vector.load %arg2[%c0_5, %c0_6, %c0_7] : memref<1x768x32xf32, #tpu.memory_space<vmem>>, vector<1x768x32xf32>
    %5 = vector.shape_cast %4 : vector<1x768x32xf32> to vector<768x32xf32>
    %6 = vector.extract_strided_slice %3 {offsets = [0, 0], sizes = [1, 32], strides = [1, 1]} : vector<34x32xf32> to vector<1x32xf32>
    %7 = vector.extract_strided_slice %1 {offsets = [0, 0], sizes = [16, 256], strides = [1, 1]} : vector<32x256xf32> to vector<16x256xf32>
    %cst = arith.constant 0.000000e+00 : f32
    %8 = vector.broadcast %cst : f32 to vector<1x256xf32>
    %9 = tpu.concatenate %8, %7, %8 in 0 : vector<1x256xf32>, vector<16x256xf32>, vector<1x256xf32> -> vector<18x256xf32>
    %10 = vector.extract_strided_slice %9 {offsets = [0, 0], sizes = [16, 256], strides = [1, 1]} : vector<18x256xf32> to vector<16x256xf32>
    %11 = vector.extract_strided_slice %9 {offsets = [1, 0], sizes = [16, 256], strides = [1, 1]} : vector<18x256xf32> to vector<16x256xf32>
    %12 = vector.extract_strided_slice %9 {offsets = [2, 0], sizes = [16, 256], strides = [1, 1]} : vector<18x256xf32> to vector<16x256xf32>
    %13 = tpu.concatenate %10, %11, %12 in 1 : vector<16x256xf32>, vector<16x256xf32>, vector<16x256xf32> -> vector<16x768xf32>
    %14 = vector.extract_strided_slice %1 {offsets = [16, 0], sizes = [16, 256], strides = [1, 1]} : vector<32x256xf32> to vector<16x256xf32>
    %cst_8 = arith.constant 0.000000e+00 : f32
    %15 = vector.broadcast %cst_8 : f32 to vector<1x256xf32>
    %16 = tpu.concatenate %15, %14, %15 in 0 : vector<1x256xf32>, vector<16x256xf32>, vector<1x256xf32> -> vector<18x256xf32>
    %17 = vector.extract_strided_slice %16 {offsets = [0, 0], sizes = [16, 256], strides = [1, 1]} : vector<18x256xf32> to vector<16x256xf32>
    %18 = vector.extract_strided_slice %16 {offsets = [1, 0], sizes = [16, 256], strides = [1, 1]} : vector<18x256xf32> to vector<16x256xf32>
    %19 = vector.extract_strided_slice %16 {offsets = [2, 0], sizes = [16, 256], strides = [1, 1]} : vector<18x256xf32> to vector<16x256xf32>
    %20 = tpu.concatenate %17, %18, %19 in 1 : vector<16x256xf32>, vector<16x256xf32>, vector<16x256xf32> -> vector<16x768xf32>
    %21 = tpu.concatenate %13, %20 in 0 : vector<16x768xf32>, vector<16x768xf32> -> vector<32x768xf32>
    %cst_9 = arith.constant dense<0.000000e+00> : vector<32x32xf32>
    %22 = tpu.matmul %21, %5, %cst_9 {dimension_numbers = #tpu.dot_dimension_numbers<[1], [0], [0], [1], [0, 0, 1, 1], [], []>} : vector<32x768xf32>, vector<768x32xf32>, vector<32x32xf32> -> vector<32x32xf32>
    %23 = vector.broadcast %6 : vector<1x32xf32> to vector<32x32xf32>
    %24 = arith.addf %22, %23 : vector<32x32xf32>
    %cst_10 = arith.constant 0.000000e+00 : f32
    %25 = vector.broadcast %cst_10 : f32 to vector<32x32xf32>
    %26 = arith.maximumf %24, %25 : vector<32x32xf32>
    %c0_11 = arith.constant 0 : index
    %c0_12 = arith.constant 0 : index
    %c0_13 = arith.constant 0 : index
    %c0_14 = arith.constant 0 : index
    %27 = vector.load %arg5[%c0_11, %c0_12, %c0_13, %c0_14] : memref<1x3x128x32xf32, #tpu.memory_space<vmem>>, vector<1x1x128x32xf32>
    %28 = vector.shape_cast %27 : vector<1x1x128x32xf32> to vector<128x32xf32>
    %29 = vector.extract_strided_slice %3 {offsets = [1, 0], sizes = [1, 32], strides = [1, 1]} : vector<34x32xf32> to vector<1x32xf32>
    %30 = tpu.iota {dimensions = array<i32: 0>} : vector<8x15xi32>
    %31 = tpu.iota {dimensions = array<i32: 1>} : vector<8x15xi32>
    %c2_i32 = arith.constant 2 : i32
    %32 = vector.broadcast %c2_i32 : i32 to vector<8x15xi32>
    %33 = arith.muli %30, %32 : vector<8x15xi32>
    %34 = arith.cmpi eq, %31, %33 : vector<8x15xi32>
    %cst_15 = arith.constant 1.000000e+00 : f32
    %cst_16 = arith.constant 0.000000e+00 : f32
    %35 = vector.broadcast %cst_15 : f32 to vector<8x15xf32>
    %36 = vector.broadcast %cst_16 : f32 to vector<8x15xf32>
    %37 = arith.select %34, %35, %36 : vector<8x15xi1>, vector<8x15xf32>
    %38 = vector.extract_strided_slice %26 {offsets = [0, 0], sizes = [16, 32], strides = [1, 1]} : vector<32x32xf32> to vector<16x32xf32>
    %cst_17 = arith.constant 0.000000e+00 : f32
    %39 = vector.broadcast %cst_17 : f32 to vector<1x32xf32>
    %40 = tpu.concatenate %39, %38, %39 in 0 : vector<1x32xf32>, vector<16x32xf32>, vector<1x32xf32> -> vector<18x32xf32>
    %41 = vector.extract_strided_slice %40 {offsets = [0, 0], sizes = [15, 32], strides = [1, 1]} : vector<18x32xf32> to vector<15x32xf32>
    %42 = vector.extract_strided_slice %40 {offsets = [1, 0], sizes = [15, 32], strides = [1, 1]} : vector<18x32xf32> to vector<15x32xf32>
    %43 = vector.extract_strided_slice %40 {offsets = [2, 0], sizes = [15, 32], strides = [1, 1]} : vector<18x32xf32> to vector<15x32xf32>
    %44 = vector.extract_strided_slice %40 {offsets = [3, 0], sizes = [15, 32], strides = [1, 1]} : vector<18x32xf32> to vector<15x32xf32>
    %45 = tpu.concatenate %41, %42, %43, %44 in 1 : vector<15x32xf32>, vector<15x32xf32>, vector<15x32xf32>, vector<15x32xf32> -> vector<15x128xf32>
    %cst_18 = arith.constant dense<0.000000e+00> : vector<8x128xf32>
    %46 = tpu.matmul %37, %45, %cst_18 {dimension_numbers = #tpu.dot_dimension_numbers<[1], [0], [0], [1], [0, 0, 1, 1], [], []>} : vector<8x15xf32>, vector<15x128xf32>, vector<8x128xf32> -> vector<8x128xf32>
    %47 = vector.extract_strided_slice %26 {offsets = [16, 0], sizes = [16, 32], strides = [1, 1]} : vector<32x32xf32> to vector<16x32xf32>
    %cst_19 = arith.constant 0.000000e+00 : f32
    %48 = vector.broadcast %cst_19 : f32 to vector<1x32xf32>
    %49 = tpu.concatenate %48, %47, %48 in 0 : vector<1x32xf32>, vector<16x32xf32>, vector<1x32xf32> -> vector<18x32xf32>
    %50 = vector.extract_strided_slice %49 {offsets = [0, 0], sizes = [15, 32], strides = [1, 1]} : vector<18x32xf32> to vector<15x32xf32>
    %51 = vector.extract_strided_slice %49 {offsets = [1, 0], sizes = [15, 32], strides = [1, 1]} : vector<18x32xf32> to vector<15x32xf32>
    %52 = vector.extract_strided_slice %49 {offsets = [2, 0], sizes = [15, 32], strides = [1, 1]} : vector<18x32xf32> to vector<15x32xf32>
    %53 = vector.extract_strided_slice %49 {offsets = [3, 0], sizes = [15, 32], strides = [1, 1]} : vector<18x32xf32> to vector<15x32xf32>
    %54 = tpu.concatenate %50, %51, %52, %53 in 1 : vector<15x32xf32>, vector<15x32xf32>, vector<15x32xf32>, vector<15x32xf32> -> vector<15x128xf32>
    %cst_20 = arith.constant dense<0.000000e+00> : vector<8x128xf32>
    %55 = tpu.matmul %37, %54, %cst_20 {dimension_numbers = #tpu.dot_dimension_numbers<[1], [0], [0], [1], [0, 0, 1, 1], [], []>} : vector<8x15xf32>, vector<15x128xf32>, vector<8x128xf32> -> vector<8x128xf32>
    %56 = tpu.concatenate %46, %55 in 0 : vector<8x128xf32>, vector<8x128xf32> -> vector<16x128xf32>
    %cst_21 = arith.constant dense<0.000000e+00> : vector<16x32xf32>
    %57 = tpu.matmul %56, %28, %cst_21 {dimension_numbers = #tpu.dot_dimension_numbers<[1], [0], [0], [1], [0, 0, 1, 1], [], []>} : vector<16x128xf32>, vector<128x32xf32>, vector<16x32xf32> -> vector<16x32xf32>
    %58 = vector.broadcast %29 : vector<1x32xf32> to vector<16x32xf32>
    %59 = arith.addf %57, %58 : vector<16x32xf32>
    %cst_22 = arith.constant 0.000000e+00 : f32
    %60 = vector.broadcast %cst_22 : f32 to vector<16x32xf32>
    %61 = arith.maximumf %59, %60 : vector<16x32xf32>
    %c0_23 = arith.constant 0 : index
    %c0_24 = arith.constant 0 : index
    %c0_25 = arith.constant 0 : index
    %c0_26 = arith.constant 0 : index
    %62 = vector.load %arg3[%c0_23, %c0_24, %c0_25, %c0_26] : memref<1x18x96x32xf32, #tpu.memory_space<vmem>>, vector<1x1x96x32xf32>
    %63 = vector.shape_cast %62 : vector<1x1x96x32xf32> to vector<96x32xf32>
    %64 = vector.extract_strided_slice %3 {offsets = [2, 0], sizes = [1, 32], strides = [1, 1]} : vector<34x32xf32> to vector<1x32xf32>
    %65 = vector.extract_strided_slice %61 {offsets = [0, 0], sizes = [8, 32], strides = [1, 1]} : vector<16x32xf32> to vector<8x32xf32>
    %cst_27 = arith.constant 0.000000e+00 : f32
    %66 = vector.broadcast %cst_27 : f32 to vector<3x32xf32>
    %67 = tpu.concatenate %66, %65, %66 in 0 : vector<3x32xf32>, vector<8x32xf32>, vector<3x32xf32> -> vector<14x32xf32>
    %68 = vector.extract_strided_slice %67 {offsets = [0, 0], sizes = [8, 32], strides = [1, 1]} : vector<14x32xf32> to vector<8x32xf32>
    %69 = vector.extract_strided_slice %67 {offsets = [3, 0], sizes = [8, 32], strides = [1, 1]} : vector<14x32xf32> to vector<8x32xf32>
    %70 = vector.extract_strided_slice %67 {offsets = [6, 0], sizes = [8, 32], strides = [1, 1]} : vector<14x32xf32> to vector<8x32xf32>
    %71 = tpu.concatenate %68, %69, %70 in 1 : vector<8x32xf32>, vector<8x32xf32>, vector<8x32xf32> -> vector<8x96xf32>
    %72 = vector.extract_strided_slice %61 {offsets = [8, 0], sizes = [8, 32], strides = [1, 1]} : vector<16x32xf32> to vector<8x32xf32>
    %cst_28 = arith.constant 0.000000e+00 : f32
    %73 = vector.broadcast %cst_28 : f32 to vector<3x32xf32>
    %74 = tpu.concatenate %73, %72, %73 in 0 : vector<3x32xf32>, vector<8x32xf32>, vector<3x32xf32> -> vector<14x32xf32>
    %75 = vector.extract_strided_slice %74 {offsets = [0, 0], sizes = [8, 32], strides = [1, 1]} : vector<14x32xf32> to vector<8x32xf32>
    %76 = vector.extract_strided_slice %74 {offsets = [3, 0], sizes = [8, 32], strides = [1, 1]} : vector<14x32xf32> to vector<8x32xf32>
    %77 = vector.extract_strided_slice %74 {offsets = [6, 0], sizes = [8, 32], strides = [1, 1]} : vector<14x32xf32> to vector<8x32xf32>
    %78 = tpu.concatenate %75, %76, %77 in 1 : vector<8x32xf32>, vector<8x32xf32>, vector<8x32xf32> -> vector<8x96xf32>
    %79 = tpu.concatenate %71, %78 in 0 : vector<8x96xf32>, vector<8x96xf32> -> vector<16x96xf32>
    %cst_29 = arith.constant dense<0.000000e+00> : vector<16x32xf32>
    %80 = tpu.matmul %79, %63, %cst_29 {dimension_numbers = #tpu.dot_dimension_numbers<[1], [0], [0], [1], [0, 0, 1, 1], [], []>} : vector<16x96xf32>, vector<96x32xf32>, vector<16x32xf32> -> vector<16x32xf32>
    %81 = vector.broadcast %64 : vector<1x32xf32> to vector<16x32xf32>
    %82 = arith.addf %80, %81 : vector<16x32xf32>
    %cst_30 = arith.constant 0.000000e+00 : f32
    %83 = vector.broadcast %cst_30 : f32 to vector<16x32xf32>
    %84 = arith.maximumf %82, %83 : vector<16x32xf32>
    %c0_31 = arith.constant 0 : index
    %c0_32 = arith.constant 0 : index
    %c0_33 = arith.constant 0 : index
    %c0_34 = arith.constant 0 : index
    %85 = vector.load %arg4[%c0_31, %c0_32, %c0_33, %c0_34] : memref<1x12x32x32xf32, #tpu.memory_space<vmem>>, vector<1x1x32x32xf32>
    %86 = vector.shape_cast %85 : vector<1x1x32x32xf32> to vector<32x32xf32>
    %87 = vector.extract_strided_slice %3 {offsets = [3, 0], sizes = [1, 32], strides = [1, 1]} : vector<34x32xf32> to vector<1x32xf32>
    %cst_35 = arith.constant dense<0.000000e+00> : vector<16x32xf32>
    %88 = tpu.matmul %84, %86, %cst_35 {dimension_numbers = #tpu.dot_dimension_numbers<[1], [0], [0], [1], [0, 0, 1, 1], [], []>} : vector<16x32xf32>, vector<32x32xf32>, vector<16x32xf32> -> vector<16x32xf32>
    %89 = vector.broadcast %87 : vector<1x32xf32> to vector<16x32xf32>
    %90 = arith.addf %88, %89 : vector<16x32xf32>
    %91 = arith.addf %59, %90 : vector<16x32xf32>
    %cst_36 = arith.constant 0.000000e+00 : f32
    %92 = vector.broadcast %cst_36 : f32 to vector<16x32xf32>
    %93 = arith.maximumf %91, %92 : vector<16x32xf32>
    %c0_37 = arith.constant 0 : index
    %c1 = arith.constant 1 : index
    %c0_38 = arith.constant 0 : index
    %c0_39 = arith.constant 0 : index
    %94 = vector.load %arg3[%c0_37, %c1, %c0_38, %c0_39] : memref<1x18x96x32xf32, #tpu.memory_space<vmem>>, vector<1x1x96x32xf32>
    %95 = vector.shape_cast %94 : vector<1x1x96x32xf32> to vector<96x32xf32>
    %96 = vector.extract_strided_slice %3 {offsets = [4, 0], sizes = [1, 32], strides = [1, 1]} : vector<34x32xf32> to vector<1x32xf32>
    %97 = vector.extract_strided_slice %93 {offsets = [0, 0], sizes = [8, 32], strides = [1, 1]} : vector<16x32xf32> to vector<8x32xf32>
    %cst_40 = arith.constant 0.000000e+00 : f32
    %98 = vector.broadcast %cst_40 : f32 to vector<1x32xf32>
    %99 = tpu.concatenate %98, %97, %98 in 0 : vector<1x32xf32>, vector<8x32xf32>, vector<1x32xf32> -> vector<10x32xf32>
    %100 = vector.extract_strided_slice %99 {offsets = [0, 0], sizes = [8, 32], strides = [1, 1]} : vector<10x32xf32> to vector<8x32xf32>
    %101 = vector.extract_strided_slice %99 {offsets = [1, 0], sizes = [8, 32], strides = [1, 1]} : vector<10x32xf32> to vector<8x32xf32>
    %102 = vector.extract_strided_slice %99 {offsets = [2, 0], sizes = [8, 32], strides = [1, 1]} : vector<10x32xf32> to vector<8x32xf32>
    %103 = tpu.concatenate %100, %101, %102 in 1 : vector<8x32xf32>, vector<8x32xf32>, vector<8x32xf32> -> vector<8x96xf32>
    %104 = vector.extract_strided_slice %93 {offsets = [8, 0], sizes = [8, 32], strides = [1, 1]} : vector<16x32xf32> to vector<8x32xf32>
    %cst_41 = arith.constant 0.000000e+00 : f32
    %105 = vector.broadcast %cst_41 : f32 to vector<1x32xf32>
    %106 = tpu.concatenate %105, %104, %105 in 0 : vector<1x32xf32>, vector<8x32xf32>, vector<1x32xf32> -> vector<10x32xf32>
    %107 = vector.extract_strided_slice %106 {offsets = [0, 0], sizes = [8, 32], strides = [1, 1]} : vector<10x32xf32> to vector<8x32xf32>
    %108 = vector.extract_strided_slice %106 {offsets = [1, 0], sizes = [8, 32], strides = [1, 1]} : vector<10x32xf32> to vector<8x32xf32>
    %109 = vector.extract_strided_slice %106 {offsets = [2, 0], sizes = [8, 32], strides = [1, 1]} : vector<10x32xf32> to vector<8x32xf32>
    %110 = tpu.concatenate %107, %108, %109 in 1 : vector<8x32xf32>, vector<8x32xf32>, vector<8x32xf32> -> vector<8x96xf32>
    %111 = tpu.concatenate %103, %110 in 0 : vector<8x96xf32>, vector<8x96xf32> -> vector<16x96xf32>
    %cst_42 = arith.constant dense<0.000000e+00> : vector<16x32xf32>
    %112 = tpu.matmul %111, %95, %cst_42 {dimension_numbers = #tpu.dot_dimension_numbers<[1], [0], [0], [1], [0, 0, 1, 1], [], []>} : vector<16x96xf32>, vector<96x32xf32>, vector<16x32xf32> -> vector<16x32xf32>
    %113 = vector.broadcast %96 : vector<1x32xf32> to vector<16x32xf32>
    %114 = arith.addf %112, %113 : vector<16x32xf32>
    %cst_43 = arith.constant 0.000000e+00 : f32
    %115 = vector.broadcast %cst_43 : f32 to vector<16x32xf32>
    %116 = arith.maximumf %114, %115 : vector<16x32xf32>
    %c0_44 = arith.constant 0 : index
    %c1_45 = arith.constant 1 : index
    %c0_46 = arith.constant 0 : index
    %c0_47 = arith.constant 0 : index
    %117 = vector.load %arg4[%c0_44, %c1_45, %c0_46, %c0_47] : memref<1x12x32x32xf32, #tpu.memory_space<vmem>>, vector<1x1x32x32xf32>
    %118 = vector.shape_cast %117 : vector<1x1x32x32xf32> to vector<32x32xf32>
    %119 = vector.extract_strided_slice %3 {offsets = [5, 0], sizes = [1, 32], strides = [1, 1]} : vector<34x32xf32> to vector<1x32xf32>
    %cst_48 = arith.constant dense<0.000000e+00> : vector<16x32xf32>
    %120 = tpu.matmul %116, %118, %cst_48 {dimension_numbers = #tpu.dot_dimension_numbers<[1], [0], [0], [1], [0, 0, 1, 1], [], []>} : vector<16x32xf32>, vector<32x32xf32>, vector<16x32xf32> -> vector<16x32xf32>
    %121 = vector.broadcast %119 : vector<1x32xf32> to vector<16x32xf32>
    %122 = arith.addf %120, %121 : vector<16x32xf32>
    %123 = arith.addf %91, %122 : vector<16x32xf32>
    %c0_49 = arith.constant 0 : index
    %c1_50 = arith.constant 1 : index
    %c0_51 = arith.constant 0 : index
    %c0_52 = arith.constant 0 : index
    %124 = vector.load %arg5[%c0_49, %c1_50, %c0_51, %c0_52] : memref<1x3x128x32xf32, #tpu.memory_space<vmem>>, vector<1x1x128x32xf32>
    %125 = vector.shape_cast %124 : vector<1x1x128x32xf32> to vector<128x32xf32>
    %126 = vector.extract_strided_slice %3 {offsets = [6, 0], sizes = [1, 32], strides = [1, 1]} : vector<34x32xf32> to vector<1x32xf32>
    %127 = tpu.iota {dimensions = array<i32: 0>} : vector<4x7xi32>
    %128 = tpu.iota {dimensions = array<i32: 1>} : vector<4x7xi32>
    %c2_i32_53 = arith.constant 2 : i32
    %129 = vector.broadcast %c2_i32_53 : i32 to vector<4x7xi32>
    %130 = arith.muli %127, %129 : vector<4x7xi32>
    %131 = arith.cmpi eq, %128, %130 : vector<4x7xi32>
    %cst_54 = arith.constant 1.000000e+00 : f32
    %cst_55 = arith.constant 0.000000e+00 : f32
    %132 = vector.broadcast %cst_54 : f32 to vector<4x7xf32>
    %133 = vector.broadcast %cst_55 : f32 to vector<4x7xf32>
    %134 = arith.select %131, %132, %133 : vector<4x7xi1>, vector<4x7xf32>
    %135 = vector.extract_strided_slice %123 {offsets = [0, 0], sizes = [8, 32], strides = [1, 1]} : vector<16x32xf32> to vector<8x32xf32>
    %cst_56 = arith.constant 0.000000e+00 : f32
    %136 = vector.broadcast %cst_56 : f32 to vector<1x32xf32>
    %137 = tpu.concatenate %136, %135, %136 in 0 : vector<1x32xf32>, vector<8x32xf32>, vector<1x32xf32> -> vector<10x32xf32>
    %138 = vector.extract_strided_slice %137 {offsets = [0, 0], sizes = [7, 32], strides = [1, 1]} : vector<10x32xf32> to vector<7x32xf32>
    %139 = vector.extract_strided_slice %137 {offsets = [1, 0], sizes = [7, 32], strides = [1, 1]} : vector<10x32xf32> to vector<7x32xf32>
    %140 = vector.extract_strided_slice %137 {offsets = [2, 0], sizes = [7, 32], strides = [1, 1]} : vector<10x32xf32> to vector<7x32xf32>
    %141 = vector.extract_strided_slice %137 {offsets = [3, 0], sizes = [7, 32], strides = [1, 1]} : vector<10x32xf32> to vector<7x32xf32>
    %142 = tpu.concatenate %138, %139, %140, %141 in 1 : vector<7x32xf32>, vector<7x32xf32>, vector<7x32xf32>, vector<7x32xf32> -> vector<7x128xf32>
    %cst_57 = arith.constant dense<0.000000e+00> : vector<4x128xf32>
    %143 = tpu.matmul %134, %142, %cst_57 {dimension_numbers = #tpu.dot_dimension_numbers<[1], [0], [0], [1], [0, 0, 1, 1], [], []>} : vector<4x7xf32>, vector<7x128xf32>, vector<4x128xf32> -> vector<4x128xf32>
    %144 = vector.extract_strided_slice %123 {offsets = [8, 0], sizes = [8, 32], strides = [1, 1]} : vector<16x32xf32> to vector<8x32xf32>
    %cst_58 = arith.constant 0.000000e+00 : f32
    %145 = vector.broadcast %cst_58 : f32 to vector<1x32xf32>
    %146 = tpu.concatenate %145, %144, %145 in 0 : vector<1x32xf32>, vector<8x32xf32>, vector<1x32xf32> -> vector<10x32xf32>
    %147 = vector.extract_strided_slice %146 {offsets = [0, 0], sizes = [7, 32], strides = [1, 1]} : vector<10x32xf32> to vector<7x32xf32>
    %148 = vector.extract_strided_slice %146 {offsets = [1, 0], sizes = [7, 32], strides = [1, 1]} : vector<10x32xf32> to vector<7x32xf32>
    %149 = vector.extract_strided_slice %146 {offsets = [2, 0], sizes = [7, 32], strides = [1, 1]} : vector<10x32xf32> to vector<7x32xf32>
    %150 = vector.extract_strided_slice %146 {offsets = [3, 0], sizes = [7, 32], strides = [1, 1]} : vector<10x32xf32> to vector<7x32xf32>
    %151 = tpu.concatenate %147, %148, %149, %150 in 1 : vector<7x32xf32>, vector<7x32xf32>, vector<7x32xf32>, vector<7x32xf32> -> vector<7x128xf32>
    %cst_59 = arith.constant dense<0.000000e+00> : vector<4x128xf32>
    %152 = tpu.matmul %134, %151, %cst_59 {dimension_numbers = #tpu.dot_dimension_numbers<[1], [0], [0], [1], [0, 0, 1, 1], [], []>} : vector<4x7xf32>, vector<7x128xf32>, vector<4x128xf32> -> vector<4x128xf32>
    %153 = tpu.concatenate %143, %152 in 0 : vector<4x128xf32>, vector<4x128xf32> -> vector<8x128xf32>
    %cst_60 = arith.constant dense<0.000000e+00> : vector<8x32xf32>
    %154 = tpu.matmul %153, %125, %cst_60 {dimension_numbers = #tpu.dot_dimension_numbers<[1], [0], [0], [1], [0, 0, 1, 1], [], []>} : vector<8x128xf32>, vector<128x32xf32>, vector<8x32xf32> -> vector<8x32xf32>
    %155 = vector.broadcast %126 : vector<1x32xf32> to vector<8x32xf32>
    %156 = arith.addf %154, %155 : vector<8x32xf32>
    %cst_61 = arith.constant 0.000000e+00 : f32
    %157 = vector.broadcast %cst_61 : f32 to vector<8x32xf32>
    %158 = arith.maximumf %156, %157 : vector<8x32xf32>
    %c0_62 = arith.constant 0 : index
    %c2 = arith.constant 2 : index
    %c0_63 = arith.constant 0 : index
    %c0_64 = arith.constant 0 : index
    %159 = vector.load %arg3[%c0_62, %c2, %c0_63, %c0_64] : memref<1x18x96x32xf32, #tpu.memory_space<vmem>>, vector<1x1x96x32xf32>
    %160 = vector.shape_cast %159 : vector<1x1x96x32xf32> to vector<96x32xf32>
    %161 = vector.extract_strided_slice %3 {offsets = [7, 0], sizes = [1, 32], strides = [1, 1]} : vector<34x32xf32> to vector<1x32xf32>
    %162 = vector.extract_strided_slice %158 {offsets = [0, 0], sizes = [4, 32], strides = [1, 1]} : vector<8x32xf32> to vector<4x32xf32>
    %cst_65 = arith.constant 0.000000e+00 : f32
    %163 = vector.broadcast %cst_65 : f32 to vector<3x32xf32>
    %164 = tpu.concatenate %163, %162, %163 in 0 : vector<3x32xf32>, vector<4x32xf32>, vector<3x32xf32> -> vector<10x32xf32>
    %165 = vector.extract_strided_slice %164 {offsets = [0, 0], sizes = [4, 32], strides = [1, 1]} : vector<10x32xf32> to vector<4x32xf32>
    %166 = vector.extract_strided_slice %164 {offsets = [3, 0], sizes = [4, 32], strides = [1, 1]} : vector<10x32xf32> to vector<4x32xf32>
    %167 = vector.extract_strided_slice %164 {offsets = [6, 0], sizes = [4, 32], strides = [1, 1]} : vector<10x32xf32> to vector<4x32xf32>
    %168 = tpu.concatenate %165, %166, %167 in 1 : vector<4x32xf32>, vector<4x32xf32>, vector<4x32xf32> -> vector<4x96xf32>
    %169 = vector.extract_strided_slice %158 {offsets = [4, 0], sizes = [4, 32], strides = [1, 1]} : vector<8x32xf32> to vector<4x32xf32>
    %cst_66 = arith.constant 0.000000e+00 : f32
    %170 = vector.broadcast %cst_66 : f32 to vector<3x32xf32>
    %171 = tpu.concatenate %170, %169, %170 in 0 : vector<3x32xf32>, vector<4x32xf32>, vector<3x32xf32> -> vector<10x32xf32>
    %172 = vector.extract_strided_slice %171 {offsets = [0, 0], sizes = [4, 32], strides = [1, 1]} : vector<10x32xf32> to vector<4x32xf32>
    %173 = vector.extract_strided_slice %171 {offsets = [3, 0], sizes = [4, 32], strides = [1, 1]} : vector<10x32xf32> to vector<4x32xf32>
    %174 = vector.extract_strided_slice %171 {offsets = [6, 0], sizes = [4, 32], strides = [1, 1]} : vector<10x32xf32> to vector<4x32xf32>
    %175 = tpu.concatenate %172, %173, %174 in 1 : vector<4x32xf32>, vector<4x32xf32>, vector<4x32xf32> -> vector<4x96xf32>
    %176 = tpu.concatenate %168, %175 in 0 : vector<4x96xf32>, vector<4x96xf32> -> vector<8x96xf32>
    %cst_67 = arith.constant dense<0.000000e+00> : vector<8x32xf32>
    %177 = tpu.matmul %176, %160, %cst_67 {dimension_numbers = #tpu.dot_dimension_numbers<[1], [0], [0], [1], [0, 0, 1, 1], [], []>} : vector<8x96xf32>, vector<96x32xf32>, vector<8x32xf32> -> vector<8x32xf32>
    %178 = vector.broadcast %161 : vector<1x32xf32> to vector<8x32xf32>
    %179 = arith.addf %177, %178 : vector<8x32xf32>
    %cst_68 = arith.constant 0.000000e+00 : f32
    %180 = vector.broadcast %cst_68 : f32 to vector<8x32xf32>
    %181 = arith.maximumf %179, %180 : vector<8x32xf32>
    %c0_69 = arith.constant 0 : index
    %c2_70 = arith.constant 2 : index
    %c0_71 = arith.constant 0 : index
    %c0_72 = arith.constant 0 : index
    %182 = vector.load %arg4[%c0_69, %c2_70, %c0_71, %c0_72] : memref<1x12x32x32xf32, #tpu.memory_space<vmem>>, vector<1x1x32x32xf32>
    %183 = vector.shape_cast %182 : vector<1x1x32x32xf32> to vector<32x32xf32>
    %184 = vector.extract_strided_slice %3 {offsets = [8, 0], sizes = [1, 32], strides = [1, 1]} : vector<34x32xf32> to vector<1x32xf32>
    %cst_73 = arith.constant dense<0.000000e+00> : vector<8x32xf32>
    %185 = tpu.matmul %181, %183, %cst_73 {dimension_numbers = #tpu.dot_dimension_numbers<[1], [0], [0], [1], [0, 0, 1, 1], [], []>} : vector<8x32xf32>, vector<32x32xf32>, vector<8x32xf32> -> vector<8x32xf32>
    %186 = vector.broadcast %184 : vector<1x32xf32> to vector<8x32xf32>
    %187 = arith.addf %185, %186 : vector<8x32xf32>
    %188 = arith.addf %156, %187 : vector<8x32xf32>
    %cst_74 = arith.constant 0.000000e+00 : f32
    %189 = vector.broadcast %cst_74 : f32 to vector<8x32xf32>
    %190 = arith.maximumf %188, %189 : vector<8x32xf32>
    %c0_75 = arith.constant 0 : index
    %c3 = arith.constant 3 : index
    %c0_76 = arith.constant 0 : index
    %c0_77 = arith.constant 0 : index
    %191 = vector.load %arg3[%c0_75, %c3, %c0_76, %c0_77] : memref<1x18x96x32xf32, #tpu.memory_space<vmem>>, vector<1x1x96x32xf32>
    %192 = vector.shape_cast %191 : vector<1x1x96x32xf32> to vector<96x32xf32>
    %193 = vector.extract_strided_slice %3 {offsets = [9, 0], sizes = [1, 32], strides = [1, 1]} : vector<34x32xf32> to vector<1x32xf32>
    %194 = vector.extract_strided_slice %190 {offsets = [0, 0], sizes = [4, 32], strides = [1, 1]} : vector<8x32xf32> to vector<4x32xf32>
    %cst_78 = arith.constant 0.000000e+00 : f32
    %195 = vector.broadcast %cst_78 : f32 to vector<1x32xf32>
    %196 = tpu.concatenate %195, %194, %195 in 0 : vector<1x32xf32>, vector<4x32xf32>, vector<1x32xf32> -> vector<6x32xf32>
    %197 = vector.extract_strided_slice %196 {offsets = [0, 0], sizes = [4, 32], strides = [1, 1]} : vector<6x32xf32> to vector<4x32xf32>
    %198 = vector.extract_strided_slice %196 {offsets = [1, 0], sizes = [4, 32], strides = [1, 1]} : vector<6x32xf32> to vector<4x32xf32>
    %199 = vector.extract_strided_slice %196 {offsets = [2, 0], sizes = [4, 32], strides = [1, 1]} : vector<6x32xf32> to vector<4x32xf32>
    %200 = tpu.concatenate %197, %198, %199 in 1 : vector<4x32xf32>, vector<4x32xf32>, vector<4x32xf32> -> vector<4x96xf32>
    %201 = vector.extract_strided_slice %190 {offsets = [4, 0], sizes = [4, 32], strides = [1, 1]} : vector<8x32xf32> to vector<4x32xf32>
    %cst_79 = arith.constant 0.000000e+00 : f32
    %202 = vector.broadcast %cst_79 : f32 to vector<1x32xf32>
    %203 = tpu.concatenate %202, %201, %202 in 0 : vector<1x32xf32>, vector<4x32xf32>, vector<1x32xf32> -> vector<6x32xf32>
    %204 = vector.extract_strided_slice %203 {offsets = [0, 0], sizes = [4, 32], strides = [1, 1]} : vector<6x32xf32> to vector<4x32xf32>
    %205 = vector.extract_strided_slice %203 {offsets = [1, 0], sizes = [4, 32], strides = [1, 1]} : vector<6x32xf32> to vector<4x32xf32>
    %206 = vector.extract_strided_slice %203 {offsets = [2, 0], sizes = [4, 32], strides = [1, 1]} : vector<6x32xf32> to vector<4x32xf32>
    %207 = tpu.concatenate %204, %205, %206 in 1 : vector<4x32xf32>, vector<4x32xf32>, vector<4x32xf32> -> vector<4x96xf32>
    %208 = tpu.concatenate %200, %207 in 0 : vector<4x96xf32>, vector<4x96xf32> -> vector<8x96xf32>
    %cst_80 = arith.constant dense<0.000000e+00> : vector<8x32xf32>
    %209 = tpu.matmul %208, %192, %cst_80 {dimension_numbers = #tpu.dot_dimension_numbers<[1], [0], [0], [1], [0, 0, 1, 1], [], []>} : vector<8x96xf32>, vector<96x32xf32>, vector<8x32xf32> -> vector<8x32xf32>
    %210 = vector.broadcast %193 : vector<1x32xf32> to vector<8x32xf32>
    %211 = arith.addf %209, %210 : vector<8x32xf32>
    %cst_81 = arith.constant 0.000000e+00 : f32
    %212 = vector.broadcast %cst_81 : f32 to vector<8x32xf32>
    %213 = arith.maximumf %211, %212 : vector<8x32xf32>
    %c0_82 = arith.constant 0 : index
    %c3_83 = arith.constant 3 : index
    %c0_84 = arith.constant 0 : index
    %c0_85 = arith.constant 0 : index
    %214 = vector.load %arg4[%c0_82, %c3_83, %c0_84, %c0_85] : memref<1x12x32x32xf32, #tpu.memory_space<vmem>>, vector<1x1x32x32xf32>
    %215 = vector.shape_cast %214 : vector<1x1x32x32xf32> to vector<32x32xf32>
    %216 = vector.extract_strided_slice %3 {offsets = [10, 0], sizes = [1, 32], strides = [1, 1]} : vector<34x32xf32> to vector<1x32xf32>
    %cst_86 = arith.constant dense<0.000000e+00> : vector<8x32xf32>
    %217 = tpu.matmul %213, %215, %cst_86 {dimension_numbers = #tpu.dot_dimension_numbers<[1], [0], [0], [1], [0, 0, 1, 1], [], []>} : vector<8x32xf32>, vector<32x32xf32>, vector<8x32xf32> -> vector<8x32xf32>
    %218 = vector.broadcast %216 : vector<1x32xf32> to vector<8x32xf32>
    %219 = arith.addf %217, %218 : vector<8x32xf32>
    %220 = arith.addf %188, %219 : vector<8x32xf32>
    %c0_87 = arith.constant 0 : index
    %c2_88 = arith.constant 2 : index
    %c0_89 = arith.constant 0 : index
    %c0_90 = arith.constant 0 : index
    %221 = vector.load %arg5[%c0_87, %c2_88, %c0_89, %c0_90] : memref<1x3x128x32xf32, #tpu.memory_space<vmem>>, vector<1x1x128x32xf32>
    %222 = vector.shape_cast %221 : vector<1x1x128x32xf32> to vector<128x32xf32>
    %223 = vector.extract_strided_slice %3 {offsets = [11, 0], sizes = [1, 32], strides = [1, 1]} : vector<34x32xf32> to vector<1x32xf32>
    %224 = tpu.iota {dimensions = array<i32: 0>} : vector<2x3xi32>
    %225 = tpu.iota {dimensions = array<i32: 1>} : vector<2x3xi32>
    %c2_i32_91 = arith.constant 2 : i32
    %226 = vector.broadcast %c2_i32_91 : i32 to vector<2x3xi32>
    %227 = arith.muli %224, %226 : vector<2x3xi32>
    %228 = arith.cmpi eq, %225, %227 : vector<2x3xi32>
    %cst_92 = arith.constant 1.000000e+00 : f32
    %cst_93 = arith.constant 0.000000e+00 : f32
    %229 = vector.broadcast %cst_92 : f32 to vector<2x3xf32>
    %230 = vector.broadcast %cst_93 : f32 to vector<2x3xf32>
    %231 = arith.select %228, %229, %230 : vector<2x3xi1>, vector<2x3xf32>
    %232 = vector.extract_strided_slice %220 {offsets = [0, 0], sizes = [4, 32], strides = [1, 1]} : vector<8x32xf32> to vector<4x32xf32>
    %cst_94 = arith.constant 0.000000e+00 : f32
    %233 = vector.broadcast %cst_94 : f32 to vector<1x32xf32>
    %234 = tpu.concatenate %233, %232, %233 in 0 : vector<1x32xf32>, vector<4x32xf32>, vector<1x32xf32> -> vector<6x32xf32>
    %235 = vector.extract_strided_slice %234 {offsets = [0, 0], sizes = [3, 32], strides = [1, 1]} : vector<6x32xf32> to vector<3x32xf32>
    %236 = vector.extract_strided_slice %234 {offsets = [1, 0], sizes = [3, 32], strides = [1, 1]} : vector<6x32xf32> to vector<3x32xf32>
    %237 = vector.extract_strided_slice %234 {offsets = [2, 0], sizes = [3, 32], strides = [1, 1]} : vector<6x32xf32> to vector<3x32xf32>
    %238 = vector.extract_strided_slice %234 {offsets = [3, 0], sizes = [3, 32], strides = [1, 1]} : vector<6x32xf32> to vector<3x32xf32>
    %239 = tpu.concatenate %235, %236, %237, %238 in 1 : vector<3x32xf32>, vector<3x32xf32>, vector<3x32xf32>, vector<3x32xf32> -> vector<3x128xf32>
    %cst_95 = arith.constant dense<0.000000e+00> : vector<2x128xf32>
    %240 = tpu.matmul %231, %239, %cst_95 {dimension_numbers = #tpu.dot_dimension_numbers<[1], [0], [0], [1], [0, 0, 1, 1], [], []>} : vector<2x3xf32>, vector<3x128xf32>, vector<2x128xf32> -> vector<2x128xf32>
    %241 = vector.extract_strided_slice %220 {offsets = [4, 0], sizes = [4, 32], strides = [1, 1]} : vector<8x32xf32> to vector<4x32xf32>
    %cst_96 = arith.constant 0.000000e+00 : f32
    %242 = vector.broadcast %cst_96 : f32 to vector<1x32xf32>
    %243 = tpu.concatenate %242, %241, %242 in 0 : vector<1x32xf32>, vector<4x32xf32>, vector<1x32xf32> -> vector<6x32xf32>
    %244 = vector.extract_strided_slice %243 {offsets = [0, 0], sizes = [3, 32], strides = [1, 1]} : vector<6x32xf32> to vector<3x32xf32>
    %245 = vector.extract_strided_slice %243 {offsets = [1, 0], sizes = [3, 32], strides = [1, 1]} : vector<6x32xf32> to vector<3x32xf32>
    %246 = vector.extract_strided_slice %243 {offsets = [2, 0], sizes = [3, 32], strides = [1, 1]} : vector<6x32xf32> to vector<3x32xf32>
    %247 = vector.extract_strided_slice %243 {offsets = [3, 0], sizes = [3, 32], strides = [1, 1]} : vector<6x32xf32> to vector<3x32xf32>
    %248 = tpu.concatenate %244, %245, %246, %247 in 1 : vector<3x32xf32>, vector<3x32xf32>, vector<3x32xf32>, vector<3x32xf32> -> vector<3x128xf32>
    %cst_97 = arith.constant dense<0.000000e+00> : vector<2x128xf32>
    %249 = tpu.matmul %231, %248, %cst_97 {dimension_numbers = #tpu.dot_dimension_numbers<[1], [0], [0], [1], [0, 0, 1, 1], [], []>} : vector<2x3xf32>, vector<3x128xf32>, vector<2x128xf32> -> vector<2x128xf32>
    %250 = tpu.concatenate %240, %249 in 0 : vector<2x128xf32>, vector<2x128xf32> -> vector<4x128xf32>
    %cst_98 = arith.constant dense<0.000000e+00> : vector<4x32xf32>
    %251 = tpu.matmul %250, %222, %cst_98 {dimension_numbers = #tpu.dot_dimension_numbers<[1], [0], [0], [1], [0, 0, 1, 1], [], []>} : vector<4x128xf32>, vector<128x32xf32>, vector<4x32xf32> -> vector<4x32xf32>
    %252 = vector.broadcast %223 : vector<1x32xf32> to vector<4x32xf32>
    %253 = arith.addf %251, %252 : vector<4x32xf32>
    %cst_99 = arith.constant 0.000000e+00 : f32
    %254 = vector.broadcast %cst_99 : f32 to vector<4x32xf32>
    %255 = arith.maximumf %253, %254 : vector<4x32xf32>
    %c0_100 = arith.constant 0 : index
    %c4 = arith.constant 4 : index
    %c0_101 = arith.constant 0 : index
    %c0_102 = arith.constant 0 : index
    %256 = vector.load %arg3[%c0_100, %c4, %c0_101, %c0_102] : memref<1x18x96x32xf32, #tpu.memory_space<vmem>>, vector<1x1x96x32xf32>
    %257 = vector.shape_cast %256 : vector<1x1x96x32xf32> to vector<96x32xf32>
    %258 = vector.extract_strided_slice %3 {offsets = [12, 0], sizes = [1, 32], strides = [1, 1]} : vector<34x32xf32> to vector<1x32xf32>
    %259 = vector.extract_strided_slice %255 {offsets = [0, 0], sizes = [2, 32], strides = [1, 1]} : vector<4x32xf32> to vector<2x32xf32>
    %cst_103 = arith.constant 0.000000e+00 : f32
    %260 = vector.broadcast %cst_103 : f32 to vector<3x32xf32>
    %261 = tpu.concatenate %260, %259, %260 in 0 : vector<3x32xf32>, vector<2x32xf32>, vector<3x32xf32> -> vector<8x32xf32>
    %262 = vector.extract_strided_slice %261 {offsets = [0, 0], sizes = [2, 32], strides = [1, 1]} : vector<8x32xf32> to vector<2x32xf32>
    %263 = vector.extract_strided_slice %261 {offsets = [3, 0], sizes = [2, 32], strides = [1, 1]} : vector<8x32xf32> to vector<2x32xf32>
    %264 = vector.extract_strided_slice %261 {offsets = [6, 0], sizes = [2, 32], strides = [1, 1]} : vector<8x32xf32> to vector<2x32xf32>
    %265 = tpu.concatenate %262, %263, %264 in 1 : vector<2x32xf32>, vector<2x32xf32>, vector<2x32xf32> -> vector<2x96xf32>
    %266 = vector.extract_strided_slice %255 {offsets = [2, 0], sizes = [2, 32], strides = [1, 1]} : vector<4x32xf32> to vector<2x32xf32>
    %cst_104 = arith.constant 0.000000e+00 : f32
    %267 = vector.broadcast %cst_104 : f32 to vector<3x32xf32>
    %268 = tpu.concatenate %267, %266, %267 in 0 : vector<3x32xf32>, vector<2x32xf32>, vector<3x32xf32> -> vector<8x32xf32>
    %269 = vector.extract_strided_slice %268 {offsets = [0, 0], sizes = [2, 32], strides = [1, 1]} : vector<8x32xf32> to vector<2x32xf32>
    %270 = vector.extract_strided_slice %268 {offsets = [3, 0], sizes = [2, 32], strides = [1, 1]} : vector<8x32xf32> to vector<2x32xf32>
    %271 = vector.extract_strided_slice %268 {offsets = [6, 0], sizes = [2, 32], strides = [1, 1]} : vector<8x32xf32> to vector<2x32xf32>
    %272 = tpu.concatenate %269, %270, %271 in 1 : vector<2x32xf32>, vector<2x32xf32>, vector<2x32xf32> -> vector<2x96xf32>
    %273 = tpu.concatenate %265, %272 in 0 : vector<2x96xf32>, vector<2x96xf32> -> vector<4x96xf32>
    %cst_105 = arith.constant dense<0.000000e+00> : vector<4x32xf32>
    %274 = tpu.matmul %273, %257, %cst_105 {dimension_numbers = #tpu.dot_dimension_numbers<[1], [0], [0], [1], [0, 0, 1, 1], [], []>} : vector<4x96xf32>, vector<96x32xf32>, vector<4x32xf32> -> vector<4x32xf32>
    %275 = vector.broadcast %258 : vector<1x32xf32> to vector<4x32xf32>
    %276 = arith.addf %274, %275 : vector<4x32xf32>
    %cst_106 = arith.constant 0.000000e+00 : f32
    %277 = vector.broadcast %cst_106 : f32 to vector<4x32xf32>
    %278 = arith.maximumf %276, %277 : vector<4x32xf32>
    %c0_107 = arith.constant 0 : index
    %c4_108 = arith.constant 4 : index
    %c0_109 = arith.constant 0 : index
    %c0_110 = arith.constant 0 : index
    %279 = vector.load %arg4[%c0_107, %c4_108, %c0_109, %c0_110] : memref<1x12x32x32xf32, #tpu.memory_space<vmem>>, vector<1x1x32x32xf32>
    %280 = vector.shape_cast %279 : vector<1x1x32x32xf32> to vector<32x32xf32>
    %281 = vector.extract_strided_slice %3 {offsets = [13, 0], sizes = [1, 32], strides = [1, 1]} : vector<34x32xf32> to vector<1x32xf32>
    %cst_111 = arith.constant dense<0.000000e+00> : vector<4x32xf32>
    %282 = tpu.matmul %278, %280, %cst_111 {dimension_numbers = #tpu.dot_dimension_numbers<[1], [0], [0], [1], [0, 0, 1, 1], [], []>} : vector<4x32xf32>, vector<32x32xf32>, vector<4x32xf32> -> vector<4x32xf32>
    %283 = vector.broadcast %281 : vector<1x32xf32> to vector<4x32xf32>
    %284 = arith.addf %282, %283 : vector<4x32xf32>
    %285 = arith.addf %253, %284 : vector<4x32xf32>
    %cst_112 = arith.constant 0.000000e+00 : f32
    %286 = vector.broadcast %cst_112 : f32 to vector<4x32xf32>
    %287 = arith.maximumf %285, %286 : vector<4x32xf32>
    %c0_113 = arith.constant 0 : index
    %c5 = arith.constant 5 : index
    %c0_114 = arith.constant 0 : index
    %c0_115 = arith.constant 0 : index
    %288 = vector.load %arg3[%c0_113, %c5, %c0_114, %c0_115] : memref<1x18x96x32xf32, #tpu.memory_space<vmem>>, vector<1x1x96x32xf32>
    %289 = vector.shape_cast %288 : vector<1x1x96x32xf32> to vector<96x32xf32>
    %290 = vector.extract_strided_slice %3 {offsets = [14, 0], sizes = [1, 32], strides = [1, 1]} : vector<34x32xf32> to vector<1x32xf32>
    %291 = vector.extract_strided_slice %287 {offsets = [0, 0], sizes = [2, 32], strides = [1, 1]} : vector<4x32xf32> to vector<2x32xf32>
    %cst_116 = arith.constant 0.000000e+00 : f32
    %292 = vector.broadcast %cst_116 : f32 to vector<1x32xf32>
    %293 = tpu.concatenate %292, %291, %292 in 0 : vector<1x32xf32>, vector<2x32xf32>, vector<1x32xf32> -> vector<4x32xf32>
    %294 = vector.extract_strided_slice %293 {offsets = [0, 0], sizes = [2, 32], strides = [1, 1]} : vector<4x32xf32> to vector<2x32xf32>
    %295 = vector.extract_strided_slice %293 {offsets = [1, 0], sizes = [2, 32], strides = [1, 1]} : vector<4x32xf32> to vector<2x32xf32>
    %296 = vector.extract_strided_slice %293 {offsets = [2, 0], sizes = [2, 32], strides = [1, 1]} : vector<4x32xf32> to vector<2x32xf32>
    %297 = tpu.concatenate %294, %295, %296 in 1 : vector<2x32xf32>, vector<2x32xf32>, vector<2x32xf32> -> vector<2x96xf32>
    %298 = vector.extract_strided_slice %287 {offsets = [2, 0], sizes = [2, 32], strides = [1, 1]} : vector<4x32xf32> to vector<2x32xf32>
    %cst_117 = arith.constant 0.000000e+00 : f32
    %299 = vector.broadcast %cst_117 : f32 to vector<1x32xf32>
    %300 = tpu.concatenate %299, %298, %299 in 0 : vector<1x32xf32>, vector<2x32xf32>, vector<1x32xf32> -> vector<4x32xf32>
    %301 = vector.extract_strided_slice %300 {offsets = [0, 0], sizes = [2, 32], strides = [1, 1]} : vector<4x32xf32> to vector<2x32xf32>
    %302 = vector.extract_strided_slice %300 {offsets = [1, 0], sizes = [2, 32], strides = [1, 1]} : vector<4x32xf32> to vector<2x32xf32>
    %303 = vector.extract_strided_slice %300 {offsets = [2, 0], sizes = [2, 32], strides = [1, 1]} : vector<4x32xf32> to vector<2x32xf32>
    %304 = tpu.concatenate %301, %302, %303 in 1 : vector<2x32xf32>, vector<2x32xf32>, vector<2x32xf32> -> vector<2x96xf32>
    %305 = tpu.concatenate %297, %304 in 0 : vector<2x96xf32>, vector<2x96xf32> -> vector<4x96xf32>
    %cst_118 = arith.constant dense<0.000000e+00> : vector<4x32xf32>
    %306 = tpu.matmul %305, %289, %cst_118 {dimension_numbers = #tpu.dot_dimension_numbers<[1], [0], [0], [1], [0, 0, 1, 1], [], []>} : vector<4x96xf32>, vector<96x32xf32>, vector<4x32xf32> -> vector<4x32xf32>
    %307 = vector.broadcast %290 : vector<1x32xf32> to vector<4x32xf32>
    %308 = arith.addf %306, %307 : vector<4x32xf32>
    %cst_119 = arith.constant 0.000000e+00 : f32
    %309 = vector.broadcast %cst_119 : f32 to vector<4x32xf32>
    %310 = arith.maximumf %308, %309 : vector<4x32xf32>
    %c0_120 = arith.constant 0 : index
    %c5_121 = arith.constant 5 : index
    %c0_122 = arith.constant 0 : index
    %c0_123 = arith.constant 0 : index
    %311 = vector.load %arg4[%c0_120, %c5_121, %c0_122, %c0_123] : memref<1x12x32x32xf32, #tpu.memory_space<vmem>>, vector<1x1x32x32xf32>
    %312 = vector.shape_cast %311 : vector<1x1x32x32xf32> to vector<32x32xf32>
    %313 = vector.extract_strided_slice %3 {offsets = [15, 0], sizes = [1, 32], strides = [1, 1]} : vector<34x32xf32> to vector<1x32xf32>
    %cst_124 = arith.constant dense<0.000000e+00> : vector<4x32xf32>
    %314 = tpu.matmul %310, %312, %cst_124 {dimension_numbers = #tpu.dot_dimension_numbers<[1], [0], [0], [1], [0, 0, 1, 1], [], []>} : vector<4x32xf32>, vector<32x32xf32>, vector<4x32xf32> -> vector<4x32xf32>
    %315 = vector.broadcast %313 : vector<1x32xf32> to vector<4x32xf32>
    %316 = arith.addf %314, %315 : vector<4x32xf32>
    %317 = arith.addf %285, %316 : vector<4x32xf32>
    %c0_125 = arith.constant 0 : index
    %c6 = arith.constant 6 : index
    %c0_126 = arith.constant 0 : index
    %c0_127 = arith.constant 0 : index
    %318 = vector.load %arg3[%c0_125, %c6, %c0_126, %c0_127] : memref<1x18x96x32xf32, #tpu.memory_space<vmem>>, vector<1x1x96x32xf32>
    %319 = vector.shape_cast %318 : vector<1x1x96x32xf32> to vector<96x32xf32>
    %320 = vector.extract_strided_slice %3 {offsets = [16, 0], sizes = [1, 32], strides = [1, 1]} : vector<34x32xf32> to vector<1x32xf32>
    %321 = vector.extract_strided_slice %317 {offsets = [0, 0], sizes = [2, 32], strides = [1, 1]} : vector<4x32xf32> to vector<2x32xf32>
    %cst_128 = arith.constant 0.000000e+00 : f32
    %322 = vector.broadcast %cst_128 : f32 to vector<1x32xf32>
    %323 = tpu.concatenate %322, %321, %322 in 0 : vector<1x32xf32>, vector<2x32xf32>, vector<1x32xf32> -> vector<4x32xf32>
    %324 = vector.extract_strided_slice %323 {offsets = [0, 0], sizes = [2, 32], strides = [1, 1]} : vector<4x32xf32> to vector<2x32xf32>
    %325 = vector.extract_strided_slice %323 {offsets = [1, 0], sizes = [2, 32], strides = [1, 1]} : vector<4x32xf32> to vector<2x32xf32>
    %326 = vector.extract_strided_slice %323 {offsets = [2, 0], sizes = [2, 32], strides = [1, 1]} : vector<4x32xf32> to vector<2x32xf32>
    %327 = tpu.concatenate %324, %325, %326 in 1 : vector<2x32xf32>, vector<2x32xf32>, vector<2x32xf32> -> vector<2x96xf32>
    %328 = vector.extract_strided_slice %317 {offsets = [2, 0], sizes = [2, 32], strides = [1, 1]} : vector<4x32xf32> to vector<2x32xf32>
    %cst_129 = arith.constant 0.000000e+00 : f32
    %329 = vector.broadcast %cst_129 : f32 to vector<1x32xf32>
    %330 = tpu.concatenate %329, %328, %329 in 0 : vector<1x32xf32>, vector<2x32xf32>, vector<1x32xf32> -> vector<4x32xf32>
    %331 = vector.extract_strided_slice %330 {offsets = [0, 0], sizes = [2, 32], strides = [1, 1]} : vector<4x32xf32> to vector<2x32xf32>
    %332 = vector.extract_strided_slice %330 {offsets = [1, 0], sizes = [2, 32], strides = [1, 1]} : vector<4x32xf32> to vector<2x32xf32>
    %333 = vector.extract_strided_slice %330 {offsets = [2, 0], sizes = [2, 32], strides = [1, 1]} : vector<4x32xf32> to vector<2x32xf32>
    %334 = tpu.concatenate %331, %332, %333 in 1 : vector<2x32xf32>, vector<2x32xf32>, vector<2x32xf32> -> vector<2x96xf32>
    %335 = tpu.concatenate %327, %334 in 0 : vector<2x96xf32>, vector<2x96xf32> -> vector<4x96xf32>
    %cst_130 = arith.constant dense<0.000000e+00> : vector<4x32xf32>
    %336 = tpu.matmul %335, %319, %cst_130 {dimension_numbers = #tpu.dot_dimension_numbers<[1], [0], [0], [1], [0, 0, 1, 1], [], []>} : vector<4x96xf32>, vector<96x32xf32>, vector<4x32xf32> -> vector<4x32xf32>
    %337 = vector.broadcast %320 : vector<1x32xf32> to vector<4x32xf32>
    %338 = arith.addf %336, %337 : vector<4x32xf32>
    %c0_131 = arith.constant 0 : index
    %c0_132 = arith.constant 0 : index
    %c0_133 = arith.constant 0 : index
    %339 = vector.load %arg9[%c0_131, %c0_132, %c0_133] : memref<1x64x32xf32, #tpu.memory_space<vmem>>, vector<1x64x32xf32>
    %340 = vector.shape_cast %339 : vector<1x64x32xf32> to vector<64x32xf32>
    %341 = arith.mulf %340, %340 : vector<64x32xf32>
    %cst_134 = arith.constant dense<0.000000e+00> : vector<64xf32>
    %342 = vector.multi_reduction <add>, %341, %cst_134 [1] : vector<64x32xf32> to vector<64xf32>
    %343 = vector.shape_cast %342 : vector<64xf32> to vector<64x1xf32>
    %cst_135 = arith.constant -2.000000e+00 : f32
    %344 = vector.broadcast %cst_135 : f32 to vector<4x32xf32>
    %345 = arith.mulf %338, %344 : vector<4x32xf32>
    %cst_136 = arith.constant 1.000000e+00 : f32
    %346 = vector.broadcast %cst_136 : f32 to vector<4x1xf32>
    %347 = tpu.concatenate %345, %346 in 1 : vector<4x32xf32>, vector<4x1xf32> -> vector<4x33xf32>
    %348 = tpu.concatenate %340, %343 in 1 : vector<64x32xf32>, vector<64x1xf32> -> vector<64x33xf32>
    %cst_137 = arith.constant dense<0.000000e+00> : vector<4x64xf32>
    %349 = tpu.matmul %347, %348, %cst_137 {dimension_numbers = #tpu.dot_dimension_numbers<[1], [1], [0], [0], [0, 0, 1, 0], [], []>} : vector<4x33xf32>, vector<64x33xf32>, vector<4x64xf32> -> vector<4x64xf32>
    %350 = tpu.iota {dimensions = array<i32: 1>} : vector<4x64xi32>
    %351 = arith.sitofp %350 : vector<4x64xi32> to vector<4x64xf32>
    %cst_138 = arith.constant dense<0x7F800000> : vector<4xf32>
    %352 = vector.multi_reduction <minimumf>, %349, %cst_138 [1] : vector<4x64xf32> to vector<4xf32>
    %353 = vector.shape_cast %352 : vector<4xf32> to vector<4x1xf32>
    %354 = vector.broadcast %353 : vector<4x1xf32> to vector<4x64xf32>
    %355 = arith.cmpf ole, %349, %354 : vector<4x64xf32>
    %cst_139 = arith.constant 6.400000e+01 : f32
    %356 = vector.broadcast %cst_139 : f32 to vector<4x64xf32>
    %357 = arith.select %355, %351, %356 : vector<4x64xi1>, vector<4x64xf32>
    %cst_140 = arith.constant dense<0x7F800000> : vector<4xf32>
    %358 = vector.multi_reduction <minimumf>, %357, %cst_140 [1] : vector<4x64xf32> to vector<4xf32>
    %359 = vector.shape_cast %358 : vector<4xf32> to vector<4x1xf32>
    %360 = vector.broadcast %359 : vector<4x1xf32> to vector<4x64xf32>
    %361 = arith.cmpf oeq, %351, %360 : vector<4x64xf32>
    %cst_141 = arith.constant 1.000000e+00 : f32
    %cst_142 = arith.constant 0.000000e+00 : f32
    %362 = vector.broadcast %cst_141 : f32 to vector<4x64xf32>
    %363 = vector.broadcast %cst_142 : f32 to vector<4x64xf32>
    %364 = arith.select %361, %362, %363 : vector<4x64xi1>, vector<4x64xf32>
    %cst_143 = arith.constant dense<0.000000e+00> : vector<4x32xf32>
    %365 = tpu.matmul %364, %340, %cst_143 {dimension_numbers = #tpu.dot_dimension_numbers<[1], [0], [0], [1], [0, 0, 1, 1], [], []>} : vector<4x64xf32>, vector<64x32xf32>, vector<4x32xf32> -> vector<4x32xf32>
    %366 = arith.subf %338, %365 : vector<4x32xf32>
    %367 = arith.mulf %366, %366 : vector<4x32xf32>
    %cst_144 = arith.constant dense<0.000000e+00> : vector<4xf32>
    %368 = vector.multi_reduction <add>, %367, %cst_144 [1] : vector<4x32xf32> to vector<4xf32>
    %369 = vector.shape_cast %368 : vector<4xf32> to vector<4x1xf32>
    %cst_145 = arith.constant dense<0.000000e+00> : vector<1xf32>
    %370 = vector.multi_reduction <add>, %369, %cst_145 [0] : vector<4x1xf32> to vector<1xf32>
    %371 = vector.shape_cast %370 : vector<1xf32> to vector<1x1xf32>
    %cst_146 = arith.constant 1.280000e+02 : f32
    %372 = vector.broadcast %cst_146 : f32 to vector<1x1xf32>
    %373 = arith.divf %371, %372 : vector<1x1xf32>
    %cst_147 = arith.constant dense<0.000000e+00> : vector<64xf32>
    %374 = vector.multi_reduction <add>, %364, %cst_147 [0] : vector<4x64xf32> to vector<64xf32>
    %375 = vector.shape_cast %374 : vector<64xf32> to vector<1x64xf32>
    %cst_148 = arith.constant 4.000000e+00 : f32
    %376 = vector.broadcast %cst_148 : f32 to vector<1x64xf32>
    %377 = arith.divf %375, %376 : vector<1x64xf32>
    %cst_149 = arith.constant 1.000000e-07 : f32
    %378 = vector.broadcast %cst_149 : f32 to vector<1x64xf32>
    %379 = arith.addf %377, %378 : vector<1x64xf32>
    %380 = math.log %379 : vector<1x64xf32>
    %381 = arith.mulf %377, %380 : vector<1x64xf32>
    %cst_150 = arith.constant dense<0.000000e+00> : vector<1xf32>
    %382 = vector.multi_reduction <add>, %381, %cst_150 [1] : vector<1x64xf32> to vector<1xf32>
    %383 = vector.shape_cast %382 : vector<1xf32> to vector<1x1xf32>
    %cst_151 = arith.constant 0.000000e+00 : f32
    %384 = vector.broadcast %cst_151 : f32 to vector<1x1xf32>
    %385 = arith.subf %384, %383 : vector<1x1xf32>
    %386 = math.exp %385 : vector<1x1xf32>
    %c0_152 = arith.constant 0 : index
    %c7 = arith.constant 7 : index
    %c0_153 = arith.constant 0 : index
    %c0_154 = arith.constant 0 : index
    %387 = vector.load %arg3[%c0_152, %c7, %c0_153, %c0_154] : memref<1x18x96x32xf32, #tpu.memory_space<vmem>>, vector<1x1x96x32xf32>
    %388 = vector.shape_cast %387 : vector<1x1x96x32xf32> to vector<96x32xf32>
    %389 = vector.extract_strided_slice %3 {offsets = [17, 0], sizes = [1, 32], strides = [1, 1]} : vector<34x32xf32> to vector<1x32xf32>
    %390 = vector.extract_strided_slice %365 {offsets = [0, 0], sizes = [2, 32], strides = [1, 1]} : vector<4x32xf32> to vector<2x32xf32>
    %cst_155 = arith.constant 0.000000e+00 : f32
    %391 = vector.broadcast %cst_155 : f32 to vector<1x32xf32>
    %392 = tpu.concatenate %391, %390, %391 in 0 : vector<1x32xf32>, vector<2x32xf32>, vector<1x32xf32> -> vector<4x32xf32>
    %393 = vector.extract_strided_slice %392 {offsets = [0, 0], sizes = [2, 32], strides = [1, 1]} : vector<4x32xf32> to vector<2x32xf32>
    %394 = vector.extract_strided_slice %392 {offsets = [1, 0], sizes = [2, 32], strides = [1, 1]} : vector<4x32xf32> to vector<2x32xf32>
    %395 = vector.extract_strided_slice %392 {offsets = [2, 0], sizes = [2, 32], strides = [1, 1]} : vector<4x32xf32> to vector<2x32xf32>
    %396 = tpu.concatenate %393, %394, %395 in 1 : vector<2x32xf32>, vector<2x32xf32>, vector<2x32xf32> -> vector<2x96xf32>
    %397 = vector.extract_strided_slice %365 {offsets = [2, 0], sizes = [2, 32], strides = [1, 1]} : vector<4x32xf32> to vector<2x32xf32>
    %cst_156 = arith.constant 0.000000e+00 : f32
    %398 = vector.broadcast %cst_156 : f32 to vector<1x32xf32>
    %399 = tpu.concatenate %398, %397, %398 in 0 : vector<1x32xf32>, vector<2x32xf32>, vector<1x32xf32> -> vector<4x32xf32>
    %400 = vector.extract_strided_slice %399 {offsets = [0, 0], sizes = [2, 32], strides = [1, 1]} : vector<4x32xf32> to vector<2x32xf32>
    %401 = vector.extract_strided_slice %399 {offsets = [1, 0], sizes = [2, 32], strides = [1, 1]} : vector<4x32xf32> to vector<2x32xf32>
    %402 = vector.extract_strided_slice %399 {offsets = [2, 0], sizes = [2, 32], strides = [1, 1]} : vector<4x32xf32> to vector<2x32xf32>
    %403 = tpu.concatenate %400, %401, %402 in 1 : vector<2x32xf32>, vector<2x32xf32>, vector<2x32xf32> -> vector<2x96xf32>
    %404 = tpu.concatenate %396, %403 in 0 : vector<2x96xf32>, vector<2x96xf32> -> vector<4x96xf32>
    %cst_157 = arith.constant dense<0.000000e+00> : vector<4x32xf32>
    %405 = tpu.matmul %404, %388, %cst_157 {dimension_numbers = #tpu.dot_dimension_numbers<[1], [0], [0], [1], [0, 0, 1, 1], [], []>} : vector<4x96xf32>, vector<96x32xf32>, vector<4x32xf32> -> vector<4x32xf32>
    %406 = vector.broadcast %389 : vector<1x32xf32> to vector<4x32xf32>
    %407 = arith.addf %405, %406 : vector<4x32xf32>
    %cst_158 = arith.constant 0.000000e+00 : f32
    %408 = vector.broadcast %cst_158 : f32 to vector<4x32xf32>
    %409 = arith.maximumf %407, %408 : vector<4x32xf32>
    %cst_159 = arith.constant 0.000000e+00 : f32
    %410 = vector.broadcast %cst_159 : f32 to vector<4x32xf32>
    %411 = arith.maximumf %409, %410 : vector<4x32xf32>
    %c0_160 = arith.constant 0 : index
    %c8 = arith.constant 8 : index
    %c0_161 = arith.constant 0 : index
    %c0_162 = arith.constant 0 : index
    %412 = vector.load %arg3[%c0_160, %c8, %c0_161, %c0_162] : memref<1x18x96x32xf32, #tpu.memory_space<vmem>>, vector<1x1x96x32xf32>
    %413 = vector.shape_cast %412 : vector<1x1x96x32xf32> to vector<96x32xf32>
    %414 = vector.extract_strided_slice %3 {offsets = [18, 0], sizes = [1, 32], strides = [1, 1]} : vector<34x32xf32> to vector<1x32xf32>
    %415 = vector.extract_strided_slice %411 {offsets = [0, 0], sizes = [2, 32], strides = [1, 1]} : vector<4x32xf32> to vector<2x32xf32>
    %cst_163 = arith.constant 0.000000e+00 : f32
    %416 = vector.broadcast %cst_163 : f32 to vector<3x32xf32>
    %417 = tpu.concatenate %416, %415, %416 in 0 : vector<3x32xf32>, vector<2x32xf32>, vector<3x32xf32> -> vector<8x32xf32>
    %418 = vector.extract_strided_slice %417 {offsets = [0, 0], sizes = [2, 32], strides = [1, 1]} : vector<8x32xf32> to vector<2x32xf32>
    %419 = vector.extract_strided_slice %417 {offsets = [3, 0], sizes = [2, 32], strides = [1, 1]} : vector<8x32xf32> to vector<2x32xf32>
    %420 = vector.extract_strided_slice %417 {offsets = [6, 0], sizes = [2, 32], strides = [1, 1]} : vector<8x32xf32> to vector<2x32xf32>
    %421 = tpu.concatenate %418, %419, %420 in 1 : vector<2x32xf32>, vector<2x32xf32>, vector<2x32xf32> -> vector<2x96xf32>
    %422 = vector.extract_strided_slice %411 {offsets = [2, 0], sizes = [2, 32], strides = [1, 1]} : vector<4x32xf32> to vector<2x32xf32>
    %cst_164 = arith.constant 0.000000e+00 : f32
    %423 = vector.broadcast %cst_164 : f32 to vector<3x32xf32>
    %424 = tpu.concatenate %423, %422, %423 in 0 : vector<3x32xf32>, vector<2x32xf32>, vector<3x32xf32> -> vector<8x32xf32>
    %425 = vector.extract_strided_slice %424 {offsets = [0, 0], sizes = [2, 32], strides = [1, 1]} : vector<8x32xf32> to vector<2x32xf32>
    %426 = vector.extract_strided_slice %424 {offsets = [3, 0], sizes = [2, 32], strides = [1, 1]} : vector<8x32xf32> to vector<2x32xf32>
    %427 = vector.extract_strided_slice %424 {offsets = [6, 0], sizes = [2, 32], strides = [1, 1]} : vector<8x32xf32> to vector<2x32xf32>
    %428 = tpu.concatenate %425, %426, %427 in 1 : vector<2x32xf32>, vector<2x32xf32>, vector<2x32xf32> -> vector<2x96xf32>
    %429 = tpu.concatenate %421, %428 in 0 : vector<2x96xf32>, vector<2x96xf32> -> vector<4x96xf32>
    %cst_165 = arith.constant dense<0.000000e+00> : vector<4x32xf32>
    %430 = tpu.matmul %429, %413, %cst_165 {dimension_numbers = #tpu.dot_dimension_numbers<[1], [0], [0], [1], [0, 0, 1, 1], [], []>} : vector<4x96xf32>, vector<96x32xf32>, vector<4x32xf32> -> vector<4x32xf32>
    %431 = vector.broadcast %414 : vector<1x32xf32> to vector<4x32xf32>
    %432 = arith.addf %430, %431 : vector<4x32xf32>
    %cst_166 = arith.constant 0.000000e+00 : f32
    %433 = vector.broadcast %cst_166 : f32 to vector<4x32xf32>
    %434 = arith.maximumf %432, %433 : vector<4x32xf32>
    %c0_167 = arith.constant 0 : index
    %c6_168 = arith.constant 6 : index
    %c0_169 = arith.constant 0 : index
    %c0_170 = arith.constant 0 : index
    %435 = vector.load %arg4[%c0_167, %c6_168, %c0_169, %c0_170] : memref<1x12x32x32xf32, #tpu.memory_space<vmem>>, vector<1x1x32x32xf32>
    %436 = vector.shape_cast %435 : vector<1x1x32x32xf32> to vector<32x32xf32>
    %437 = vector.extract_strided_slice %3 {offsets = [19, 0], sizes = [1, 32], strides = [1, 1]} : vector<34x32xf32> to vector<1x32xf32>
    %cst_171 = arith.constant dense<0.000000e+00> : vector<4x32xf32>
    %438 = tpu.matmul %434, %436, %cst_171 {dimension_numbers = #tpu.dot_dimension_numbers<[1], [0], [0], [1], [0, 0, 1, 1], [], []>} : vector<4x32xf32>, vector<32x32xf32>, vector<4x32xf32> -> vector<4x32xf32>
    %439 = vector.broadcast %437 : vector<1x32xf32> to vector<4x32xf32>
    %440 = arith.addf %438, %439 : vector<4x32xf32>
    %441 = arith.addf %409, %440 : vector<4x32xf32>
    %cst_172 = arith.constant 0.000000e+00 : f32
    %442 = vector.broadcast %cst_172 : f32 to vector<4x32xf32>
    %443 = arith.maximumf %441, %442 : vector<4x32xf32>
    %c0_173 = arith.constant 0 : index
    %c9 = arith.constant 9 : index
    %c0_174 = arith.constant 0 : index
    %c0_175 = arith.constant 0 : index
    %444 = vector.load %arg3[%c0_173, %c9, %c0_174, %c0_175] : memref<1x18x96x32xf32, #tpu.memory_space<vmem>>, vector<1x1x96x32xf32>
    %445 = vector.shape_cast %444 : vector<1x1x96x32xf32> to vector<96x32xf32>
    %446 = vector.extract_strided_slice %3 {offsets = [20, 0], sizes = [1, 32], strides = [1, 1]} : vector<34x32xf32> to vector<1x32xf32>
    %447 = vector.extract_strided_slice %443 {offsets = [0, 0], sizes = [2, 32], strides = [1, 1]} : vector<4x32xf32> to vector<2x32xf32>
    %cst_176 = arith.constant 0.000000e+00 : f32
    %448 = vector.broadcast %cst_176 : f32 to vector<1x32xf32>
    %449 = tpu.concatenate %448, %447, %448 in 0 : vector<1x32xf32>, vector<2x32xf32>, vector<1x32xf32> -> vector<4x32xf32>
    %450 = vector.extract_strided_slice %449 {offsets = [0, 0], sizes = [2, 32], strides = [1, 1]} : vector<4x32xf32> to vector<2x32xf32>
    %451 = vector.extract_strided_slice %449 {offsets = [1, 0], sizes = [2, 32], strides = [1, 1]} : vector<4x32xf32> to vector<2x32xf32>
    %452 = vector.extract_strided_slice %449 {offsets = [2, 0], sizes = [2, 32], strides = [1, 1]} : vector<4x32xf32> to vector<2x32xf32>
    %453 = tpu.concatenate %450, %451, %452 in 1 : vector<2x32xf32>, vector<2x32xf32>, vector<2x32xf32> -> vector<2x96xf32>
    %454 = vector.extract_strided_slice %443 {offsets = [2, 0], sizes = [2, 32], strides = [1, 1]} : vector<4x32xf32> to vector<2x32xf32>
    %cst_177 = arith.constant 0.000000e+00 : f32
    %455 = vector.broadcast %cst_177 : f32 to vector<1x32xf32>
    %456 = tpu.concatenate %455, %454, %455 in 0 : vector<1x32xf32>, vector<2x32xf32>, vector<1x32xf32> -> vector<4x32xf32>
    %457 = vector.extract_strided_slice %456 {offsets = [0, 0], sizes = [2, 32], strides = [1, 1]} : vector<4x32xf32> to vector<2x32xf32>
    %458 = vector.extract_strided_slice %456 {offsets = [1, 0], sizes = [2, 32], strides = [1, 1]} : vector<4x32xf32> to vector<2x32xf32>
    %459 = vector.extract_strided_slice %456 {offsets = [2, 0], sizes = [2, 32], strides = [1, 1]} : vector<4x32xf32> to vector<2x32xf32>
    %460 = tpu.concatenate %457, %458, %459 in 1 : vector<2x32xf32>, vector<2x32xf32>, vector<2x32xf32> -> vector<2x96xf32>
    %461 = tpu.concatenate %453, %460 in 0 : vector<2x96xf32>, vector<2x96xf32> -> vector<4x96xf32>
    %cst_178 = arith.constant dense<0.000000e+00> : vector<4x32xf32>
    %462 = tpu.matmul %461, %445, %cst_178 {dimension_numbers = #tpu.dot_dimension_numbers<[1], [0], [0], [1], [0, 0, 1, 1], [], []>} : vector<4x96xf32>, vector<96x32xf32>, vector<4x32xf32> -> vector<4x32xf32>
    %463 = vector.broadcast %446 : vector<1x32xf32> to vector<4x32xf32>
    %464 = arith.addf %462, %463 : vector<4x32xf32>
    %cst_179 = arith.constant 0.000000e+00 : f32
    %465 = vector.broadcast %cst_179 : f32 to vector<4x32xf32>
    %466 = arith.maximumf %464, %465 : vector<4x32xf32>
    %c0_180 = arith.constant 0 : index
    %c7_181 = arith.constant 7 : index
    %c0_182 = arith.constant 0 : index
    %c0_183 = arith.constant 0 : index
    %467 = vector.load %arg4[%c0_180, %c7_181, %c0_182, %c0_183] : memref<1x12x32x32xf32, #tpu.memory_space<vmem>>, vector<1x1x32x32xf32>
    %468 = vector.shape_cast %467 : vector<1x1x32x32xf32> to vector<32x32xf32>
    %469 = vector.extract_strided_slice %3 {offsets = [21, 0], sizes = [1, 32], strides = [1, 1]} : vector<34x32xf32> to vector<1x32xf32>
    %cst_184 = arith.constant dense<0.000000e+00> : vector<4x32xf32>
    %470 = tpu.matmul %466, %468, %cst_184 {dimension_numbers = #tpu.dot_dimension_numbers<[1], [0], [0], [1], [0, 0, 1, 1], [], []>} : vector<4x32xf32>, vector<32x32xf32>, vector<4x32xf32> -> vector<4x32xf32>
    %471 = vector.broadcast %469 : vector<1x32xf32> to vector<4x32xf32>
    %472 = arith.addf %470, %471 : vector<4x32xf32>
    %473 = arith.addf %441, %472 : vector<4x32xf32>
    %474 = tpu.iota {dimensions = array<i32: 0>} : vector<8x4xi32>
    %475 = tpu.iota {dimensions = array<i32: 1>} : vector<8x4xi32>
    %c2_i32_185 = arith.constant 2 : i32
    %476 = vector.broadcast %c2_i32_185 : i32 to vector<8x4xi32>
    %477 = arith.muli %476, %475 : vector<8x4xi32>
    %478 = arith.cmpi eq, %474, %477 : vector<8x4xi32>
    %c2_i32_186 = arith.constant 2 : i32
    %479 = vector.broadcast %c2_i32_186 : i32 to vector<8x4xi32>
    %480 = arith.muli %479, %475 : vector<8x4xi32>
    %c1_i32 = arith.constant 1 : i32
    %481 = vector.broadcast %c1_i32 : i32 to vector<8x4xi32>
    %482 = arith.addi %480, %481 : vector<8x4xi32>
    %483 = arith.cmpi eq, %474, %482 : vector<8x4xi32>
    %484 = arith.ori %478, %483 : vector<8x4xi1>
    %cst_187 = arith.constant 1.000000e+00 : f32
    %cst_188 = arith.constant 0.000000e+00 : f32
    %485 = vector.broadcast %cst_187 : f32 to vector<8x4xf32>
    %486 = vector.broadcast %cst_188 : f32 to vector<8x4xf32>
    %487 = arith.select %484, %485, %486 : vector<8x4xi1>, vector<8x4xf32>
    %cst_189 = arith.constant dense<0.000000e+00> : vector<8x32xf32>
    %488 = tpu.matmul %487, %473, %cst_189 {dimension_numbers = #tpu.dot_dimension_numbers<[1], [0], [0], [1], [0, 0, 1, 1], [], []>} : vector<8x4xf32>, vector<4x32xf32>, vector<8x32xf32> -> vector<8x32xf32>
    %c0_190 = arith.constant 0 : index
    %c10 = arith.constant 10 : index
    %c0_191 = arith.constant 0 : index
    %c0_192 = arith.constant 0 : index
    %489 = vector.load %arg3[%c0_190, %c10, %c0_191, %c0_192] : memref<1x18x96x32xf32, #tpu.memory_space<vmem>>, vector<1x1x96x32xf32>
    %490 = vector.shape_cast %489 : vector<1x1x96x32xf32> to vector<96x32xf32>
    %491 = vector.extract_strided_slice %3 {offsets = [22, 0], sizes = [1, 32], strides = [1, 1]} : vector<34x32xf32> to vector<1x32xf32>
    %492 = vector.extract_strided_slice %488 {offsets = [0, 0], sizes = [4, 32], strides = [1, 1]} : vector<8x32xf32> to vector<4x32xf32>
    %cst_193 = arith.constant 0.000000e+00 : f32
    %493 = vector.broadcast %cst_193 : f32 to vector<1x32xf32>
    %494 = tpu.concatenate %493, %492, %493 in 0 : vector<1x32xf32>, vector<4x32xf32>, vector<1x32xf32> -> vector<6x32xf32>
    %495 = vector.extract_strided_slice %494 {offsets = [0, 0], sizes = [4, 32], strides = [1, 1]} : vector<6x32xf32> to vector<4x32xf32>
    %496 = vector.extract_strided_slice %494 {offsets = [1, 0], sizes = [4, 32], strides = [1, 1]} : vector<6x32xf32> to vector<4x32xf32>
    %497 = vector.extract_strided_slice %494 {offsets = [2, 0], sizes = [4, 32], strides = [1, 1]} : vector<6x32xf32> to vector<4x32xf32>
    %498 = tpu.concatenate %495, %496, %497 in 1 : vector<4x32xf32>, vector<4x32xf32>, vector<4x32xf32> -> vector<4x96xf32>
    %499 = vector.extract_strided_slice %488 {offsets = [4, 0], sizes = [4, 32], strides = [1, 1]} : vector<8x32xf32> to vector<4x32xf32>
    %cst_194 = arith.constant 0.000000e+00 : f32
    %500 = vector.broadcast %cst_194 : f32 to vector<1x32xf32>
    %501 = tpu.concatenate %500, %499, %500 in 0 : vector<1x32xf32>, vector<4x32xf32>, vector<1x32xf32> -> vector<6x32xf32>
    %502 = vector.extract_strided_slice %501 {offsets = [0, 0], sizes = [4, 32], strides = [1, 1]} : vector<6x32xf32> to vector<4x32xf32>
    %503 = vector.extract_strided_slice %501 {offsets = [1, 0], sizes = [4, 32], strides = [1, 1]} : vector<6x32xf32> to vector<4x32xf32>
    %504 = vector.extract_strided_slice %501 {offsets = [2, 0], sizes = [4, 32], strides = [1, 1]} : vector<6x32xf32> to vector<4x32xf32>
    %505 = tpu.concatenate %502, %503, %504 in 1 : vector<4x32xf32>, vector<4x32xf32>, vector<4x32xf32> -> vector<4x96xf32>
    %506 = tpu.concatenate %498, %505 in 0 : vector<4x96xf32>, vector<4x96xf32> -> vector<8x96xf32>
    %cst_195 = arith.constant dense<0.000000e+00> : vector<8x32xf32>
    %507 = tpu.matmul %506, %490, %cst_195 {dimension_numbers = #tpu.dot_dimension_numbers<[1], [0], [0], [1], [0, 0, 1, 1], [], []>} : vector<8x96xf32>, vector<96x32xf32>, vector<8x32xf32> -> vector<8x32xf32>
    %508 = vector.broadcast %491 : vector<1x32xf32> to vector<8x32xf32>
    %509 = arith.addf %507, %508 : vector<8x32xf32>
    %cst_196 = arith.constant 0.000000e+00 : f32
    %510 = vector.broadcast %cst_196 : f32 to vector<8x32xf32>
    %511 = arith.maximumf %509, %510 : vector<8x32xf32>
    %c0_197 = arith.constant 0 : index
    %c11 = arith.constant 11 : index
    %c0_198 = arith.constant 0 : index
    %c0_199 = arith.constant 0 : index
    %512 = vector.load %arg3[%c0_197, %c11, %c0_198, %c0_199] : memref<1x18x96x32xf32, #tpu.memory_space<vmem>>, vector<1x1x96x32xf32>
    %513 = vector.shape_cast %512 : vector<1x1x96x32xf32> to vector<96x32xf32>
    %514 = vector.extract_strided_slice %3 {offsets = [23, 0], sizes = [1, 32], strides = [1, 1]} : vector<34x32xf32> to vector<1x32xf32>
    %515 = vector.extract_strided_slice %511 {offsets = [0, 0], sizes = [4, 32], strides = [1, 1]} : vector<8x32xf32> to vector<4x32xf32>
    %cst_200 = arith.constant 0.000000e+00 : f32
    %516 = vector.broadcast %cst_200 : f32 to vector<3x32xf32>
    %517 = tpu.concatenate %516, %515, %516 in 0 : vector<3x32xf32>, vector<4x32xf32>, vector<3x32xf32> -> vector<10x32xf32>
    %518 = vector.extract_strided_slice %517 {offsets = [0, 0], sizes = [4, 32], strides = [1, 1]} : vector<10x32xf32> to vector<4x32xf32>
    %519 = vector.extract_strided_slice %517 {offsets = [3, 0], sizes = [4, 32], strides = [1, 1]} : vector<10x32xf32> to vector<4x32xf32>
    %520 = vector.extract_strided_slice %517 {offsets = [6, 0], sizes = [4, 32], strides = [1, 1]} : vector<10x32xf32> to vector<4x32xf32>
    %521 = tpu.concatenate %518, %519, %520 in 1 : vector<4x32xf32>, vector<4x32xf32>, vector<4x32xf32> -> vector<4x96xf32>
    %522 = vector.extract_strided_slice %511 {offsets = [4, 0], sizes = [4, 32], strides = [1, 1]} : vector<8x32xf32> to vector<4x32xf32>
    %cst_201 = arith.constant 0.000000e+00 : f32
    %523 = vector.broadcast %cst_201 : f32 to vector<3x32xf32>
    %524 = tpu.concatenate %523, %522, %523 in 0 : vector<3x32xf32>, vector<4x32xf32>, vector<3x32xf32> -> vector<10x32xf32>
    %525 = vector.extract_strided_slice %524 {offsets = [0, 0], sizes = [4, 32], strides = [1, 1]} : vector<10x32xf32> to vector<4x32xf32>
    %526 = vector.extract_strided_slice %524 {offsets = [3, 0], sizes = [4, 32], strides = [1, 1]} : vector<10x32xf32> to vector<4x32xf32>
    %527 = vector.extract_strided_slice %524 {offsets = [6, 0], sizes = [4, 32], strides = [1, 1]} : vector<10x32xf32> to vector<4x32xf32>
    %528 = tpu.concatenate %525, %526, %527 in 1 : vector<4x32xf32>, vector<4x32xf32>, vector<4x32xf32> -> vector<4x96xf32>
    %529 = tpu.concatenate %521, %528 in 0 : vector<4x96xf32>, vector<4x96xf32> -> vector<8x96xf32>
    %cst_202 = arith.constant dense<0.000000e+00> : vector<8x32xf32>
    %530 = tpu.matmul %529, %513, %cst_202 {dimension_numbers = #tpu.dot_dimension_numbers<[1], [0], [0], [1], [0, 0, 1, 1], [], []>} : vector<8x96xf32>, vector<96x32xf32>, vector<8x32xf32> -> vector<8x32xf32>
    %531 = vector.broadcast %514 : vector<1x32xf32> to vector<8x32xf32>
    %532 = arith.addf %530, %531 : vector<8x32xf32>
    %cst_203 = arith.constant 0.000000e+00 : f32
    %533 = vector.broadcast %cst_203 : f32 to vector<8x32xf32>
    %534 = arith.maximumf %532, %533 : vector<8x32xf32>
    %c0_204 = arith.constant 0 : index
    %c8_205 = arith.constant 8 : index
    %c0_206 = arith.constant 0 : index
    %c0_207 = arith.constant 0 : index
    %535 = vector.load %arg4[%c0_204, %c8_205, %c0_206, %c0_207] : memref<1x12x32x32xf32, #tpu.memory_space<vmem>>, vector<1x1x32x32xf32>
    %536 = vector.shape_cast %535 : vector<1x1x32x32xf32> to vector<32x32xf32>
    %537 = vector.extract_strided_slice %3 {offsets = [24, 0], sizes = [1, 32], strides = [1, 1]} : vector<34x32xf32> to vector<1x32xf32>
    %cst_208 = arith.constant dense<0.000000e+00> : vector<8x32xf32>
    %538 = tpu.matmul %534, %536, %cst_208 {dimension_numbers = #tpu.dot_dimension_numbers<[1], [0], [0], [1], [0, 0, 1, 1], [], []>} : vector<8x32xf32>, vector<32x32xf32>, vector<8x32xf32> -> vector<8x32xf32>
    %539 = vector.broadcast %537 : vector<1x32xf32> to vector<8x32xf32>
    %540 = arith.addf %538, %539 : vector<8x32xf32>
    %541 = arith.addf %509, %540 : vector<8x32xf32>
    %cst_209 = arith.constant 0.000000e+00 : f32
    %542 = vector.broadcast %cst_209 : f32 to vector<8x32xf32>
    %543 = arith.maximumf %541, %542 : vector<8x32xf32>
    %c0_210 = arith.constant 0 : index
    %c12 = arith.constant 12 : index
    %c0_211 = arith.constant 0 : index
    %c0_212 = arith.constant 0 : index
    %544 = vector.load %arg3[%c0_210, %c12, %c0_211, %c0_212] : memref<1x18x96x32xf32, #tpu.memory_space<vmem>>, vector<1x1x96x32xf32>
    %545 = vector.shape_cast %544 : vector<1x1x96x32xf32> to vector<96x32xf32>
    %546 = vector.extract_strided_slice %3 {offsets = [25, 0], sizes = [1, 32], strides = [1, 1]} : vector<34x32xf32> to vector<1x32xf32>
    %547 = vector.extract_strided_slice %543 {offsets = [0, 0], sizes = [4, 32], strides = [1, 1]} : vector<8x32xf32> to vector<4x32xf32>
    %cst_213 = arith.constant 0.000000e+00 : f32
    %548 = vector.broadcast %cst_213 : f32 to vector<1x32xf32>
    %549 = tpu.concatenate %548, %547, %548 in 0 : vector<1x32xf32>, vector<4x32xf32>, vector<1x32xf32> -> vector<6x32xf32>
    %550 = vector.extract_strided_slice %549 {offsets = [0, 0], sizes = [4, 32], strides = [1, 1]} : vector<6x32xf32> to vector<4x32xf32>
    %551 = vector.extract_strided_slice %549 {offsets = [1, 0], sizes = [4, 32], strides = [1, 1]} : vector<6x32xf32> to vector<4x32xf32>
    %552 = vector.extract_strided_slice %549 {offsets = [2, 0], sizes = [4, 32], strides = [1, 1]} : vector<6x32xf32> to vector<4x32xf32>
    %553 = tpu.concatenate %550, %551, %552 in 1 : vector<4x32xf32>, vector<4x32xf32>, vector<4x32xf32> -> vector<4x96xf32>
    %554 = vector.extract_strided_slice %543 {offsets = [4, 0], sizes = [4, 32], strides = [1, 1]} : vector<8x32xf32> to vector<4x32xf32>
    %cst_214 = arith.constant 0.000000e+00 : f32
    %555 = vector.broadcast %cst_214 : f32 to vector<1x32xf32>
    %556 = tpu.concatenate %555, %554, %555 in 0 : vector<1x32xf32>, vector<4x32xf32>, vector<1x32xf32> -> vector<6x32xf32>
    %557 = vector.extract_strided_slice %556 {offsets = [0, 0], sizes = [4, 32], strides = [1, 1]} : vector<6x32xf32> to vector<4x32xf32>
    %558 = vector.extract_strided_slice %556 {offsets = [1, 0], sizes = [4, 32], strides = [1, 1]} : vector<6x32xf32> to vector<4x32xf32>
    %559 = vector.extract_strided_slice %556 {offsets = [2, 0], sizes = [4, 32], strides = [1, 1]} : vector<6x32xf32> to vector<4x32xf32>
    %560 = tpu.concatenate %557, %558, %559 in 1 : vector<4x32xf32>, vector<4x32xf32>, vector<4x32xf32> -> vector<4x96xf32>
    %561 = tpu.concatenate %553, %560 in 0 : vector<4x96xf32>, vector<4x96xf32> -> vector<8x96xf32>
    %cst_215 = arith.constant dense<0.000000e+00> : vector<8x32xf32>
    %562 = tpu.matmul %561, %545, %cst_215 {dimension_numbers = #tpu.dot_dimension_numbers<[1], [0], [0], [1], [0, 0, 1, 1], [], []>} : vector<8x96xf32>, vector<96x32xf32>, vector<8x32xf32> -> vector<8x32xf32>
    %563 = vector.broadcast %546 : vector<1x32xf32> to vector<8x32xf32>
    %564 = arith.addf %562, %563 : vector<8x32xf32>
    %cst_216 = arith.constant 0.000000e+00 : f32
    %565 = vector.broadcast %cst_216 : f32 to vector<8x32xf32>
    %566 = arith.maximumf %564, %565 : vector<8x32xf32>
    %c0_217 = arith.constant 0 : index
    %c9_218 = arith.constant 9 : index
    %c0_219 = arith.constant 0 : index
    %c0_220 = arith.constant 0 : index
    %567 = vector.load %arg4[%c0_217, %c9_218, %c0_219, %c0_220] : memref<1x12x32x32xf32, #tpu.memory_space<vmem>>, vector<1x1x32x32xf32>
    %568 = vector.shape_cast %567 : vector<1x1x32x32xf32> to vector<32x32xf32>
    %569 = vector.extract_strided_slice %3 {offsets = [26, 0], sizes = [1, 32], strides = [1, 1]} : vector<34x32xf32> to vector<1x32xf32>
    %cst_221 = arith.constant dense<0.000000e+00> : vector<8x32xf32>
    %570 = tpu.matmul %566, %568, %cst_221 {dimension_numbers = #tpu.dot_dimension_numbers<[1], [0], [0], [1], [0, 0, 1, 1], [], []>} : vector<8x32xf32>, vector<32x32xf32>, vector<8x32xf32> -> vector<8x32xf32>
    %571 = vector.broadcast %569 : vector<1x32xf32> to vector<8x32xf32>
    %572 = arith.addf %570, %571 : vector<8x32xf32>
    %573 = arith.addf %541, %572 : vector<8x32xf32>
    %574 = tpu.iota {dimensions = array<i32: 0>} : vector<16x8xi32>
    %575 = tpu.iota {dimensions = array<i32: 1>} : vector<16x8xi32>
    %c2_i32_222 = arith.constant 2 : i32
    %576 = vector.broadcast %c2_i32_222 : i32 to vector<16x8xi32>
    %577 = arith.muli %576, %575 : vector<16x8xi32>
    %578 = arith.cmpi eq, %574, %577 : vector<16x8xi32>
    %c2_i32_223 = arith.constant 2 : i32
    %579 = vector.broadcast %c2_i32_223 : i32 to vector<16x8xi32>
    %580 = arith.muli %579, %575 : vector<16x8xi32>
    %c1_i32_224 = arith.constant 1 : i32
    %581 = vector.broadcast %c1_i32_224 : i32 to vector<16x8xi32>
    %582 = arith.addi %580, %581 : vector<16x8xi32>
    %583 = arith.cmpi eq, %574, %582 : vector<16x8xi32>
    %584 = arith.ori %578, %583 : vector<16x8xi1>
    %cst_225 = arith.constant 1.000000e+00 : f32
    %cst_226 = arith.constant 0.000000e+00 : f32
    %585 = vector.broadcast %cst_225 : f32 to vector<16x8xf32>
    %586 = vector.broadcast %cst_226 : f32 to vector<16x8xf32>
    %587 = arith.select %584, %585, %586 : vector<16x8xi1>, vector<16x8xf32>
    %cst_227 = arith.constant dense<0.000000e+00> : vector<16x32xf32>
    %588 = tpu.matmul %587, %573, %cst_227 {dimension_numbers = #tpu.dot_dimension_numbers<[1], [0], [0], [1], [0, 0, 1, 1], [], []>} : vector<16x8xf32>, vector<8x32xf32>, vector<16x32xf32> -> vector<16x32xf32>
    %c0_228 = arith.constant 0 : index
    %c13 = arith.constant 13 : index
    %c0_229 = arith.constant 0 : index
    %c0_230 = arith.constant 0 : index
    %589 = vector.load %arg3[%c0_228, %c13, %c0_229, %c0_230] : memref<1x18x96x32xf32, #tpu.memory_space<vmem>>, vector<1x1x96x32xf32>
    %590 = vector.shape_cast %589 : vector<1x1x96x32xf32> to vector<96x32xf32>
    %591 = vector.extract_strided_slice %3 {offsets = [27, 0], sizes = [1, 32], strides = [1, 1]} : vector<34x32xf32> to vector<1x32xf32>
    %592 = vector.extract_strided_slice %588 {offsets = [0, 0], sizes = [8, 32], strides = [1, 1]} : vector<16x32xf32> to vector<8x32xf32>
    %cst_231 = arith.constant 0.000000e+00 : f32
    %593 = vector.broadcast %cst_231 : f32 to vector<1x32xf32>
    %594 = tpu.concatenate %593, %592, %593 in 0 : vector<1x32xf32>, vector<8x32xf32>, vector<1x32xf32> -> vector<10x32xf32>
    %595 = vector.extract_strided_slice %594 {offsets = [0, 0], sizes = [8, 32], strides = [1, 1]} : vector<10x32xf32> to vector<8x32xf32>
    %596 = vector.extract_strided_slice %594 {offsets = [1, 0], sizes = [8, 32], strides = [1, 1]} : vector<10x32xf32> to vector<8x32xf32>
    %597 = vector.extract_strided_slice %594 {offsets = [2, 0], sizes = [8, 32], strides = [1, 1]} : vector<10x32xf32> to vector<8x32xf32>
    %598 = tpu.concatenate %595, %596, %597 in 1 : vector<8x32xf32>, vector<8x32xf32>, vector<8x32xf32> -> vector<8x96xf32>
    %599 = vector.extract_strided_slice %588 {offsets = [8, 0], sizes = [8, 32], strides = [1, 1]} : vector<16x32xf32> to vector<8x32xf32>
    %cst_232 = arith.constant 0.000000e+00 : f32
    %600 = vector.broadcast %cst_232 : f32 to vector<1x32xf32>
    %601 = tpu.concatenate %600, %599, %600 in 0 : vector<1x32xf32>, vector<8x32xf32>, vector<1x32xf32> -> vector<10x32xf32>
    %602 = vector.extract_strided_slice %601 {offsets = [0, 0], sizes = [8, 32], strides = [1, 1]} : vector<10x32xf32> to vector<8x32xf32>
    %603 = vector.extract_strided_slice %601 {offsets = [1, 0], sizes = [8, 32], strides = [1, 1]} : vector<10x32xf32> to vector<8x32xf32>
    %604 = vector.extract_strided_slice %601 {offsets = [2, 0], sizes = [8, 32], strides = [1, 1]} : vector<10x32xf32> to vector<8x32xf32>
    %605 = tpu.concatenate %602, %603, %604 in 1 : vector<8x32xf32>, vector<8x32xf32>, vector<8x32xf32> -> vector<8x96xf32>
    %606 = tpu.concatenate %598, %605 in 0 : vector<8x96xf32>, vector<8x96xf32> -> vector<16x96xf32>
    %cst_233 = arith.constant dense<0.000000e+00> : vector<16x32xf32>
    %607 = tpu.matmul %606, %590, %cst_233 {dimension_numbers = #tpu.dot_dimension_numbers<[1], [0], [0], [1], [0, 0, 1, 1], [], []>} : vector<16x96xf32>, vector<96x32xf32>, vector<16x32xf32> -> vector<16x32xf32>
    %608 = vector.broadcast %591 : vector<1x32xf32> to vector<16x32xf32>
    %609 = arith.addf %607, %608 : vector<16x32xf32>
    %cst_234 = arith.constant 0.000000e+00 : f32
    %610 = vector.broadcast %cst_234 : f32 to vector<16x32xf32>
    %611 = arith.maximumf %609, %610 : vector<16x32xf32>
    %c0_235 = arith.constant 0 : index
    %c14 = arith.constant 14 : index
    %c0_236 = arith.constant 0 : index
    %c0_237 = arith.constant 0 : index
    %612 = vector.load %arg3[%c0_235, %c14, %c0_236, %c0_237] : memref<1x18x96x32xf32, #tpu.memory_space<vmem>>, vector<1x1x96x32xf32>
    %613 = vector.shape_cast %612 : vector<1x1x96x32xf32> to vector<96x32xf32>
    %614 = vector.extract_strided_slice %3 {offsets = [28, 0], sizes = [1, 32], strides = [1, 1]} : vector<34x32xf32> to vector<1x32xf32>
    %615 = vector.extract_strided_slice %611 {offsets = [0, 0], sizes = [8, 32], strides = [1, 1]} : vector<16x32xf32> to vector<8x32xf32>
    %cst_238 = arith.constant 0.000000e+00 : f32
    %616 = vector.broadcast %cst_238 : f32 to vector<3x32xf32>
    %617 = tpu.concatenate %616, %615, %616 in 0 : vector<3x32xf32>, vector<8x32xf32>, vector<3x32xf32> -> vector<14x32xf32>
    %618 = vector.extract_strided_slice %617 {offsets = [0, 0], sizes = [8, 32], strides = [1, 1]} : vector<14x32xf32> to vector<8x32xf32>
    %619 = vector.extract_strided_slice %617 {offsets = [3, 0], sizes = [8, 32], strides = [1, 1]} : vector<14x32xf32> to vector<8x32xf32>
    %620 = vector.extract_strided_slice %617 {offsets = [6, 0], sizes = [8, 32], strides = [1, 1]} : vector<14x32xf32> to vector<8x32xf32>
    %621 = tpu.concatenate %618, %619, %620 in 1 : vector<8x32xf32>, vector<8x32xf32>, vector<8x32xf32> -> vector<8x96xf32>
    %622 = vector.extract_strided_slice %611 {offsets = [8, 0], sizes = [8, 32], strides = [1, 1]} : vector<16x32xf32> to vector<8x32xf32>
    %cst_239 = arith.constant 0.000000e+00 : f32
    %623 = vector.broadcast %cst_239 : f32 to vector<3x32xf32>
    %624 = tpu.concatenate %623, %622, %623 in 0 : vector<3x32xf32>, vector<8x32xf32>, vector<3x32xf32> -> vector<14x32xf32>
    %625 = vector.extract_strided_slice %624 {offsets = [0, 0], sizes = [8, 32], strides = [1, 1]} : vector<14x32xf32> to vector<8x32xf32>
    %626 = vector.extract_strided_slice %624 {offsets = [3, 0], sizes = [8, 32], strides = [1, 1]} : vector<14x32xf32> to vector<8x32xf32>
    %627 = vector.extract_strided_slice %624 {offsets = [6, 0], sizes = [8, 32], strides = [1, 1]} : vector<14x32xf32> to vector<8x32xf32>
    %628 = tpu.concatenate %625, %626, %627 in 1 : vector<8x32xf32>, vector<8x32xf32>, vector<8x32xf32> -> vector<8x96xf32>
    %629 = tpu.concatenate %621, %628 in 0 : vector<8x96xf32>, vector<8x96xf32> -> vector<16x96xf32>
    %cst_240 = arith.constant dense<0.000000e+00> : vector<16x32xf32>
    %630 = tpu.matmul %629, %613, %cst_240 {dimension_numbers = #tpu.dot_dimension_numbers<[1], [0], [0], [1], [0, 0, 1, 1], [], []>} : vector<16x96xf32>, vector<96x32xf32>, vector<16x32xf32> -> vector<16x32xf32>
    %631 = vector.broadcast %614 : vector<1x32xf32> to vector<16x32xf32>
    %632 = arith.addf %630, %631 : vector<16x32xf32>
    %cst_241 = arith.constant 0.000000e+00 : f32
    %633 = vector.broadcast %cst_241 : f32 to vector<16x32xf32>
    %634 = arith.maximumf %632, %633 : vector<16x32xf32>
    %c0_242 = arith.constant 0 : index
    %c10_243 = arith.constant 10 : index
    %c0_244 = arith.constant 0 : index
    %c0_245 = arith.constant 0 : index
    %635 = vector.load %arg4[%c0_242, %c10_243, %c0_244, %c0_245] : memref<1x12x32x32xf32, #tpu.memory_space<vmem>>, vector<1x1x32x32xf32>
    %636 = vector.shape_cast %635 : vector<1x1x32x32xf32> to vector<32x32xf32>
    %637 = vector.extract_strided_slice %3 {offsets = [29, 0], sizes = [1, 32], strides = [1, 1]} : vector<34x32xf32> to vector<1x32xf32>
    %cst_246 = arith.constant dense<0.000000e+00> : vector<16x32xf32>
    %638 = tpu.matmul %634, %636, %cst_246 {dimension_numbers = #tpu.dot_dimension_numbers<[1], [0], [0], [1], [0, 0, 1, 1], [], []>} : vector<16x32xf32>, vector<32x32xf32>, vector<16x32xf32> -> vector<16x32xf32>
    %639 = vector.broadcast %637 : vector<1x32xf32> to vector<16x32xf32>
    %640 = arith.addf %638, %639 : vector<16x32xf32>
    %641 = arith.addf %609, %640 : vector<16x32xf32>
    %cst_247 = arith.constant 0.000000e+00 : f32
    %642 = vector.broadcast %cst_247 : f32 to vector<16x32xf32>
    %643 = arith.maximumf %641, %642 : vector<16x32xf32>
    %c0_248 = arith.constant 0 : index
    %c15 = arith.constant 15 : index
    %c0_249 = arith.constant 0 : index
    %c0_250 = arith.constant 0 : index
    %644 = vector.load %arg3[%c0_248, %c15, %c0_249, %c0_250] : memref<1x18x96x32xf32, #tpu.memory_space<vmem>>, vector<1x1x96x32xf32>
    %645 = vector.shape_cast %644 : vector<1x1x96x32xf32> to vector<96x32xf32>
    %646 = vector.extract_strided_slice %3 {offsets = [30, 0], sizes = [1, 32], strides = [1, 1]} : vector<34x32xf32> to vector<1x32xf32>
    %647 = vector.extract_strided_slice %643 {offsets = [0, 0], sizes = [8, 32], strides = [1, 1]} : vector<16x32xf32> to vector<8x32xf32>
    %cst_251 = arith.constant 0.000000e+00 : f32
    %648 = vector.broadcast %cst_251 : f32 to vector<1x32xf32>
    %649 = tpu.concatenate %648, %647, %648 in 0 : vector<1x32xf32>, vector<8x32xf32>, vector<1x32xf32> -> vector<10x32xf32>
    %650 = vector.extract_strided_slice %649 {offsets = [0, 0], sizes = [8, 32], strides = [1, 1]} : vector<10x32xf32> to vector<8x32xf32>
    %651 = vector.extract_strided_slice %649 {offsets = [1, 0], sizes = [8, 32], strides = [1, 1]} : vector<10x32xf32> to vector<8x32xf32>
    %652 = vector.extract_strided_slice %649 {offsets = [2, 0], sizes = [8, 32], strides = [1, 1]} : vector<10x32xf32> to vector<8x32xf32>
    %653 = tpu.concatenate %650, %651, %652 in 1 : vector<8x32xf32>, vector<8x32xf32>, vector<8x32xf32> -> vector<8x96xf32>
    %654 = vector.extract_strided_slice %643 {offsets = [8, 0], sizes = [8, 32], strides = [1, 1]} : vector<16x32xf32> to vector<8x32xf32>
    %cst_252 = arith.constant 0.000000e+00 : f32
    %655 = vector.broadcast %cst_252 : f32 to vector<1x32xf32>
    %656 = tpu.concatenate %655, %654, %655 in 0 : vector<1x32xf32>, vector<8x32xf32>, vector<1x32xf32> -> vector<10x32xf32>
    %657 = vector.extract_strided_slice %656 {offsets = [0, 0], sizes = [8, 32], strides = [1, 1]} : vector<10x32xf32> to vector<8x32xf32>
    %658 = vector.extract_strided_slice %656 {offsets = [1, 0], sizes = [8, 32], strides = [1, 1]} : vector<10x32xf32> to vector<8x32xf32>
    %659 = vector.extract_strided_slice %656 {offsets = [2, 0], sizes = [8, 32], strides = [1, 1]} : vector<10x32xf32> to vector<8x32xf32>
    %660 = tpu.concatenate %657, %658, %659 in 1 : vector<8x32xf32>, vector<8x32xf32>, vector<8x32xf32> -> vector<8x96xf32>
    %661 = tpu.concatenate %653, %660 in 0 : vector<8x96xf32>, vector<8x96xf32> -> vector<16x96xf32>
    %cst_253 = arith.constant dense<0.000000e+00> : vector<16x32xf32>
    %662 = tpu.matmul %661, %645, %cst_253 {dimension_numbers = #tpu.dot_dimension_numbers<[1], [0], [0], [1], [0, 0, 1, 1], [], []>} : vector<16x96xf32>, vector<96x32xf32>, vector<16x32xf32> -> vector<16x32xf32>
    %663 = vector.broadcast %646 : vector<1x32xf32> to vector<16x32xf32>
    %664 = arith.addf %662, %663 : vector<16x32xf32>
    %cst_254 = arith.constant 0.000000e+00 : f32
    %665 = vector.broadcast %cst_254 : f32 to vector<16x32xf32>
    %666 = arith.maximumf %664, %665 : vector<16x32xf32>
    %c0_255 = arith.constant 0 : index
    %c11_256 = arith.constant 11 : index
    %c0_257 = arith.constant 0 : index
    %c0_258 = arith.constant 0 : index
    %667 = vector.load %arg4[%c0_255, %c11_256, %c0_257, %c0_258] : memref<1x12x32x32xf32, #tpu.memory_space<vmem>>, vector<1x1x32x32xf32>
    %668 = vector.shape_cast %667 : vector<1x1x32x32xf32> to vector<32x32xf32>
    %669 = vector.extract_strided_slice %3 {offsets = [31, 0], sizes = [1, 32], strides = [1, 1]} : vector<34x32xf32> to vector<1x32xf32>
    %cst_259 = arith.constant dense<0.000000e+00> : vector<16x32xf32>
    %670 = tpu.matmul %666, %668, %cst_259 {dimension_numbers = #tpu.dot_dimension_numbers<[1], [0], [0], [1], [0, 0, 1, 1], [], []>} : vector<16x32xf32>, vector<32x32xf32>, vector<16x32xf32> -> vector<16x32xf32>
    %671 = vector.broadcast %669 : vector<1x32xf32> to vector<16x32xf32>
    %672 = arith.addf %670, %671 : vector<16x32xf32>
    %673 = arith.addf %641, %672 : vector<16x32xf32>
    %674 = tpu.iota {dimensions = array<i32: 0>} : vector<32x16xi32>
    %675 = tpu.iota {dimensions = array<i32: 1>} : vector<32x16xi32>
    %c2_i32_260 = arith.constant 2 : i32
    %676 = vector.broadcast %c2_i32_260 : i32 to vector<32x16xi32>
    %677 = arith.muli %676, %675 : vector<32x16xi32>
    %678 = arith.cmpi eq, %674, %677 : vector<32x16xi32>
    %c2_i32_261 = arith.constant 2 : i32
    %679 = vector.broadcast %c2_i32_261 : i32 to vector<32x16xi32>
    %680 = arith.muli %679, %675 : vector<32x16xi32>
    %c1_i32_262 = arith.constant 1 : i32
    %681 = vector.broadcast %c1_i32_262 : i32 to vector<32x16xi32>
    %682 = arith.addi %680, %681 : vector<32x16xi32>
    %683 = arith.cmpi eq, %674, %682 : vector<32x16xi32>
    %684 = arith.ori %678, %683 : vector<32x16xi1>
    %cst_263 = arith.constant 1.000000e+00 : f32
    %cst_264 = arith.constant 0.000000e+00 : f32
    %685 = vector.broadcast %cst_263 : f32 to vector<32x16xf32>
    %686 = vector.broadcast %cst_264 : f32 to vector<32x16xf32>
    %687 = arith.select %684, %685, %686 : vector<32x16xi1>, vector<32x16xf32>
    %cst_265 = arith.constant dense<0.000000e+00> : vector<32x32xf32>
    %688 = tpu.matmul %687, %673, %cst_265 {dimension_numbers = #tpu.dot_dimension_numbers<[1], [0], [0], [1], [0, 0, 1, 1], [], []>} : vector<32x16xf32>, vector<16x32xf32>, vector<32x32xf32> -> vector<32x32xf32>
    %c0_266 = arith.constant 0 : index
    %c16 = arith.constant 16 : index
    %c0_267 = arith.constant 0 : index
    %c0_268 = arith.constant 0 : index
    %689 = vector.load %arg3[%c0_266, %c16, %c0_267, %c0_268] : memref<1x18x96x32xf32, #tpu.memory_space<vmem>>, vector<1x1x96x32xf32>
    %690 = vector.shape_cast %689 : vector<1x1x96x32xf32> to vector<96x32xf32>
    %691 = vector.extract_strided_slice %3 {offsets = [32, 0], sizes = [1, 32], strides = [1, 1]} : vector<34x32xf32> to vector<1x32xf32>
    %692 = vector.extract_strided_slice %688 {offsets = [0, 0], sizes = [16, 32], strides = [1, 1]} : vector<32x32xf32> to vector<16x32xf32>
    %cst_269 = arith.constant 0.000000e+00 : f32
    %693 = vector.broadcast %cst_269 : f32 to vector<1x32xf32>
    %694 = tpu.concatenate %693, %692, %693 in 0 : vector<1x32xf32>, vector<16x32xf32>, vector<1x32xf32> -> vector<18x32xf32>
    %695 = vector.extract_strided_slice %694 {offsets = [0, 0], sizes = [16, 32], strides = [1, 1]} : vector<18x32xf32> to vector<16x32xf32>
    %696 = vector.extract_strided_slice %694 {offsets = [1, 0], sizes = [16, 32], strides = [1, 1]} : vector<18x32xf32> to vector<16x32xf32>
    %697 = vector.extract_strided_slice %694 {offsets = [2, 0], sizes = [16, 32], strides = [1, 1]} : vector<18x32xf32> to vector<16x32xf32>
    %698 = tpu.concatenate %695, %696, %697 in 1 : vector<16x32xf32>, vector<16x32xf32>, vector<16x32xf32> -> vector<16x96xf32>
    %699 = vector.extract_strided_slice %688 {offsets = [16, 0], sizes = [16, 32], strides = [1, 1]} : vector<32x32xf32> to vector<16x32xf32>
    %cst_270 = arith.constant 0.000000e+00 : f32
    %700 = vector.broadcast %cst_270 : f32 to vector<1x32xf32>
    %701 = tpu.concatenate %700, %699, %700 in 0 : vector<1x32xf32>, vector<16x32xf32>, vector<1x32xf32> -> vector<18x32xf32>
    %702 = vector.extract_strided_slice %701 {offsets = [0, 0], sizes = [16, 32], strides = [1, 1]} : vector<18x32xf32> to vector<16x32xf32>
    %703 = vector.extract_strided_slice %701 {offsets = [1, 0], sizes = [16, 32], strides = [1, 1]} : vector<18x32xf32> to vector<16x32xf32>
    %704 = vector.extract_strided_slice %701 {offsets = [2, 0], sizes = [16, 32], strides = [1, 1]} : vector<18x32xf32> to vector<16x32xf32>
    %705 = tpu.concatenate %702, %703, %704 in 1 : vector<16x32xf32>, vector<16x32xf32>, vector<16x32xf32> -> vector<16x96xf32>
    %706 = tpu.concatenate %698, %705 in 0 : vector<16x96xf32>, vector<16x96xf32> -> vector<32x96xf32>
    %cst_271 = arith.constant dense<0.000000e+00> : vector<32x32xf32>
    %707 = tpu.matmul %706, %690, %cst_271 {dimension_numbers = #tpu.dot_dimension_numbers<[1], [0], [0], [1], [0, 0, 1, 1], [], []>} : vector<32x96xf32>, vector<96x32xf32>, vector<32x32xf32> -> vector<32x32xf32>
    %708 = vector.broadcast %691 : vector<1x32xf32> to vector<32x32xf32>
    %709 = arith.addf %707, %708 : vector<32x32xf32>
    %c0_272 = arith.constant 0 : index
    %c17 = arith.constant 17 : index
    %c0_273 = arith.constant 0 : index
    %c0_274 = arith.constant 0 : index
    %710 = vector.load %arg3[%c0_272, %c17, %c0_273, %c0_274] : memref<1x18x96x32xf32, #tpu.memory_space<vmem>>, vector<1x1x96x32xf32>
    %711 = vector.shape_cast %710 : vector<1x1x96x32xf32> to vector<96x32xf32>
    %712 = vector.extract_strided_slice %3 {offsets = [33, 0], sizes = [1, 32], strides = [1, 1]} : vector<34x32xf32> to vector<1x32xf32>
    %713 = vector.extract_strided_slice %709 {offsets = [0, 0], sizes = [16, 32], strides = [1, 1]} : vector<32x32xf32> to vector<16x32xf32>
    %cst_275 = arith.constant 0.000000e+00 : f32
    %714 = vector.broadcast %cst_275 : f32 to vector<1x32xf32>
    %715 = tpu.concatenate %714, %713, %714 in 0 : vector<1x32xf32>, vector<16x32xf32>, vector<1x32xf32> -> vector<18x32xf32>
    %716 = vector.extract_strided_slice %715 {offsets = [0, 0], sizes = [16, 32], strides = [1, 1]} : vector<18x32xf32> to vector<16x32xf32>
    %717 = vector.extract_strided_slice %715 {offsets = [1, 0], sizes = [16, 32], strides = [1, 1]} : vector<18x32xf32> to vector<16x32xf32>
    %718 = vector.extract_strided_slice %715 {offsets = [2, 0], sizes = [16, 32], strides = [1, 1]} : vector<18x32xf32> to vector<16x32xf32>
    %719 = tpu.concatenate %716, %717, %718 in 1 : vector<16x32xf32>, vector<16x32xf32>, vector<16x32xf32> -> vector<16x96xf32>
    %720 = vector.extract_strided_slice %709 {offsets = [16, 0], sizes = [16, 32], strides = [1, 1]} : vector<32x32xf32> to vector<16x32xf32>
    %cst_276 = arith.constant 0.000000e+00 : f32
    %721 = vector.broadcast %cst_276 : f32 to vector<1x32xf32>
    %722 = tpu.concatenate %721, %720, %721 in 0 : vector<1x32xf32>, vector<16x32xf32>, vector<1x32xf32> -> vector<18x32xf32>
    %723 = vector.extract_strided_slice %722 {offsets = [0, 0], sizes = [16, 32], strides = [1, 1]} : vector<18x32xf32> to vector<16x32xf32>
    %724 = vector.extract_strided_slice %722 {offsets = [1, 0], sizes = [16, 32], strides = [1, 1]} : vector<18x32xf32> to vector<16x32xf32>
    %725 = vector.extract_strided_slice %722 {offsets = [2, 0], sizes = [16, 32], strides = [1, 1]} : vector<18x32xf32> to vector<16x32xf32>
    %726 = tpu.concatenate %723, %724, %725 in 1 : vector<16x32xf32>, vector<16x32xf32>, vector<16x32xf32> -> vector<16x96xf32>
    %727 = tpu.concatenate %719, %726 in 0 : vector<16x96xf32>, vector<16x96xf32> -> vector<32x96xf32>
    %cst_277 = arith.constant dense<0.000000e+00> : vector<32x32xf32>
    %728 = tpu.matmul %727, %711, %cst_277 {dimension_numbers = #tpu.dot_dimension_numbers<[1], [0], [0], [1], [0, 0, 1, 1], [], []>} : vector<32x96xf32>, vector<96x32xf32>, vector<32x32xf32> -> vector<32x32xf32>
    %729 = vector.broadcast %712 : vector<1x32xf32> to vector<32x32xf32>
    %730 = arith.addf %728, %729 : vector<32x32xf32>
    %cst_278 = arith.constant 0.000000e+00 : f32
    %731 = vector.broadcast %cst_278 : f32 to vector<32x32xf32>
    %732 = arith.maximumf %730, %731 : vector<32x32xf32>
    %c0_279 = arith.constant 0 : index
    %c0_280 = arith.constant 0 : index
    %c0_281 = arith.constant 0 : index
    %733 = vector.load %arg6[%c0_279, %c0_280, %c0_281] : memref<1x96x256xf32, #tpu.memory_space<vmem>>, vector<1x96x256xf32>
    %734 = vector.shape_cast %733 : vector<1x96x256xf32> to vector<96x256xf32>
    %c0_282 = arith.constant 0 : index
    %c0_283 = arith.constant 0 : index
    %c0_284 = arith.constant 0 : index
    %735 = vector.load %arg8[%c0_282, %c0_283, %c0_284] : memref<1x1x256xf32, #tpu.memory_space<vmem>>, vector<1x1x256xf32>
    %736 = vector.shape_cast %735 : vector<1x1x256xf32> to vector<1x256xf32>
    %737 = vector.extract_strided_slice %732 {offsets = [0, 0], sizes = [16, 32], strides = [1, 1]} : vector<32x32xf32> to vector<16x32xf32>
    %cst_285 = arith.constant 0.000000e+00 : f32
    %738 = vector.broadcast %cst_285 : f32 to vector<1x32xf32>
    %739 = tpu.concatenate %738, %737, %738 in 0 : vector<1x32xf32>, vector<16x32xf32>, vector<1x32xf32> -> vector<18x32xf32>
    %740 = vector.extract_strided_slice %739 {offsets = [0, 0], sizes = [16, 32], strides = [1, 1]} : vector<18x32xf32> to vector<16x32xf32>
    %741 = vector.extract_strided_slice %739 {offsets = [1, 0], sizes = [16, 32], strides = [1, 1]} : vector<18x32xf32> to vector<16x32xf32>
    %742 = vector.extract_strided_slice %739 {offsets = [2, 0], sizes = [16, 32], strides = [1, 1]} : vector<18x32xf32> to vector<16x32xf32>
    %743 = tpu.concatenate %740, %741, %742 in 1 : vector<16x32xf32>, vector<16x32xf32>, vector<16x32xf32> -> vector<16x96xf32>
    %744 = vector.extract_strided_slice %732 {offsets = [16, 0], sizes = [16, 32], strides = [1, 1]} : vector<32x32xf32> to vector<16x32xf32>
    %cst_286 = arith.constant 0.000000e+00 : f32
    %745 = vector.broadcast %cst_286 : f32 to vector<1x32xf32>
    %746 = tpu.concatenate %745, %744, %745 in 0 : vector<1x32xf32>, vector<16x32xf32>, vector<1x32xf32> -> vector<18x32xf32>
    %747 = vector.extract_strided_slice %746 {offsets = [0, 0], sizes = [16, 32], strides = [1, 1]} : vector<18x32xf32> to vector<16x32xf32>
    %748 = vector.extract_strided_slice %746 {offsets = [1, 0], sizes = [16, 32], strides = [1, 1]} : vector<18x32xf32> to vector<16x32xf32>
    %749 = vector.extract_strided_slice %746 {offsets = [2, 0], sizes = [16, 32], strides = [1, 1]} : vector<18x32xf32> to vector<16x32xf32>
    %750 = tpu.concatenate %747, %748, %749 in 1 : vector<16x32xf32>, vector<16x32xf32>, vector<16x32xf32> -> vector<16x96xf32>
    %751 = tpu.concatenate %743, %750 in 0 : vector<16x96xf32>, vector<16x96xf32> -> vector<32x96xf32>
    %cst_287 = arith.constant dense<0.000000e+00> : vector<32x256xf32>
    %752 = tpu.matmul %751, %734, %cst_287 {dimension_numbers = #tpu.dot_dimension_numbers<[1], [0], [0], [1], [0, 0, 1, 1], [], []>} : vector<32x96xf32>, vector<96x256xf32>, vector<32x256xf32> -> vector<32x256xf32>
    %753 = vector.broadcast %736 : vector<1x256xf32> to vector<32x256xf32>
    %754 = arith.addf %752, %753 : vector<32x256xf32>
    %c0_288 = arith.constant 0 : index
    %c0_289 = arith.constant 0 : index
    %c0_290 = arith.constant 0 : index
    %755 = vector.load %arg10[%c0_288, %c0_289, %c0_290] : memref<1x32x256xf32, #tpu.memory_space<vmem>>, vector<1x32x256xf32>
    %756 = vector.shape_cast %755 : vector<1x32x256xf32> to vector<32x256xf32>
    %757 = vector.shape_cast %754 : vector<32x256xf32> to vector<1x32x256xf32>
    tpu.vector_store %arg10[%c0_288, %c0_289, %c0_290], %757 {strides = array<i32>} : memref<1x32x256xf32, #tpu.memory_space<vmem>>, vector<1x32x256xf32>,
    %c0_291 = arith.constant 0 : index
    %c0_292 = arith.constant 0 : index
    %c0_293 = arith.constant 0 : index
    %758 = vector.load %arg11[%c0_291, %c0_292, %c0_293] : memref<1x1x1xf32, #tpu.memory_space<vmem>>, vector<1x1x1xf32>
    %759 = vector.shape_cast %758 : vector<1x1x1xf32> to vector<1x1xf32>
    %760 = vector.shape_cast %373 : vector<1x1xf32> to vector<1x1x1xf32>
    tpu.vector_store %arg11[%c0_291, %c0_292, %c0_293], %760 {strides = array<i32>} : memref<1x1x1xf32, #tpu.memory_space<vmem>>, vector<1x1x1xf32>,
    %c0_294 = arith.constant 0 : index
    %c0_295 = arith.constant 0 : index
    %c0_296 = arith.constant 0 : index
    %761 = vector.load %arg12[%c0_294, %c0_295, %c0_296] : memref<1x1x1xf32, #tpu.memory_space<vmem>>, vector<1x1x1xf32>
    %762 = vector.shape_cast %761 : vector<1x1x1xf32> to vector<1x1xf32>
    %763 = vector.shape_cast %386 : vector<1x1xf32> to vector<1x1x1xf32>
    tpu.vector_store %arg12[%c0_294, %c0_295, %c0_296], %763 {strides = array<i32>} : memref<1x1x1xf32, #tpu.memory_space<vmem>>, vector<1x1x1xf32>,
    return
  }
  func.func @transform_0(%arg0: i32) -> (i32, i32, i32) {
    %c0_i32 = arith.constant 0 : i32
    %c0_i32_0 = arith.constant 0 : i32
    %c0_i32_1 = arith.constant 0 : i32
    return %arg0, %c0_i32, %c0_i32_0 : i32, i32, i32
  }
  func.func @transform_1(%arg0: i32) -> (i32, i32, i32) {
    %c0_i32 = arith.constant 0 : i32
    %c0_i32_0 = arith.constant 0 : i32
    %c0_i32_1 = arith.constant 0 : i32
    return %arg0, %c0_i32, %c0_i32_0 : i32, i32, i32
  }
  func.func @transform_2(%arg0: i32) -> (i32, i32, i32, i32) {
    %c0_i32 = arith.constant 0 : i32
    %c0_i32_0 = arith.constant 0 : i32
    %c0_i32_1 = arith.constant 0 : i32
    %c0_i32_2 = arith.constant 0 : i32
    return %arg0, %c0_i32, %c0_i32_0, %c0_i32_1 : i32, i32, i32, i32
  }
  func.func @transform_3(%arg0: i32) -> (i32, i32, i32, i32) {
    %c0_i32 = arith.constant 0 : i32
    %c0_i32_0 = arith.constant 0 : i32
    %c0_i32_1 = arith.constant 0 : i32
    %c0_i32_2 = arith.constant 0 : i32
    return %arg0, %c0_i32, %c0_i32_0, %c0_i32_1 : i32, i32, i32, i32
  }
  func.func @transform_4(%arg0: i32) -> (i32, i32, i32, i32) {
    %c0_i32 = arith.constant 0 : i32
    %c0_i32_0 = arith.constant 0 : i32
    %c0_i32_1 = arith.constant 0 : i32
    %c0_i32_2 = arith.constant 0 : i32
    return %arg0, %c0_i32, %c0_i32_0, %c0_i32_1 : i32, i32, i32, i32
  }
  func.func @transform_5(%arg0: i32) -> (i32, i32, i32) {
    %c0_i32 = arith.constant 0 : i32
    %c0_i32_0 = arith.constant 0 : i32
    %c0_i32_1 = arith.constant 0 : i32
    return %arg0, %c0_i32, %c0_i32_0 : i32, i32, i32
  }
  func.func @transform_6(%arg0: i32) -> (i32, i32, i32) {
    %c0_i32 = arith.constant 0 : i32
    %c0_i32_0 = arith.constant 0 : i32
    %c0_i32_1 = arith.constant 0 : i32
    return %arg0, %c0_i32, %c0_i32_0 : i32, i32, i32
  }
  func.func @transform_7(%arg0: i32) -> (i32, i32, i32) {
    %c0_i32 = arith.constant 0 : i32
    %c0_i32_0 = arith.constant 0 : i32
    %c0_i32_1 = arith.constant 0 : i32
    return %arg0, %c0_i32, %c0_i32_0 : i32, i32, i32
  }
  func.func @transform_8(%arg0: i32) -> (i32, i32, i32) {
    %c0_i32 = arith.constant 0 : i32
    %c0_i32_0 = arith.constant 0 : i32
    %c0_i32_1 = arith.constant 0 : i32
    return %arg0, %c0_i32, %c0_i32_0 : i32, i32, i32
  }
  func.func @transform_9(%arg0: i32) -> (i32, i32, i32) {
    %c0_i32 = arith.constant 0 : i32
    %c0_i32_0 = arith.constant 0 : i32
    %c0_i32_1 = arith.constant 0 : i32
    return %arg0, %c0_i32, %c0_i32_0 : i32, i32, i32
  }
  func.func @transform_10(%arg0: i32) -> (i32, i32, i32) {
    %c0_i32 = arith.constant 0 : i32
    %c0_i32_0 = arith.constant 0 : i32
    %c0_i32_1 = arith.constant 0 : i32
    return %arg0, %c0_i32, %c0_i32_0 : i32, i32, i32
  }
  func.func @transform_11(%arg0: i32) -> (i32, i32, i32) {
    %c0_i32 = arith.constant 0 : i32
    %c0_i32_0 = arith.constant 0 : i32
    %c0_i32_1 = arith.constant 0 : i32
    return %arg0, %c0_i32, %c0_i32_0 : i32, i32, i32
  }
}

</mosaic_0001>

<bundles_post_ra>
// kernel: dual_vqvae_forward.1
= control target key start
LH: loop header
LB: loop body
LE: loop exit
PB: predicated region body
PF: predicated region fallthrough
CT: control target
= control target key end

     0   :  { %s9036_s17 = smov 0   ;;  %s10613_s0 = inlined_call_operand.vmem [shape: f32[2,32,256], index: 0, kind: input, shape index: {}]   ;;  %s10614_s1 = inlined_call_operand.vmem [shape: f32[2,768,32], index: 1, kind: input, shape index: {}]   ;;  %s10615_s2 = inlined_call_operand.vmem [shape: f32[2,18,96,32], index: 2, kind: input, shape index: {}]   ;;  %s10616_s3 = inlined_call_operand.vmem [shape: f32[2,12,32,32], index: 3, kind: input, shape index: {}]   ;;  %s10617_s4 = inlined_call_operand.vmem [shape: f32[2,3,128,32], index: 4, kind: input, shape index: {}]   ;;  %s10618_s5 = inlined_call_operand.vmem [shape: f32[2,96,256], index: 5, kind: input, shape index: {}]   ;;  %s10619_s6 = inlined_call_operand.vmem [shape: f32[2,34,32], index: 6, kind: input, shape index: {}]   ;;  %s10620_s7 = inlined_call_operand.vmem [shape: f32[2,1,256], index: 7, kind: input, shape index: {}]   ;;  %s10621_s8 = inlined_call_operand.vmem [shape: f32[2,64,32], index: 8, kind: input, shape index: {}]   ;;  %s10622_s9 = inlined_call_operand.vmem [shape: f32[2,32,256], index: 9, kind: output, shape index: {0}]   ;;  %s10623_s10 = inlined_call_operand.vmem [shape: f32[2,1,1], index: 10, kind: output, shape index: {1}]   ;;  %s10624_s11 = inlined_call_operand.vmem [shape: f32[2,1,1], index: 11, kind: output, shape index: {2}]  }
   0x1 LB: > { %s6473_s18 = sadd.s32 4294967295, %s8967_s17   ;;  %p6477_p0 = scmp.ge.s32.totalorder %s8967_s17, 1  ;;  %s8967_s17 = sphi %s9036_s17, %s22_s17  }
   0x2   : > { %p421_p1 = scmp.lt.s32.totalorder %s8967_s17, 3 }
   0x4   : > { %p422_p2 = pnand %p6477_p0, %p421_p1 }
   0x5   : > { %p506_p3 = scmp.lt.s32.totalorder (!%p422_p2), %s6473_s18, 1  ;;  %vm674_vm0 = vcmask (!%p422_p2), 1040384   ;;  %vm695_vm2 = vcmask (!%p422_p2), 1046528   ;;  %vm710_vm3 = vcmask (!%p422_p2), 1045504   ;;  %vm1095_vm4 = vcmask (!%p422_p2), 1044480   ;;  %s8970_s12 = smov (!%p422_p2), 96  }
   0x6   : > { %425 = sbr.rel (%p422_p2) target bundleno = 12523 (0x30eb), region = 56  ;;  %vm9063_vm1 = vmneg (!%p422_p2), %vm674_vm0  ;;  %s8971_s13 = smov (!%p422_p2), 32   ;;  %vm8972_vm5 = vmmov (!%p422_p2), 0   ;;  %vm1107_vm6 = vcmask (!%p422_p2), 261120   ;;  %vm1110_vm7 = vcmask (!%p422_p2), 523264   ;;  %vm1113_vm8 = vcmask (!%p422_p2), 785408  }
   0x7   : > { %s8974_s14 = smov (!%p422_p2), 64   ;;  %vm8975_vm9 = vmmov (!%p422_p2), 1   ;;  %vm1116_vm12 = vcmask (!%p422_p2), 121856   ;;  %vm1411_vm13 = vcmask (!%p422_p2), 1042432   ;;  %vm1422_vm14 = vcmask (!%p422_p2), 1041408  }
   0x8   : > { %vm9340_vm10 = vmpackc.low (!%p422_p2), %vm695_vm2, %vm8975_vm9  ;;  %vm1909_vm15 = vcmask (!%p422_p2), 56320   ;;  %vm2625_vm9 = vcmask (!%p422_p2), 23552  }
   0xd   : > { %s10632_s18 = smov (!%p506_p3, %s6473_s18), 1 }
   0xe   : > { %s8906_s19 = smul.u32 768, %s10632_s18  ;;  %s9048_s20 = sshll.u32 %s10632_s18, 6 }
   0xf   : > { %s9054_s23 = scalar_lea.vmem %s10613_s0, %s9048_s20  ;;  %s8910_s27 = smul.u32 40, %s10632_s18 }
  0x10   : > { %s9059_s26 = scalar_lea.vmem %s10614_s1, %s8906_s19  ;;  %v562_v0 = vld [vmem:[%s9054_s23 + $0x8] sm:$0xff]  ;;  %v9068_v2 = vld [vmem:[%s9054_s23 + $0x18] sm:$0xff]  ;;  %s8908_s15 = smul.u32 384, %s10632_s18 }
  0x11   : > { %v590_v3 = vld [vmem:[%s9059_s26 + $0x80] sm:$0xff]  ;;  %v591_v4 = vld [vmem:[%s9059_s26 + $0x88] sm:$0xff]  ;;  %v676_v6 = vrot.slane %v562_v0, 7  ;;  %v679_v7 = vrot.slane %v9068_v2, 7  ;;  %v592_v16 = vld [vmem:[%s9059_s26 + $0x90] sm:$0xff]  ;;  %s9276_s30 = scalar_lea.vmem %s10619_s6, %s8910_s27  ;;  %s8907_s22 = smul.u32 1728, %s10632_s18 }
  0x12   : > { %v574_v5 = vld [vmem:[%s9059_s26] sm:$0xff]  ;;  %v8220_v8 = vpack.c.bf16 %v591_v4, %v590_v3  ;;  %v575_v9 = vld [vmem:[%s9059_s26 + $0x8] sm:$0xff]  ;;  %v593_v20 = vld [vmem:[%s9059_s26 + $0x98] sm:$0xff]  ;;  %s9350_s21 = scalar_lea.vmem %s10617_s4, %s8908_s15  ;;  %s9423_s28 = scalar_lea.vmem %s10616_s3, %s8908_s15 }
  0x13   : > { %v622_v10 = vld [vmem:[%s9059_s26 + $0x180] sm:$0xff]  ;;  %v623_v11 = vld [vmem:[%s9059_s26 + $0x188] sm:$0xff]  ;;  %v8222_v12 = vpack.c.bf16 %v575_v9, %v574_v5  ;;  %6492 = vmatprep.mubr.msk.f32.mxu0 %vm9063_vm1, %v676_v6  ;;  %v9085_v17 = vsel %vm674_vm0, %v676_v6, %v679_v7  ;;  %v9088_v18 = vsel %vm674_vm0, 0.0, %v676_v6  ;;  %v576_v21 = vld [vmem:[%s9059_s26 + $0x10] sm:$0xff]  ;;  %v8224_v25 = vpack.c.bf16 %v593_v20, %v592_v16  ;;  %s9393_s25 = scalar_lea.vmem %s10615_s2, %s8907_s22  ;;  %s549_s15 = scalar_lea.vmem %s10621_s8, %s9048_s20 }
  0x14   : > { %v8252_v13 = vpack.c.bf16 %v623_v11, %v622_v10  ;;  %v606_v14 = vld [vmem:[%s9059_s26 + $0x100] sm:$0xff]  ;;  %v607_v15 = vld [vmem:[%s9059_s26 + $0x108] sm:$0xff]  ;;  %8221 = vmatprep.subr.bf16.mxu0 %v8220_v8  ;;  %v577_v22 = vld [vmem:[%s9059_s26 + $0x18] sm:$0xff]  ;;  %v699_v23 = vrot.slane %v9088_v18, 1  ;;  %v700_v24 = vrot.slane %v9085_v17, 1  ;;  %s557_s22 = scalar_lea.vmem %s10623_s10, %s10632_s18 }
  0x15   : > { %v8254_v19 = vpack.c.bf16 %v607_v15, %v606_v14  ;;  %8223 = vmatpush3.bf16.msra.mxu0 %v8222_v12  ;;  %v8226_v26 = vpack.c.bf16 %v577_v22, %v576_v21  ;;  %v624_v27 = vld [vmem:[%s9059_s26 + $0x190] sm:$0xff]  ;;  %v625_v28 = vld [vmem:[%s9059_s26 + $0x198] sm:$0xff]  ;;  %v594_v32 = vld [vmem:[%s9059_s26 + $0xa0] sm:$0xff] }
  0x16   : > { %8253 = vmatprep.subr.bf16.mxu1 %v8252_v13  ;;  %v608_v29 = vld [vmem:[%s9059_s26 + $0x110] sm:$0xff]  ;;  %v8256_v30 = vpack.c.bf16 %v625_v28, %v624_v27  ;;  %v609_v31 = vld [vmem:[%s9059_s26 + $0x118] sm:$0xff]  ;;  %v595_v33 = vld [vmem:[%s9059_s26 + $0xa8] sm:$0xff]  ;;  %v701_v34 = vsel %vm695_vm2, %v699_v23, %v700_v24  ;;  %8225 = vmatprep.subr.bf16.mxu0 %v8224_v25 }
  0x17   : > { %8255 = vmatpush3.bf16.msra.mxu1 %v8254_v19  ;;  %v8258_v35 = vpack.c.bf16 %v609_v31, %v608_v29  ;;  %v8228_v36 = vpack.c.bf16 %v595_v33, %v594_v32  ;;  %v578_v37 = vld [vmem:[%s9059_s26 + $0x20] sm:$0xff]  ;;  %v579_v38 = vld [vmem:[%s9059_s26 + $0x28] sm:$0xff]  ;;  %930 = vmatprep.mubr.f32.mxu1 %v701_v34  ;;  %v596_v45 = vld [vmem:[%s9059_s26 + $0xb0] sm:$0xff] }
  0x18   : > { %v626_v39 = vld [vmem:[%s9059_s26 + $0x1a0] sm:$0xff]  ;;  %8257 = vmatprep.subr.bf16.mxu1 %v8256_v30  ;;  %v627_v40 = vld [vmem:[%s9059_s26 + $0x1a8] sm:$0xff]  ;;  %v8230_v43 = vpack.c.bf16 %v579_v38, %v578_v37  ;;  %v597_v46 = vld [vmem:[%s9059_s26 + $0xb8] sm:$0xff] }
  0x19   : > { %v610_v41 = vld [vmem:[%s9059_s26 + $0x120] sm:$0xff]  ;;  %v611_v42 = vld [vmem:[%s9059_s26 + $0x128] sm:$0xff]  ;;  %8227 = vmatpush3.bf16.msra.mxu0 %v8226_v26  ;;  %v8260_v44 = vpack.c.bf16 %v627_v40, %v626_v39  ;;  %v580_v47 = vld [vmem:[%s9059_s26 + $0x30] sm:$0xff]  ;;  %v8232_v49 = vpack.c.bf16 %v597_v46, %v596_v45 }
  0x1a   : > { %8229 = vmatprep.subr.bf16.mxu0 %v8228_v36  ;;  %v8262_v48 = vpack.c.bf16 %v611_v42, %v610_v41  ;;  %v581_v50 = vld [vmem:[%s9059_s26 + $0x38] sm:$0xff]  ;;  %v628_v51 = vld [vmem:[%s9059_s26 + $0x1b0] sm:$0xff]  ;;  %v598_v56 = vld [vmem:[%s9059_s26 + $0xc0] sm:$0xff] }
  0x1b   : > { %8259 = vmatpush3.bf16.msra.mxu1 %v8258_v35  ;;  %v629_v52 = vld [vmem:[%s9059_s26 + $0x1b8] sm:$0xff]  ;;  %v612_v54 = vld [vmem:[%s9059_s26 + $0x130] sm:$0xff]  ;;  %v599_v57 = vld [vmem:[%s9059_s26 + $0xc8] sm:$0xff]  ;;  %v8234_v58 = vpack.c.bf16 %v581_v50, %v580_v47 }
  0x1c   : > { %8261 = vmatprep.subr.bf16.mxu1 %v8260_v44  ;;  %v8264_v53 = vpack.c.bf16 %v629_v52, %v628_v51  ;;  %v613_v55 = vld [vmem:[%s9059_s26 + $0x138] sm:$0xff]  ;;  %v630_v59 = vld [vmem:[%s9059_s26 + $0x1c0] sm:$0xff]  ;;  %v631_v60 = vld [vmem:[%s9059_s26 + $0x1c8] sm:$0xff]  ;;  %v8236_v62 = vpack.c.bf16 %v599_v57, %v598_v56  ;;  %v9164_v56 = vsel %vm674_vm0, %v679_v7, 0.0 }
  0x1d   : > { %8231 = vmatpush3.bf16.msra.mxu0 %v8230_v43  ;;  %v8266_v61 = vpack.c.bf16 %v613_v55, %v612_v54  ;;  %v582_v63 = vld [vmem:[%s9059_s26 + $0x40] sm:$0xff]  ;;  %v583_v0 = vld [vmem:[%s9059_s26 + $0x48] sm:$0xff]  ;;  %v8268_v4 = vpack.c.bf16 %v631_v60, %v630_v59  ;;  %v600_v6 = vld [vmem:[%s9059_s26 + $0xd0] sm:$0xff] }
  0x1e   : > { %8233 = vmatprep.subr.bf16.mxu0 %v8232_v49  ;;  %v614_v3 = vld [vmem:[%s9059_s26 + $0x140] sm:$0xff]  ;;  %v615_v5 = vld [vmem:[%s9059_s26 + $0x148] sm:$0xff]  ;;  %v601_v8 = vld [vmem:[%s9059_s26 + $0xd8] sm:$0xff]  ;;  %v8238_v11 = vpack.c.bf16 %v583_v0, %v582_v63 }
  0x1f   : > { %8263 = vmatpush3.bf16.msra.mxu1 %v8262_v48  ;;  %v632_v9 = vld [vmem:[%s9059_s26 + $0x1d0] sm:$0xff]  ;;  %v633_v10 = vld [vmem:[%s9059_s26 + $0x1d8] sm:$0xff]  ;;  %v8270_v12 = vpack.c.bf16 %v615_v5, %v614_v3  ;;  %v8240_v13 = vpack.c.bf16 %v601_v8, %v600_v6  ;;  %v602_v21 = vld [vmem:[%s9059_s26 + $0xe0] sm:$0xff]  ;;  %v704_v5 = vrot.slane %v9164_v56, 1 }
  0x20   : > { %8265 = vmatprep.subr.bf16.mxu1 %v8264_v53  ;;  %v584_v14 = vld [vmem:[%s9059_s26 + $0x50] sm:$0xff]  ;;  %v585_v15 = vld [vmem:[%s9059_s26 + $0x58] sm:$0xff]  ;;  %v8272_v19 = vpack.c.bf16 %v633_v10, %v632_v9  ;;  %v603_v22 = vld [vmem:[%s9059_s26 + $0xe8] sm:$0xff] }
  0x21   : > { %8235 = vmatpush3.bf16.msra.mxu0 %v8234_v58  ;;  %v616_v16 = vld [vmem:[%s9059_s26 + $0x150] sm:$0xff]  ;;  %v617_v20 = vld [vmem:[%s9059_s26 + $0x158] sm:$0xff]  ;;  %v634_v23 = vld [vmem:[%s9059_s26 + $0x1e0] sm:$0xff]  ;;  %v8242_v27 = vpack.c.bf16 %v585_v15, %v584_v14  ;;  %v8244_v30 = vpack.c.bf16 %v603_v22, %v602_v21 }
  0x22   : > { %8237 = vmatprep.subr.bf16.mxu0 %v8236_v62  ;;  %v635_v25 = vld [vmem:[%s9059_s26 + $0x1e8] sm:$0xff]  ;;  %v561_v26 = vld [vmem:[%s9054_s23] sm:$0xff]  ;;  %v8274_v29 = vpack.c.bf16 %v617_v20, %v616_v16  ;;  %v604_v35 = vld [vmem:[%s9059_s26 + $0xf0] sm:$0xff] }
  0x23   : > { %8267 = vmatpush3.bf16.msra.mxu1 %v8266_v61  ;;  %v586_v28 = vld [vmem:[%s9059_s26 + $0x60] sm:$0xff]  ;;  %v587_v31 = vld [vmem:[%s9059_s26 + $0x68] sm:$0xff]  ;;  %v8276_v34 = vpack.c.bf16 %v635_v25, %v634_v23  ;;  %v605_v36 = vld [vmem:[%s9059_s26 + $0xf8] sm:$0xff]  ;;  %v675_v37 = vrot.slane %v561_v26, 7  ;;  %v705_v26 = vsel %vm695_vm2, %v700_v24, %v704_v5 }
  0x24   : > { %8269 = vmatprep.subr.bf16.mxu1 %v8268_v4  ;;  %v618_v32 = vld [vmem:[%s9059_s26 + $0x160] sm:$0xff]  ;;  %v619_v33 = vld [vmem:[%s9059_s26 + $0x168] sm:$0xff]  ;;  %v563_v38 = vld [vmem:[%s9054_s23 + $0x10] sm:$0xff]  ;;  %v8246_v42 = vpack.c.bf16 %v587_v31, %v586_v28  ;;  %v8248_v44 = vpack.c.bf16 %v605_v36, %v604_v35 }
  0x25   : > { %8239 = vmatpush3.bf16.msra.mxu0 %v8238_v11  ;;  %v636_v39 = vld [vmem:[%s9059_s26 + $0x1f0] sm:$0xff]  ;;  %v637_v40 = vld [vmem:[%s9059_s26 + $0x1f8] sm:$0xff]  ;;  %v677_v41 = vrot.slane %v563_v38, 7  ;;  %v8278_v43 = vpack.c.bf16 %v619_v33, %v618_v32  ;;  %v654_v50 = vld [vmem:[%s9059_s26 + $0x280] sm:$0xff]  ;;  %v9158_v53 = vsel %vm674_vm0, 0.0, %v675_v37 }
  0x26   : > { %8241 = vmatprep.subr.bf16.mxu0 %v8240_v13  ;;  %v588_v45 = vld [vmem:[%s9059_s26 + $0x70] sm:$0xff]  ;;  %v589_v46 = vld [vmem:[%s9059_s26 + $0x78] sm:$0xff]  ;;  %v8280_v48 = vpack.c.bf16 %v637_v40, %v636_v39  ;;  %v655_v51 = vld [vmem:[%s9059_s26 + $0x288] sm:$0xff]  ;;  %v696_v60 = vrot.slane %v9158_v53, 1 }
  0x27   : > { %8271 = vmatpush3.bf16.msra.mxu1 %v8270_v12  ;;  %v620_v47 = vld [vmem:[%s9059_s26 + $0x170] sm:$0xff]  ;;  %v621_v49 = vld [vmem:[%s9059_s26 + $0x178] sm:$0xff]  ;;  %v9155_v52 = vsel %vm674_vm0, %v675_v37, %v677_v41  ;;  %v8250_v54 = vpack.c.bf16 %v589_v46, %v588_v45  ;;  %v638_v55 = vld [vmem:[%s9059_s26 + $0x200] sm:$0xff]  ;;  %v8284_v58 = vpack.c.bf16 %v655_v51, %v654_v50  ;;  %v9173_v2 = vsel %vm674_vm0, %v677_v41, 0.0 }
  0x28   : > { %8273 = vmatprep.subr.bf16.mxu1 %v8272_v19  ;;  %v8282_v57 = vpack.c.bf16 %v621_v49, %v620_v47  ;;  %v639_v59 = vld [vmem:[%s9059_s26 + $0x208] sm:$0xff]  ;;  %v697_v61 = vrot.slane %v9155_v52, 1  ;;  %v656_v62 = vld [vmem:[%s9059_s26 + $0x290] sm:$0xff]  ;;  %v657_v0 = vld [vmem:[%s9059_s26 + $0x298] sm:$0xff]  ;;  %v702_v19 = vrot.slane %v9173_v2, 1  ;;  %v714_v49 = vrot.slane %v9088_v18, 2 }
  0x29   : > { %8243 = vmatpush3.bf16.msra.mxu0 %v8242_v27  ;;  %v566_v63 = vld [vmem:[%s9054_s23 + $0x28] sm:$0xff]  ;;  %v565_v3 = vld [vmem:[%s9054_s23 + $0x20] sm:$0xff]  ;;  %v568_v4 = vld [vmem:[%s9054_s23 + $0x38] sm:$0xff]  ;;  %v8286_v10 = vpack.c.bf16 %v639_v59, %v638_v55  ;;  %v8288_v14 = vpack.c.bf16 %v657_v0, %v656_v62  ;;  %v715_v50 = vrot.slane %v9085_v17, 2 }
  0x2a   : > { %8245 = vmatprep.subr.bf16.mxu0 %v8244_v30  ;;  %v730_v7 = vrot.slane %v566_v63, 7  ;;  %v729_v6 = vrot.slane %v565_v3, 7  ;;  %v733_v8 = vrot.slane %v568_v4, 7  ;;  %v567_v9 = vld [vmem:[%s9054_s23 + $0x30] sm:$0xff]  ;;  %v698_v13 = vsel %vm695_vm2, %v696_v60, %v697_v61  ;;  %v641_v16 = vld [vmem:[%s9059_s26 + $0x218] sm:$0xff]  ;;  %v658_v21 = vld [vmem:[%s9059_s26 + $0x2a0] sm:$0xff] }
  0x2b   : > { %8275 = vmatpush3.bf16.msra.mxu1 %v8274_v29  ;;  %v731_v12 = vrot.slane %v567_v9, 7  ;;  %v640_v15 = vld [vmem:[%s9059_s26 + $0x210] sm:$0xff]  ;;  %v659_v22 = vld [vmem:[%s9059_s26 + $0x2a8] sm:$0xff]  ;;  %v642_v32 = vld [vmem:[%s9059_s26 + $0x220] sm:$0xff]  ;;  %v703_v24 = vsel %vm695_vm2, %v697_v61, %v702_v19  ;;  %v716_v59 = vsel %vm710_vm3, %v714_v49, %v715_v50  ;;  %v712_v19 = vrot.slane %v9155_v52, 2 }
  0x2c   : > { %8277 = vmatprep.subr.bf16.mxu1 %v8276_v34  ;;  %v9180_v11 = vsel %vm674_vm0, 0.0, %v730_v7  ;;  %v9187_v20 = vsel %vm674_vm0, %v730_v7, %v733_v8  ;;  %v9195_v25 = vsel %vm674_vm0, 0.0, %v729_v6  ;;  %v8290_v29 = vpack.c.bf16 %v641_v16, %v640_v15  ;;  %v643_v33 = vld [vmem:[%s9059_s26 + $0x228] sm:$0xff]  ;;  %v660_v36 = vld [vmem:[%s9059_s26 + $0x2b0] sm:$0xff]  ;;  %v662_v47 = vld [vmem:[%s9059_s26 + $0x2c0] sm:$0xff] }
  0x2d   : > { %8247 = vmatpush3.bf16.msra.mxu0 %v8246_v42  ;;  %v9192_v23 = vsel %vm674_vm0, %v729_v6, %v731_v12  ;;  %v752_v27 = vrot.slane %v9180_v11, 1  ;;  %v753_v28 = vrot.slane %v9187_v20, 1  ;;  %v9205_v30 = vsel %vm674_vm0, %v733_v8, 0.0  ;;  %v664_v1 = vld [vmem:[%s9059_s26 + $0x2d0] sm:$0xff]  ;;  %v665_v18 = vld [vmem:[%s9059_s26 + $0x2d8] sm:$0xff]  ;;  %v666_v0 = vld [vmem:[%s9059_s26 + $0x2e0] sm:$0xff] }
  0x2e   : > { %8249 = vmatprep.subr.bf16.mxu0 %v8248_v44  ;;  %v8292_v31 = vpack.c.bf16 %v659_v22, %v658_v21  ;;  %v749_v34 = vrot.slane %v9195_v25, 1  ;;  %v750_v35 = vrot.slane %v9192_v23, 1  ;;  %v9216_v38 = vsel %vm674_vm0, %v731_v12, 0.0  ;;  %v645_v44 = vld [vmem:[%s9059_s26 + $0x238] sm:$0xff]  ;;  %v648_v62 = vld [vmem:[%s9059_s26 + $0x250] sm:$0xff]  ;;  %v650_v5 = vld [vmem:[%s9059_s26 + $0x260] sm:$0xff] }
  0x2f   : > { %8279 = vmatpush3.bf16.msra.mxu1 %v8278_v43  ;;  %v754_v39 = vsel %vm695_vm2, %v752_v27, %v753_v28  ;;  %v757_v40 = vrot.slane %v9205_v30, 1  ;;  %v8294_v41 = vpack.c.bf16 %v643_v33, %v642_v32  ;;  %v644_v43 = vld [vmem:[%s9059_s26 + $0x230] sm:$0xff]  ;;  %v755_v46 = vrot.slane %v9216_v38, 1  ;;  %v649_v63 = vld [vmem:[%s9059_s26 + $0x258] sm:$0xff] }
  0x30   : > { %8281 = vmatprep.subr.bf16.mxu1 %v8280_v48  ;;  %v751_v45 = vsel %vm695_vm2, %v749_v34, %v750_v35  ;;  %v663_v48 = vld [vmem:[%s9059_s26 + $0x2c8] sm:$0xff]  ;;  %v8304_v61 = vpack.c.bf16 %v665_v18, %v664_v1  ;;  %v8306_v3 = vpack.c.bf16 %v649_v63, %v648_v62  ;;  %v668_v8 = vld [vmem:[%s9059_s26 + $0x2f0] sm:$0xff]  ;;  %v669_v9 = vld [vmem:[%s9059_s26 + $0x2f8] sm:$0xff]  ;;  %v711_v15 = vrot.slane %v9158_v53, 2 }
  0x31   : > { %8251 = vmatpush3.bf16.msra.mxu0 %v8250_v54  ;;  %v758_v51 = vsel %vm695_vm2, %v753_v28, %v757_v40  ;;  %v8298_v54 = vpack.c.bf16 %v645_v44, %v644_v43  ;;  %v8300_v55 = vpack.c.bf16 %v663_v48, %v662_v47  ;;  %v8312_v12 = vpack.c.bf16 %v669_v9, %v668_v8 }
  0x32   : > { %8285 = vmatprep.subr.bf16.mxu0 %v8284_v58  ;;  %v647_v58 = vld [vmem:[%s9059_s26 + $0x248] sm:$0xff]  ;;  %v719_v21 = vrot.slane %v9164_v56, 2  ;;  %v713_v22 = vsel %vm710_vm3, %v711_v15, %v712_v19  ;;  %v766_v28 = vrot.slane %v9180_v11, 2  ;;  %v764_v56 = vrot.slane %v9192_v23, 2 }
  0x33   : > { %8283 = vmatpush3.bf16.msra.mxu1 %v8282_v57  ;;  %v646_v57 = vld [vmem:[%s9059_s26 + $0x240] sm:$0xff]  ;;  %v771_v32 = vrot.slane %v9205_v30, 2  ;;  %v769_v11 = vrot.slane %v9216_v38, 2 }
  0x34   : > { %6494 = vmatmul.mubr.msk.f32.vlgmr.msra.gmra.mrb[0].mxu0 %vm9063_vm1, %v675_v37  ;;  %v661_v37 = vld [vmem:[%s9059_s26 + $0x2b8] sm:$0xff]  ;;  %v8302_v60 = vpack.c.bf16 %v647_v58, %v646_v57  ;;  %v720_v27 = vsel %vm710_vm3, %v715_v50, %v719_v21 }
  0x35   : > { %8287 = vmatpush3.bf16.msra.mxu0 %v8286_v10  ;;  %850 = vmatprep.mubr.f32.mxu0 %v9085_v17  ;;  %v8296_v42 = vpack.c.bf16 %v661_v37, %v660_v36  ;;  %v756_v17 = vsel %vm695_vm2, %v750_v35, %v755_v46  ;;  %v770_v33 = vsel %vm710_vm3, %v764_v56, %v769_v11 }
  0x36   : > { %931 = vmatmul.mubr.f32.vlgmr.msra.gmra.mrb[0].mxu1 %v698_v13  ;;  %8289 = vmatprep.subr.bf16.mxu0 %v8288_v14  ;;  %v652_v13 = vld [vmem:[%s9059_s26 + $0x270] sm:$0xff]  ;;  %v653_v14 = vld [vmem:[%s9059_s26 + $0x278] sm:$0xff] }
  0x37   : > { %935 = vmatprep.mubr.f32.mxu1 %v705_v26  ;;  %v8314_v16 = vpack.c.bf16 %v653_v14, %v652_v13  ;;  %v717_v26 = vrot.slane %v9173_v2, 2 }
  0x38   : > { %851 = vmatmul.mubr.f32.gmra.mrb[2].mxu0 %v9155_v52  ;;  %v763_v52 = vrot.slane %v9195_v25, 2  ;;  %v777_v25 = vlaneseq }
  0x39   : > { %8291 = vmatpush3.bf16.msra.mxu0 %v8290_v29  ;;  %6496 = vmatprep.mubr.msk.f32.mxu0 %vm9063_vm1, %v730_v7  ;;  %v667_v7 = vld [vmem:[%s9059_s26 + $0x2e8] sm:$0xff]  ;;  %v767_v29 = vrot.slane %v9187_v20, 2  ;;  %v718_v53 = vsel %vm710_vm3, %v712_v19, %v717_v26 }
  0x3a   : > { %936 = vmatmul.mubr.f32.gmra.mrb[2].mxu1 %v703_v24  ;;  %8293 = vmatprep.subr.bf16.mxu0 %v8292_v31  ;;  %v8308_v4 = vpack.c.bf16 %v667_v7, %v666_v0  ;;  %v765_v2 = vsel %vm710_vm3, %v763_v52, %v764_v56  ;;  %v9282_v24 = vld [vmem:[%s9276_s30] sm:$0xff] }
  0x3b   : > { %940 = vmatprep.mubr.f32.mxu1 %v754_v39  ;;  %v768_v31 = vsel %vm710_vm3, %v766_v28, %v767_v29 }
  0x3c   : > { %6498 = vmatmul.mubr.msk.f32.gmra.mrb[4].mxu0 %vm9063_vm1, %v729_v6  ;;  %v651_v6 = vld [vmem:[%s9059_s26 + $0x268] sm:$0xff]  ;;  %vm2087_vm1 = vcmask 1043456   ;;  %s6486_s26 = sshll.u32 %s10632_s18, 1 }
  0x3d   : > { %8295 = vmatpush3.bf16.msra.mxu0 %v8294_v41  ;;  %860 = vmatprep.mubr.f32.mxu0 %v9187_v20  ;;  %v8310_v10 = vpack.c.bf16 %v651_v6, %v650_v5  ;;  %v772_v20 = vsel %vm710_vm3, %v767_v29, %v771_v32  ;;  %s544_s29 = scalar_lea.vmem %s10620_s7, %s6486_s26 }
  0x3e   : > { %941 = vmatmul.mubr.f32.gmra.mrb[4].mxu1 %v751_v45  ;;  %8297 = vmatprep.subr.bf16.mxu0 %v8296_v42 }
  0x3f   : > { %945 = vmatprep.mubr.f32.mxu1 %v758_v51 }
  0x40   : > { %861 = vmatmul.mubr.f32.gmra.mrb[6].mxu0 %v9192_v23  ;;  %v9271_v23 = vshrl.u32 %v777_v25, 7 }
  0x41   : > { %8299 = vmatpush3.bf16.msra.mxu0 %v8298_v54  ;;  %1015 = vmatprep.mubr.f32.mxu0 %v716_v59 }
  0x42   : > { %946 = vmatmul.mubr.f32.gmra.mrb[6].mxu1 %v756_v17  ;;  %8301 = vmatprep.subr.bf16.mxu0 %v8300_v55  ;;  %v9279_v30 = vsub.s32 0, %v9271_v23 }
  0x44   : > { %v780_v35 = vrot.slane %v9282_v24, %v9279_v30 }
  0x45   : > { %8303 = vmatpush3.bf16.msra.mxu0 %v8302_v60 }
  0x46   : > { %8305 = vmatprep.subr.bf16.mxu0 %v8304_v61 }
  0x49   : > { %8307 = vmatpush3.bf16.msra.mxu0 %v8306_v3 }
  0x4a   : > { %8309 = vmatprep.subr.bf16.mxu0 %v8308_v4 }
  0x4d   : > { %8311 = vmatpush3.bf16.msra.mxu0 %v8310_v10 }
  0x4e   : > { %8313 = vmatprep.subr.bf16.mxu0 %v8312_v12 }
  0x51   : > { %8315 = vmatpush3.bf16.msra.mxu0 %v8314_v16 }
  0x54   : > { %1016 = vmatmul.mubr.f32.vlgmr.msra.gmra.mrb[8].mxu0 %v713_v22 }
  0x55   : > { %1020 = vmatprep.mubr.f32.mxu0 %v720_v27 }
  0x58   : > { %1021 = vmatmul.mubr.f32.gmra.mrb[10].mxu0 %v718_v53 }
  0x59   : > { %1025 = vmatprep.mubr.f32.mxu0 %v768_v31 }
  0x5c   : > { %1026 = vmatmul.mubr.f32.gmra.mrb[12].mxu0 %v765_v2 }
  0x5d   : > { %1030 = vmatprep.mubr.f32.mxu0 %v772_v20 }
  0x60   : > { %1031 = vmatmul.mubr.f32.gmra.mrb[14].mxu0 %v770_v33 }
 0x107   : > { %v6895_v34 = vpop.f32.mrb[0].mxu0 }
 0x108   : > { %v6896_v36 = vpop.f32.mrb[1].mxu0 }
 0x109   : > { %v6939_v37 = vpop.f32.mrb[0].mxu1  ;;  %v6897_v38 = vadd.f32 %v6896_v36, %v6895_v34 }
 0x10a   : > { %v6940_v39 = vpop.f32.mrb[1].mxu1 }
 0x10b   : > { %v6941_v40 = vadd.f32 %v6940_v39, %v6939_v37  ;;  %v848_v41 = vadd.f32 %v6897_v38, %v780_v35  ;;  %v6898_v42 = vpop.f32.mrb[2].mxu0 }
 0x10c   : > { %v6899_v43 = vpop.f32.mrb[3].mxu0 }
 0x10d   : > { %v6942_v44 = vpop.f32.mrb[2].mxu1  ;;  %v933_v45 = vadd.f32 %v6941_v40, %v848_v41  ;;  %v6900_v46 = vadd.f32 %v6899_v43, %v6898_v42 }
 0x10e   : > { %v6943_v47 = vpop.f32.mrb[3].mxu1 }
 0x10f   : > { %v6944_v48 = vadd.f32 %v6943_v47, %v6942_v44  ;;  %v853_v49 = vadd.f32 %v6900_v46, %v780_v35  ;;  %v6901_v50 = vpop.f32.mrb[4].mxu0  ;;  %v8969_v47 = vmov 0.0|0.0  }
 0x110   : > { %v6902_v51 = vpop.f32.mrb[5].mxu0  ;;  %8316 = vmatprep.subr.bf16.mxu1 %v8969_v47 }
 0x111   : > { %v6945_v54 = vpop.f32.mrb[4].mxu1  ;;  %v938_v55 = vadd.f32 %v6944_v48, %v853_v49  ;;  %v6903_v57 = vadd.f32 %v6902_v51, %v6901_v50 }
 0x112   : > { %v6946_v58 = vpop.f32.mrb[5].mxu1 }
 0x113   : > { %v6947_v17 = vadd.f32 %v6946_v58, %v6945_v54  ;;  %v858_v1 = vadd.f32 %v6903_v57, %v780_v35  ;;  %v6904_v18 = vpop.f32.mrb[6].mxu0 }
 0x114   : > { %v6905_v59 = vpop.f32.mrb[7].mxu0 }
 0x115   : > { %v6948_v60 = vpop.f32.mrb[6].mxu1  ;;  %v943_v61 = vadd.f32 %v6947_v17, %v858_v1  ;;  %v6906_v62 = vadd.f32 %v6905_v59, %v6904_v18 }
 0x116   : > { %v6949_v63 = vpop.f32.mrb[7].mxu1 }
 0x117   : > { %v6950_v0 = vadd.f32 %v6949_v63, %v6948_v60  ;;  %v863_v7 = vadd.f32 %v6906_v62, %v780_v35  ;;  %v8973_v60 = vmov 0.0  }
 0x118   : > { %7403 = vmatprep.mubr.msk.f32.mxu1 %vm8972_vm5, %v8973_v60 }
 0x119   : > { %v948_v3 = vadd.f32 %v6950_v0, %v863_v7 }
 0x127   : > { %v6983_v4 = vpop.f32.mrb[8].mxu0 }
 0x128   : > { %v6984_v5 = vpop.f32.mrb[9].mxu0 }
 0x129   : > { %v6985_v6 = vadd.f32 %v6984_v5, %v6983_v4 }
 0x12b   : > { %v1018_v8 = vadd.f32 %v6985_v6, %v933_v45  ;;  %v6986_v9 = vpop.f32.mrb[10].mxu0 }
 0x12c   : > { %v6987_v10 = vpop.f32.mrb[11].mxu0 }
 0x12d   : > { %v1036_v12 = vmax.f32 %v1018_v8, 0.0  ;;  %v6988_v13 = vadd.f32 %v6987_v10, %v6986_v9 }
 0x12f   : > { %v1065_v14 = vrot.slane %v1036_v12, 7  ;;  %v1023_v15 = vadd.f32 %v6988_v13, %v938_v55  ;;  %v6989_v16 = vpop.f32.mrb[12].mxu0 }
 0x130   : > { %v6990_v19 = vpop.f32.mrb[13].mxu0 }
 0x131   : > { %v9287_v21 = vsel %vm674_vm0, 0.0, %v1065_v14  ;;  %v1037_v22 = vmax.f32 %v1023_v15, 0.0  ;;  %v6991_v26 = vadd.f32 %v6990_v19, %v6989_v16  ;;  %v9327_v15 = vand.u32 127, %v777_v25 }
 0x132   : > { %v1096_v52 = vrot.slane %v9287_v21, 3  ;;  %v1074_v56 = vrot.slane %v9287_v21, 1  ;;  %v1084_v38 = vrot.slane %v9287_v21, 2  ;;  %v1060_v16 = vmul.u32 2, %v9271_v23 }
 0x133   : > { %v1066_v27 = vrot.slane %v1037_v22, 7  ;;  %v1028_v28 = vadd.f32 %v6991_v26, %v943_v61  ;;  %v6992_v29 = vpop.f32.mrb[14].mxu0 }
 0x134   : > { %v6993_v53 = vpop.f32.mrb[15].mxu0  ;;  %vm1061_vm11 = vcmp.eq.s32.totalorder %v9327_v15, %v1060_v16  ;;  %v1396_v16 = vld [vmem:[%s9393_s25] sm:$0xff] }
 0x135   : > { %v9292_v31 = vsel %vm674_vm0, %v1065_v14, %v1066_v27  ;;  %v1072_v32 = vsel %vm674_vm0, %v1066_v27, 0.0  ;;  %v1038_v2 = vmax.f32 %v1028_v28, 0.0  ;;  %v6994_v11 = vadd.f32 %v6993_v53, %v6992_v29 }
 0x136   : > { %v1087_v20 = vrot.slane %v1072_v32, 2  ;;  %v1099_v33 = vrot.slane %v1072_v32, 3  ;;  %v1097_v34 = vrot.slane %v9292_v31, 3  ;;  %v1075_v35 = vrot.slane %v9292_v31, 1 }
 0x137   : > { %v1195_v36 = vrot.slane %v1038_v2, 7  ;;  %v1033_v37 = vadd.f32 %v6994_v11, %v948_v3  ;;  %v1085_v39 = vrot.slane %v9292_v31, 2  ;;  %v1405_v11 = vld [vmem:[%s9393_s25 + $0x48] sm:$0xff] }
 0x138   : > { %v1098_v40 = vsel %vm1095_vm4, %v1096_v52, %v1097_v34  ;;  %v1100_v41 = vsel %vm1095_vm4, %v1097_v34, %v1099_v33  ;;  %v1076_v42 = vsel %vm695_vm2, %v1074_v56, %v1075_v35 }
 0x139   : > { %v9303_v43 = vsel %vm674_vm0, 0.0, %v1195_v36  ;;  %v1039_v44 = vmax.f32 %v1033_v37, 0.0  ;;  %v8936_v45 = vpack.i.bf16 %v1100_v41, %v1098_v40  ;;  %v8926_v46 = vpack.i.bf16 %v1075_v35, %v1076_v42  ;;  %v1041_v40 = vld [vmem:[%s9350_s21 + $0x8] sm:$0xff] }
 0x13a   : > { %v1086_v48 = vsel %vm710_vm3, %v1084_v38, %v1085_v39  ;;  %v1088_v49 = vsel %vm710_vm3, %v1085_v39, %v1087_v20  ;;  %v1204_v54 = vrot.slane %v9303_v43, 1  ;;  %v1214_v55 = vrot.slane %v9303_v43, 2  ;;  %v1040_v39 = vld [vmem:[%s9350_s21] sm:$0xff] }
 0x13b   : > { %v1196_v50 = vrot.slane %v1039_v44, 7  ;;  %8937 = vrot.lane.b32.xlu1 %v8936_v45, %s8970_s12  ;;  %8927 = vrot.lane.b32.xlu0 %v8926_v46, %s8971_s13  ;;  %v8931_v51 = vpack.i.bf16 %v1088_v49, %v1086_v48  ;;  %v1225_v7 = vrot.slane %v9303_v43, 3  ;;  %v9358_v37 = vsel %vm1061_vm11, 1.0, %v8973_v60 }
 0x13c   : > { %v8324_v48 = vpack.c.bf16 %v1041_v40, %v1040_v39 }
 0x13d   : > { %v1197_v57 = vsel %vm674_vm0, %v1195_v36, %v1196_v50  ;;  %v1202_v58 = vsel %vm674_vm0, %v1196_v50, 0.0  ;;  %v1042_v50 = vld [vmem:[%s9350_s21 + $0x10] sm:$0xff] }
 0x13e   : > { %v1217_v17 = vrot.slane %v1202_v58, 2  ;;  %v1228_v1 = vrot.slane %v1202_v58, 3  ;;  %v1205_v18 = vrot.slane %v1197_v57, 1  ;;  %v1215_v59 = vrot.slane %v1197_v57, 2 }
 0x13f   : > { %8932 = vrot.lane.b32.xlu0 %v8931_v51, %s8974_s14  ;;  %v1226_v61 = vrot.slane %v1197_v57, 3  ;;  %v1043_v51 = vld [vmem:[%s9350_s21 + $0x18] sm:$0xff] }
 0x140   : > { %v1206_v62 = vsel %vm695_vm2, %v1204_v54, %v1205_v18  ;;  %v1216_v63 = vsel %vm710_vm3, %v1214_v55, %v1215_v59  ;;  %v1218_v0 = vsel %vm710_vm3, %v1215_v59, %v1217_v17  ;;  %v8328_v54 = vpack.c.bf16 %v1043_v51, %v1042_v50  ;;  %v1044_v55 = vld [vmem:[%s9350_s21 + $0x20] sm:$0xff]  ;;  %v1046_v17 = vld [vmem:[%s9350_s21 + $0x30] sm:$0xff] }
 0x141   : > { %v8941_v3 = vpack.i.bf16 %v1205_v18, %v1206_v62  ;;  %v8946_v4 = vpack.i.bf16 %v1218_v0, %v1216_v63  ;;  %v1227_v5 = vsel %vm1095_vm4, %v1225_v7, %v1226_v61  ;;  %v1229_v6 = vsel %vm1095_vm4, %v1226_v61, %v1228_v1  ;;  %v1047_v1 = vld [vmem:[%s9350_s21 + $0x38] sm:$0xff]  ;;  %v1048_v59 = vld [vmem:[%s9350_s21 + $0x40] sm:$0xff]  ;;  %v1049_v61 = vld [vmem:[%s9350_s21 + $0x48] sm:$0xff] }
 0x142   : > { %v8951_v8 = vpack.i.bf16 %v1229_v6, %v1227_v5  ;;  %v8336_v18 = vpack.c.bf16 %v1047_v1, %v1046_v17  ;;  %v8340_v62 = vpack.c.bf16 %v1049_v61, %v1048_v59  ;;  %v1050_v63 = vld [vmem:[%s9350_s21 + $0x50] sm:$0xff]  ;;  %v1051_v0 = vld [vmem:[%s9350_s21 + $0x58] sm:$0xff] }
 0x143   : > { %8942 = vrot.lane.b32.xlu1 %v8941_v3, %s8971_s13  ;;  %8947 = vrot.lane.b32.xlu0 %v8946_v4, %s8974_s14  ;;  %v8344_v7 = vpack.c.bf16 %v1051_v0, %v1050_v63  ;;  %v1052_v3 = vld [vmem:[%s9350_s21 + $0x60] sm:$0xff]  ;;  %v1053_v4 = vld [vmem:[%s9350_s21 + $0x68] sm:$0xff] }
 0x144   : > { %v8348_v5 = vpack.c.bf16 %v1053_v4, %v1052_v3  ;;  %v1054_v6 = vld [vmem:[%s9350_s21 + $0x70] sm:$0xff] }
 0x147   : > { %8952 = vrot.lane.b32.xlu1 %v8951_v8, %s8970_s12  ;;  %v1055_v8 = vld [vmem:[%s9350_s21 + $0x78] sm:$0xff] }
 0x1ad   : > { %v8928_v9 = vpop.permute.xlu0 %8927  ;;  %v8938_v13 = vpop.permute.xlu1 %8937 }
 0x1ae   : > { %v8930_v10 = vunpack.i.h.bf16 %v8928_v9  ;;  %v8929_v12 = vunpack.i.l.bf16 %v8928_v9  ;;  %v8940_v26 = vunpack.i.h.bf16 %v8938_v13  ;;  %v8939_v27 = vunpack.i.l.bf16 %v8938_v13 }
 0x1af   : > { %v8352_v9 = vpack.c.bf16 %v1055_v8, %v1054_v6 }
 0x1b0   : > { %v1109_v28 = vsel %vm1107_vm6, %v9292_v31, %v8930_v10  ;;  %v1108_v29 = vsel %vm1107_vm6, %v9287_v21, %v8929_v12 }
 0x1b1   : > { %v8933_v14 = vpop.permute.xlu0 %8932 }
 0x1b2   : > { %v8935_v19 = vunpack.i.h.bf16 %v8933_v14  ;;  %v8934_v22 = vunpack.i.l.bf16 %v8933_v14 }
 0x1b4   : > { %v1111_v53 = vsel %vm1110_vm7, %v1108_v29, %v8934_v22  ;;  %v1112_v25 = vsel %vm1110_vm7, %v1109_v28, %v8935_v19  ;;  %v1397_v19 = vld [vmem:[%s9393_s25 + $0x8] sm:$0xff]  ;;  %v1398_v22 = vld [vmem:[%s9393_s25 + $0x10] sm:$0xff]  ;;  %v1400_v29 = vld [vmem:[%s9393_s25 + $0x20] sm:$0xff] }
 0x1b5   : > { %v1114_v52 = vsel %vm1113_vm8, %v1111_v53, %v8939_v27  ;;  %v1115_v56 = vsel %vm1113_vm8, %v1112_v25, %v8940_v26  ;;  %v8943_v32 = vpop.permute.xlu1 %8942  ;;  %v8948_v2 = vpop.permute.xlu0 %8947  ;;  %v8356_v26 = vpack.c.bf16 %v1397_v19, %v1396_v16  ;;  %v1399_v27 = vld [vmem:[%s9393_s25 + $0x18] sm:$0xff]  ;;  %v1401_v53 = vld [vmem:[%s9393_s25 + $0x28] sm:$0xff]  ;;  %v9448_v19 = vsub.s32 2, %v9271_v23 }
 0x1b6   : > { %v8317_v31 = vpack.c.bf16 %v1115_v56, %v1114_v52  ;;  %v8945_v21 = vunpack.i.h.bf16 %v8943_v32  ;;  %v8944_v20 = vunpack.i.l.bf16 %v8943_v32  ;;  %v8950_v33 = vunpack.i.h.bf16 %v8948_v2  ;;  %v1402_v52 = vld [vmem:[%s9393_s25 + $0x30] sm:$0xff]  ;;  %v1403_v56 = vld [vmem:[%s9393_s25 + $0x38] sm:$0xff] }
 0x1b7   : > { %v8949_v34 = vunpack.i.l.bf16 %v8948_v2  ;;  %v8360_v28 = vpack.c.bf16 %v1399_v27, %v1398_v22  ;;  %8357 = vmatprep.subr.bf16.mxu0 %v8356_v26  ;;  %v8364_v25 = vpack.c.bf16 %v1401_v53, %v1400_v29  ;;  %v8368_v32 = vpack.c.bf16 %v1403_v56, %v1402_v52  ;;  %v1404_v2 = vld [vmem:[%s9393_s25 + $0x40] sm:$0xff]  ;;  %v6508_v56 = vld [vmem:[%s9393_s25 + $0x68] sm:$0xff] }
 0x1b8   : > { %v1237_v35 = vsel %vm1107_vm6, %v1197_v57, %v8945_v21  ;;  %v1236_v36 = vsel %vm1107_vm6, %v9303_v43, %v8944_v20  ;;  %8319 = vmatpush3.bf16.msk.msra.mxu1 %vm9340_vm10, %v8317_v31  ;;  %v1045_v57 = vld [vmem:[%s9350_s21 + $0x28] sm:$0xff]  ;;  %8359 = vmatpush3.bf16.msra.mxu0 %v8356_v26  ;;  %v8372_v31 = vpack.c.bf16 %v1405_v11, %v1404_v2  ;;  %v9406_v21 = vsub.s32 1, %v9271_v23  ;;  %v6507_v52 = vld [vmem:[%s9393_s25 + $0x60] sm:$0xff]  ;;  %v6510_v11 = vld [vmem:[%s9393_s25 + $0x78] sm:$0xff] }
 0x1b9   : > { %v8953_v38 = vpop.permute.xlu1 %8952  ;;  %8320 = vmatprep.subr.bf16.mxu1 %v8969_v47  ;;  %v1239_v43 = vsel %vm1110_vm7, %v1237_v35, %v8950_v33  ;;  %v1238_v44 = vsel %vm1110_vm7, %v1236_v36, %v8949_v34  ;;  %v8332_v58 = vpack.c.bf16 %v1045_v57, %v1044_v55  ;;  %8361 = vmatprep.subr.bf16.mxu0 %v8360_v28  ;;  %v1406_v34 = vld [vmem:[%s9393_s25 + $0x50] sm:$0xff]  ;;  %v1407_v35 = vld [vmem:[%s9393_s25 + $0x58] sm:$0xff] }
 0x1ba   : > { %v8955_v41 = vunpack.i.h.bf16 %v8953_v38  ;;  %v8954_v42 = vunpack.i.l.bf16 %v8953_v38  ;;  %v1318_v20 = vrot.slane %v9282_v24, %v9406_v21  ;;  %v8376_v39 = vpack.c.bf16 %v1407_v35, %v1406_v34  ;;  %v6513_v35 = vld [vmem:[%s9393_s25 + $0x90] sm:$0xff] }
 0x1bb   : > { %7404 = vmatmul.mubr.msk.f32.vlgmr.msra.gmra.mrb[8].mxu1 %vm1116_vm12, %v9358_v37  ;;  %v1455_v22 = vrot.slane %v9282_v24, %v9448_v19  ;;  %v8388_v2 = vpack.c.bf16 %v6508_v56, %v6507_v52 }
 0x1bc   : > { %v1240_v45 = vsel %vm1113_vm8, %v1238_v44, %v8954_v42  ;;  %v1241_v46 = vsel %vm1113_vm8, %v1239_v43, %v8955_v41  ;;  %7410 = vmatprep.mubr.msk.f32.mxu1 %vm8972_vm5, %v8973_v60  ;;  %8363 = vmatpush3.bf16.msra.mxu0 %v8360_v28 }
 0x1bd   : > { %v8321_v49 = vpack.c.bf16 %v1241_v46, %v1240_v45  ;;  %8365 = vmatprep.subr.bf16.mxu0 %v8364_v25  ;;  %v1539_v45 = vld [vmem:[%s9423_s28] sm:$0xff]  ;;  %v1540_v46 = vld [vmem:[%s9423_s28 + $0x8] sm:$0xff] }
 0x1bf   : > { %8323 = vmatpush3.bf16.msk.msra.mxu1 %vm9340_vm10, %v8321_v49  ;;  %v8380_v49 = vpack.c.bf16 %v1540_v46, %v1539_v45  ;;  %vm3467_vm10 = vcmask 269312  }
 0x1c0   : > { %8325 = vmatprep.subr.bf16.mxu1 %v8324_v48  ;;  %8367 = vmatpush3.bf16.msra.mxu0 %v8364_v25  ;;  %vm9923_vm11 = vmpackc.low %vm3467_vm10, %vm3467_vm10 }
 0x1c1   : > { %8369 = vmatprep.subr.bf16.mxu0 %v8368_v32 }
 0x1c2   : > { %7411 = vmatmul.mubr.msk.f32.vlgmr.msra.gmra.mrb[10].mxu1 %vm1116_vm12, %v9358_v37  ;;  %vm3566_vm12 = vcmask 519168  }
 0x1c3   : > { %8327 = vmatpush3.bf16.msra.mxu1 %v8324_v48 }
 0x1c4   : > { %8329 = vmatprep.subr.bf16.mxu1 %v8328_v54  ;;  %8371 = vmatpush3.bf16.msra.mxu0 %v8368_v32  ;;  %v6509_v32 = vld [vmem:[%s9393_s25 + $0x70] sm:$0xff] }
 0x1c5   : > { %8373 = vmatprep.subr.bf16.mxu0 %v8372_v31 }
 0x1c7   : > { %8331 = vmatpush3.bf16.msra.mxu1 %v8328_v54 }
 0x1c8   : > { %8333 = vmatprep.subr.bf16.mxu1 %v8332_v58  ;;  %8375 = vmatpush3.bf16.msra.mxu0 %v8372_v31  ;;  %v8392_v31 = vpack.c.bf16 %v6510_v11, %v6509_v32  ;;  %v6523_v32 = vld [vmem:[%s9423_s28 + $0x30] sm:$0xff] }
 0x1c9   : > { %8377 = vmatprep.subr.bf16.mxu0 %v8376_v39 }
 0x1cb   : > { %8335 = vmatpush3.bf16.msra.mxu1 %v8332_v58 }
 0x1cc   : > { %8337 = vmatprep.subr.bf16.mxu1 %v8336_v18  ;;  %8379 = vmatpush3.bf16.msra.mxu0 %v8376_v39 }
 0x1cd   : > { %8389 = vmatprep.subr.bf16.mxu0 %v8388_v2 }
 0x1cf   : > { %8339 = vmatpush3.bf16.msra.mxu1 %v8336_v18 }
 0x1d0   : > { %8341 = vmatprep.subr.bf16.mxu1 %v8340_v62 }
 0x1d3   : > { %8343 = vmatpush3.bf16.msra.mxu1 %v8340_v62 }
 0x1d4   : > { %8345 = vmatprep.subr.bf16.mxu1 %v8344_v7 }
 0x1d7   : > { %8347 = vmatpush3.bf16.msra.mxu1 %v8344_v7 }
 0x1d8   : > { %8349 = vmatprep.subr.bf16.mxu1 %v8348_v5 }
 0x1db   : > { %8351 = vmatpush3.bf16.msra.mxu1 %v8348_v5 }
 0x1dc   : > { %8353 = vmatprep.subr.bf16.mxu1 %v8352_v9 }
 0x1df   : > { %8355 = vmatpush3.bf16.msra.mxu1 %v8352_v9 }
 0x1e0   : > { %8381 = vmatprep.subr.bf16.mxu1 %v8380_v49 }
 0x28e   : > { %v1189_v10 = vpop.f32.mrb[8].mxu1 }
 0x28f   : > { %v7405_v12 = vpop.f32.mrb[9].mxu1  ;;  %7445 = vmatprep.mubr.f32.mxu1 %v1189_v10 }
 0x295   : > { %v1311_v13 = vpop.f32.mrb[10].mxu1 }
 0x296   : > { %7446 = vmatmul.mubr.f32.vlgmr.msra.gmra.mrb[12].mxu1 %v1311_v13  ;;  %v7412_v14 = vpop.f32.mrb[11].mxu1  ;;  %v1541_v13 = vld [vmem:[%s9423_s28 + $0x10] sm:$0xff] }
 0x297   : > { %8383 = vmatpush3.bf16.msra.mxu1 %v8380_v49  ;;  %v1542_v14 = vld [vmem:[%s9423_s28 + $0x18] sm:$0xff] }
 0x298   : > { %v8384_v16 = vpack.c.bf16 %v1542_v14, %v1541_v13 }
 0x29a   : > { %8385 = vmatprep.subr.bf16.mxu1 %v8384_v16 }
 0x29b   : > { %8387 = vmatpush3.bf16.msra.mxu1 %v8384_v16 }
 0x369   : > { %v7447_v33 = vpop.f32.mrb[12].mxu1 }
 0x36a   : > { %v9412_v36 = vadd.f32 %v7447_v33, %v1318_v20  ;;  %v1385_v38 = vpop.f32.mrb[13].mxu1  ;;  %v6512_v33 = vld [vmem:[%s9393_s25 + $0x88] sm:$0xff] }
 0x36b   : > { %v9414_v40 = vadd.f32 %v1385_v38, %v1318_v20  ;;  %v6511_v20 = vld [vmem:[%s9393_s25 + $0x80] sm:$0xff]  ;;  %v6514_v38 = vld [vmem:[%s9393_s25 + $0x98] sm:$0xff] }
 0x36c   : > { %v1395_v41 = vmax.f32 %v9412_v36, 0.0  ;;  %v8396_v34 = vpack.c.bf16 %v6512_v33, %v6511_v20  ;;  %v8400_v39 = vpack.c.bf16 %v6514_v38, %v6513_v35 }
 0x36d   : > { %v1394_v42 = vmax.f32 %v9414_v40, 0.0 }
 0x36e   : > { %v1432_v43 = vrot.slane %v1395_v41, 5  ;;  %v6515_v41 = vld [vmem:[%s9393_s25 + $0xa0] sm:$0xff] }
 0x36f   : > { %v1409_v44 = vrot.slane %v1394_v42, 5  ;;  %v6516_v42 = vld [vmem:[%s9393_s25 + $0xa8] sm:$0xff] }
 0x370   : > { %v1435_v48 = vsel %vm1411_vm13, %v1432_v43, 0.0  ;;  %v1434_v50 = vsel %vm1411_vm13, 0.0, %v1432_v43  ;;  %v8404_v43 = vpack.c.bf16 %v6516_v42, %v6515_v41  ;;  %v9515_v42 = vsub.s32 5, %v9271_v23 }
 0x371   : > { %v1412_v51 = vsel %vm1411_vm13, 0.0, %v1409_v44  ;;  %v1413_v54 = vsel %vm1411_vm13, %v1409_v44, 0.0  ;;  %v1439_v1 = vrot.slane %v1435_v48, 3  ;;  %v1445_v18 = vrot.slane %v1435_v48, 6 }
 0x372   : > { %v1417_v55 = vrot.slane %v1413_v54, 3  ;;  %v1424_v57 = vrot.slane %v1413_v54, 6  ;;  %v1416_v58 = vrot.slane %v1412_v51, 3  ;;  %v1423_v17 = vrot.slane %v1412_v51, 6 }
 0x373   : > { %v1438_v62 = vrot.slane %v1434_v50, 3  ;;  %v1444_v63 = vrot.slane %v1434_v50, 6  ;;  %v9465_v44 = vsub.s32 3, %v9271_v23 }
 0x374   : > { %v1418_v59 = vsel %vm1095_vm4, %v1416_v58, %v1417_v55  ;;  %v1425_v61 = vsel %vm1422_vm14, %v1423_v17, %v1424_v57 }
 0x375   : > { %1419 = vrot.lane.b32.xlu0 %v1418_v59, %s8971_s13  ;;  %1426 = vrot.lane.b32.xlu1 %v1425_v61, %s8974_s14  ;;  %v1440_v0 = vsel %vm1095_vm4, %v1438_v62, %v1439_v1  ;;  %v1446_v7 = vsel %vm1422_vm14, %v1444_v63, %v1445_v18  ;;  %v1546_v45 = vrot.slane %v9282_v24, %v9465_v44  ;;  %v6521_v59 = vld [vmem:[%s9423_s28 + $0x20] sm:$0xff]  ;;  %v6522_v61 = vld [vmem:[%s9423_s28 + $0x28] sm:$0xff] }
 0x376   : > { %v8412_v63 = vpack.c.bf16 %v6522_v61, %v6521_v59 }
 0x378   : > { %8413 = vmatprep.subr.bf16.mxu1 %v8412_v63 }
 0x379   : > { %1441 = vrot.lane.b32.xlu0 %v1440_v0, %s8971_s13  ;;  %1447 = vrot.lane.b32.xlu1 %v1446_v7, %s8974_s14 }
 0x3e7   : > { %v1420_v3 = vpop.permute.xlu0 %1419  ;;  %v1427_v4 = vpop.permute.xlu1 %1426 }
 0x3e8   : > { %v1429_v5 = vsel %vm1107_vm6, %v1412_v51, %v1420_v3  ;;  %v6518_v51 = vld [vmem:[%s9393_s25 + $0xb8] sm:$0xff] }
 0x3e9   : > { %v1430_v6 = vsel %vm1110_vm7, %v1429_v5, %v1427_v4 }
 0x3ea   : > { %7472 = vmatprep.mubr.msk.f32.mxu0 %vm1113_vm8, %v1430_v6 }
 0x3eb   : > { %v1442_v8 = vpop.permute.xlu0 %1441  ;;  %v1448_v9 = vpop.permute.xlu1 %1447 }
 0x3ec   : > { %v1450_v10 = vsel %vm1107_vm6, %v1434_v50, %v1442_v8  ;;  %v6517_v50 = vld [vmem:[%s9393_s25 + $0xb0] sm:$0xff] }
 0x3ed   : > { %v1451_v12 = vsel %vm1110_vm7, %v1450_v10, %v1448_v9  ;;  %v8408_v55 = vpack.c.bf16 %v6518_v51, %v6517_v50 }
 0x3ee   : > { %7473 = vmatmul.mubr.msk.f32.vlgmr.msra.gmra.mrb[16].mxu0 %vm1113_vm8, %v1451_v12 }
 0x3ef   : > { %8391 = vmatpush3.bf16.msra.mxu0 %v8388_v2  ;;  %v6524_v2 = vld [vmem:[%s9423_s28 + $0x38] sm:$0xff] }
 0x3f0   : > { %8393 = vmatprep.subr.bf16.mxu0 %v8392_v31  ;;  %v8416_v11 = vpack.c.bf16 %v6524_v2, %v6523_v32  ;;  %v6530_v32 = vld [vmem:[%s9350_s21 + $0x98] sm:$0xff] }
 0x3f3   : > { %8395 = vmatpush3.bf16.msra.mxu0 %v8392_v31  ;;  %v9506_v31 = vsub.s32 4, %v9271_v23 }
 0x3f4   : > { %8397 = vmatprep.subr.bf16.mxu0 %v8396_v34 }
 0x3f5   : > { %v1690_v20 = vrot.slane %v9282_v24, %v9506_v31 }
 0x3f7   : > { %8399 = vmatpush3.bf16.msra.mxu0 %v8396_v34 }
 0x3f8   : > { %8401 = vmatprep.subr.bf16.mxu0 %v8400_v39 }
 0x3fb   : > { %8403 = vmatpush3.bf16.msra.mxu0 %v8400_v39 }
 0x3fc   : > { %8405 = vmatprep.subr.bf16.mxu0 %v8404_v43 }
 0x3ff   : > { %8407 = vmatpush3.bf16.msra.mxu0 %v8404_v43  ;;  %v1782_v43 = vrot.slane %v9282_v24, %v9515_v42 }
 0x400   : > { %8409 = vmatprep.subr.bf16.mxu0 %v8408_v55 }
 0x403   : > { %8411 = vmatpush3.bf16.msra.mxu0 %v8408_v55 }
 0x404   : > { %8444 = vmatprep.subr.bf16.mxu0 %v8969_v47 }
 0x4c1   : > { %v7474_v26 = vpop.f32.mrb[16].mxu0 }
 0x4c2   : > { %v1534_v27 = vadd.f32 %v7474_v26, %v1455_v22  ;;  %v1528_v28 = vpop.f32.mrb[17].mxu0 }
 0x4c3   : > { %v1529_v29 = vadd.f32 %v1528_v28, %v1455_v22 }
 0x4c4   : > { %v1538_v25 = vmax.f32 %v1534_v27, 0.0 }
 0x4c5   : > { %v1537_v53 = vmax.f32 %v1529_v29, 0.0 }
 0x4c7   : > { %7483 = vmatprep.mubr.msk.f32.mxu1 %vm1107_vm6, %v1537_v53 }
 0x4c8   : > { %7484 = vmatmul.mubr.msk.f32.vlgmr.msra.gmra.mrb[14].mxu1 %vm1107_vm6, %v1538_v25 }
 0x4c9   : > { %8415 = vmatpush3.bf16.msra.mxu1 %v8412_v63 }
 0x4ca   : > { %8417 = vmatprep.subr.bf16.mxu1 %v8416_v11 }
 0x4cd   : > { %8419 = vmatpush3.bf16.msra.mxu1 %v8416_v11  ;;  %v6531_v11 = vld [vmem:[%s9350_s21 + $0xa0] sm:$0xff] }
 0x4ce   : > { %7524 = vmatprep.subr.mxu1 %v8973_v60 }
 0x59b   : > { %v7485_v46 = vpop.f32.mrb[14].mxu1 }
 0x59c   : > { %v1625_v48 = vadd.f32 %v7485_v46, %v1546_v45  ;;  %v1619_v49 = vpop.f32.mrb[15].mxu1 }
 0x59d   : > { %v1620_v54 = vadd.f32 %v1619_v49, %v1546_v45 }
 0x59e   : > { %v9472_v57 = vadd.f32 %v1625_v48, %v9412_v36 }
 0x59f   : > { %v9475_v58 = vadd.f32 %v1620_v54, %v9414_v40 }
 0x5a0   : > { %v1631_v17 = vmax.f32 %v9472_v57, 0.0 }
 0x5a1   : > { %v1630_v1 = vmax.f32 %v9475_v58, 0.0 }
 0x5a2   : > { %v1667_v18 = vrot.slane %v1631_v17, 7 }
 0x5a3   : > { %v1646_v62 = vrot.slane %v1630_v1, 7 }
 0x5a4   : > { %v1669_v0 = vsel %vm674_vm0, 0.0, %v1667_v18  ;;  %v1670_v36 = vsel %vm674_vm0, %v1667_v18, 0.0 }
 0x5a5   : > { %v1648_v40 = vsel %vm674_vm0, 0.0, %v1646_v62  ;;  %v1649_v7 = vsel %vm674_vm0, %v1646_v62, 0.0  ;;  %v1679_v8 = vrot.slane %v1669_v0, 2  ;;  %v1680_v9 = vrot.slane %v1670_v36, 2 }
 0x5a6   : > { %v1658_v3 = vrot.slane %v1648_v40, 2  ;;  %v1659_v4 = vrot.slane %v1649_v7, 2  ;;  %v1652_v5 = vrot.slane %v1648_v40, 1  ;;  %v1653_v6 = vrot.slane %v1649_v7, 1 }
 0x5a7   : > { %v1673_v13 = vrot.slane %v1669_v0, 1  ;;  %v1674_v14 = vrot.slane %v1670_v36, 1  ;;  %v1681_v16 = vsel %vm710_vm3, %v1679_v8, %v1680_v9 }
 0x5a8   : > { %v1660_v10 = vsel %vm710_vm3, %v1658_v3, %v1659_v4  ;;  %v1654_v12 = vsel %vm695_vm2, %v1652_v5, %v1653_v6 }
 0x5a9   : > { %1661 = vrot.lane.b32.xlu1 %v1660_v10, %s8974_s14  ;;  %1655 = vrot.lane.b32.xlu0 %v1654_v12, %s8971_s13  ;;  %v1675_v22 = vsel %vm695_vm2, %v1673_v13, %v1674_v14 }
 0x5ad   : > { %1682 = vrot.lane.b32.xlu1 %v1681_v16, %s8974_s14  ;;  %1676 = vrot.lane.b32.xlu0 %v1675_v22, %s8971_s13  ;;  %v6527_v22 = vld [vmem:[%s9350_s21 + $0x80] sm:$0xff] }
 0x61b   : > { %v1662_v26 = vpop.permute.xlu1 %1661  ;;  %v1656_v27 = vpop.permute.xlu0 %1655 }
 0x61c   : > { %v1664_v28 = vsel %vm1107_vm6, %v1648_v40, %v1656_v27 }
 0x61d   : > { %v1665_v29 = vsel %vm1110_vm7, %v1664_v28, %v1662_v26  ;;  %v6528_v26 = vld [vmem:[%s9350_s21 + $0x88] sm:$0xff] }
 0x61e   : > { %7510 = vmatprep.mubr.msk.f32.mxu0 %vm1113_vm8, %v1665_v29 }
 0x61f   : > { %v1683_v53 = vpop.permute.xlu1 %1682  ;;  %v1677_v25 = vpop.permute.xlu0 %1676 }
 0x620   : > { %v1685_v52 = vsel %vm1107_vm6, %v1669_v0, %v1677_v25  ;;  %v8421_v25 = vpack.c.bf16 %v6528_v26, %v6527_v22 }
 0x621   : > { %v1686_v56 = vsel %vm1110_vm7, %v1685_v52, %v1683_v53 }
 0x622   : > { %7511 = vmatmul.mubr.msk.f32.vlgmr.msra.gmra.mrb[18].mxu0 %vm1113_vm8, %v1686_v56  ;;  %v6529_v56 = vld [vmem:[%s9350_s21 + $0x90] sm:$0xff] }
 0x623   : > { %7593 = vmatprep.mubr.msk.f32.mxu0 %vm8972_vm5, %v8973_v60  ;;  %v8424_v2 = vpack.c.bf16 %v6530_v32, %v6529_v56  ;;  %v6560_v32 = vld [vmem:[%s9423_s28 + $0x40] sm:$0xff] }
 0x6f5   : > { %v7512_v33 = vpop.f32.mrb[18].mxu0 }
 0x6f6   : > { %v1769_v34 = vadd.f32 %v7512_v33, %v1690_v20  ;;  %v1763_v35 = vpop.f32.mrb[19].mxu0 }
 0x6f7   : > { %v1764_v38 = vadd.f32 %v1763_v35, %v1690_v20  ;;  %v6532_v20 = vld [vmem:[%s9350_s21 + $0xa8] sm:$0xff]  ;;  %v6534_v35 = vld [vmem:[%s9350_s21 + $0xb8] sm:$0xff] }
 0x6f8   : > { %v1773_v41 = vmax.f32 %v1769_v34, 0.0  ;;  %v8427_v33 = vpack.c.bf16 %v6532_v20, %v6531_v11  ;;  %v6533_v34 = vld [vmem:[%s9350_s21 + $0xb0] sm:$0xff] }
 0x6f9   : > { %v1772_v39 = vmax.f32 %v1764_v38, 0.0  ;;  %v8430_v38 = vpack.c.bf16 %v6534_v35, %v6533_v34  ;;  %v9611_v34 = vrot.slane %v8973_v60, 6 }
 0x6fb   : > { %7521 = vmatprep.mubr.msk.f32.mxu1 %vm1107_vm6, %v1772_v39  ;;  %v6535_v39 = vld [vmem:[%s9350_s21 + $0xc0] sm:$0xff] }
 0x6fc   : > { %7522 = vmatmul.mubr.msk.f32.vlgmr.msra.gmra.mrb[16].mxu1 %vm1107_vm6, %v1773_v41  ;;  %v6536_v41 = vld [vmem:[%s9350_s21 + $0xc8] sm:$0xff] }
 0x6fd   : > { %7526 = vmatprep.mubr.msk.f32.mxu1 %vm8972_vm5, %v8973_v60 }
 0x7cf   : > { %v7523_v45 = vpop.f32.mrb[16].mxu1 }
 0x7d0   : > { %v1861_v46 = vadd.f32 %v7523_v45, %v1782_v43  ;;  %v1855_v48 = vpop.f32.mrb[17].mxu1  ;;  %v6537_v45 = vld [vmem:[%s9350_s21 + $0xd0] sm:$0xff] }
 0x7d1   : > { %v1856_v49 = vadd.f32 %v1855_v48, %v1782_v43  ;;  %v8433_v43 = vpack.c.bf16 %v6536_v41, %v6535_v39 }
 0x7d2   : > { %v1865_v50 = vadd.f32 %v1861_v46, %v9472_v57  ;;  %v6538_v46 = vld [vmem:[%s9350_s21 + $0xd8] sm:$0xff] }
 0x7d3   : > { %v1864_v51 = vadd.f32 %v1856_v49, %v9475_v58  ;;  %v8436_v48 = vpack.c.bf16 %v6538_v46, %v6537_v45  ;;  %v6539_v49 = vld [vmem:[%s9350_s21 + $0xe0] sm:$0xff] }
 0x7d4   : > { %v1986_v55 = vrot.slane %v1865_v50, 7  ;;  %v6540_v50 = vld [vmem:[%s9350_s21 + $0xe8] sm:$0xff] }
 0x7d5   : > { %v1884_v54 = vrot.slane %v1864_v51, 7  ;;  %v8439_v51 = vpack.c.bf16 %v6540_v50, %v6539_v49 }
 0x7d6   : > { %v1988_v24 = vsel %vm674_vm0, 0.0, %v1986_v55  ;;  %v1989_v0 = vsel %vm674_vm0, %v1986_v55, 0.0  ;;  %v6542_v55 = vld [vmem:[%s9350_s21 + $0xf8] sm:$0xff] }
 0x7d7   : > { %v1886_v17 = vsel %vm674_vm0, 0.0, %v1884_v54  ;;  %v1887_v1 = vsel %vm674_vm0, %v1884_v54, 0.0  ;;  %v1997_v58 = vrot.slane %v1989_v0, 2  ;;  %v1991_v40 = vrot.slane %v1988_v24, 1  ;;  %v6541_v54 = vld [vmem:[%s9350_s21 + $0xf0] sm:$0xff] }
 0x7d8   : > { %v1895_v18 = vrot.slane %v1887_v1, 2  ;;  %v1889_v59 = vrot.slane %v1886_v17, 1  ;;  %v1894_v61 = vrot.slane %v1886_v17, 2  ;;  %v1901_v62 = vrot.slane %v1887_v1, 3 }
 0x7d9   : > { %v1900_v63 = vrot.slane %v1886_v17, 3  ;;  %v1996_v7 = vrot.slane %v1988_v24, 2  ;;  %v2003_v3 = vrot.slane %v1989_v0, 3  ;;  %v2002_v4 = vrot.slane %v1988_v24, 3  ;;  %v6548_v0 = vld [vmem:[%s9393_s25 + $0xc8] sm:$0xff] }
 0x7da   : > { %1890 = vrot.lane.b32.xlu0 %v1889_v59, %s8971_s13  ;;  %v1896_v57 = vsel %vm710_vm3, %v1894_v61, %v1895_v18 }
 0x7db   : > { %1897 = vrot.lane.b32.xlu1 %v1896_v57, %s8974_s14  ;;  %v1902_v36 = vsel %vm1095_vm4, %v1900_v63, %v1901_v62  ;;  %v1998_v5 = vsel %vm710_vm3, %v1996_v7, %v1997_v58  ;;  %v2004_v6 = vsel %vm1095_vm4, %v2002_v4, %v2003_v3  ;;  %v6549_v57 = vld [vmem:[%s9393_s25 + $0xd0] sm:$0xff]  ;;  %v6551_v7 = vld [vmem:[%s9393_s25 + $0xe0] sm:$0xff]  ;;  %v6552_v3 = vld [vmem:[%s9393_s25 + $0xe8] sm:$0xff] }
 0x7dc   : > { %v8451_v4 = vpack.c.bf16 %v6552_v3, %v6551_v7  ;;  %v6565_v3 = vld [vmem:[%s9393_s25 + $0x120] sm:$0xff] }
 0x7de   : > { %1903 = vrot.lane.b32.xlu0 %v1902_v36, %s8970_s12  ;;  %v6550_v36 = vld [vmem:[%s9393_s25 + $0xd8] sm:$0xff] }
 0x7df   : > { %1992 = vrot.lane.b32.xlu1 %v1991_v40, %s8971_s13  ;;  %v8448_v40 = vpack.c.bf16 %v6550_v36, %v6549_v57 }
 0x7e2   : > { %1999 = vrot.lane.b32.xlu0 %v1998_v5, %s8974_s14  ;;  %v6553_v5 = vld [vmem:[%s9393_s25 + $0xf0] sm:$0xff] }
 0x7e3   : > { %2005 = vrot.lane.b32.xlu1 %v2004_v6, %s8970_s12  ;;  %v6554_v6 = vld [vmem:[%s9393_s25 + $0xf8] sm:$0xff] }
 0x84c   : > { %v1891_v8 = vpop.permute.xlu0 %1890 }
 0x84d   : > { %v1906_v9 = vsel %vm1107_vm6, %v1886_v17, %v1891_v8  ;;  %v1898_v10 = vpop.permute.xlu1 %1897  ;;  %v8442_v17 = vpack.c.bf16 %v6542_v55, %v6541_v54  ;;  %v8454_v8 = vpack.c.bf16 %v6554_v6, %v6553_v5  ;;  %v6567_v5 = vld [vmem:[%s9393_s25 + $0x130] sm:$0xff] }
 0x84e   : > { %v1907_v12 = vsel %vm1110_vm7, %v1906_v9, %v1898_v10  ;;  %v9593_v9 = vsub.s32 6, %v9271_v23  ;;  %v8960_v10 = vld [vmem:[%s9276_s30] sm:$0xff] }
 0x850   : > { %v1904_v13 = vpop.permute.xlu0 %1903 }
 0x851   : > { %v1908_v14 = vsel %vm1113_vm8, %v1907_v12, %v1904_v13  ;;  %v1993_v16 = vpop.permute.xlu1 %1992  ;;  %v2092_v12 = vrot.slane %v8960_v10, %v9593_v9  ;;  %v6555_v13 = vld [vmem:[%s9393_s25 + $0x100] sm:$0xff] }
 0x852   : > { %7525 = vmatpush3.msk.msra.mxu1 %vm695_vm2, %v1908_v14  ;;  %v2008_v27 = vsel %vm1107_vm6, %v1988_v24, %v1993_v16  ;;  %v6547_v24 = vld [vmem:[%s9393_s25 + $0xc0] sm:$0xff]  ;;  %v6556_v14 = vld [vmem:[%s9393_s25 + $0x108] sm:$0xff] }
 0x853   : > { %7527 = vmatmul.mubr.msk.f32.vlgmr.msra.gmra.mrb[18].mxu1 %vm1909_vm15, %v9358_v37  ;;  %7529 = vmatprep.subr.mxu1 %v8973_v60  ;;  %v8445_v58 = vpack.c.bf16 %v6548_v0, %v6547_v24  ;;  %v8457_v16 = vpack.c.bf16 %v6556_v14, %v6555_v13  ;;  %v9636_v0 = vsub.s32 7, %v9271_v23  ;;  %v6570_v13 = vld [vmem:[%s9393_s25 + $0x148] sm:$0xff] }
 0x854   : > { %v2000_v28 = vpop.permute.xlu0 %1999  ;;  %7531 = vmatprep.mubr.msk.f32.mxu1 %vm8972_vm5, %v8973_v60 }
 0x855   : > { %v2009_v29 = vsel %vm1110_vm7, %v2008_v27, %v2000_v28  ;;  %v2006_v53 = vpop.permute.xlu1 %2005  ;;  %8446 = vmatpush3.bf16.msra.mxu0 %v8445_v58  ;;  %v6557_v28 = vld [vmem:[%s9393_s25 + $0x110] sm:$0xff]  ;;  %v2219_v57 = vrot.slane %v8960_v10, %v9636_v0 }
 0x856   : > { %v2010_v52 = vsel %vm1113_vm8, %v2009_v29, %v2006_v53  ;;  %8447 = vmatprep.subr.bf16.mxu0 %v8969_v47  ;;  %v6558_v29 = vld [vmem:[%s9393_s25 + $0x118] sm:$0xff] }
 0x857   : > { %7530 = vmatpush3.msk.msra.mxu1 %vm695_vm2, %v2010_v52  ;;  %v8460_v53 = vpack.c.bf16 %v6558_v29, %v6557_v28  ;;  %v9655_v28 = vld [vmem:[%s9276_s30 + $0x8] sm:$0xff] }
 0x858   : > { %7532 = vmatmul.mubr.msk.f32.vlgmr.msra.gmra.mrb[20].mxu1 %vm1909_vm15, %v9358_v37  ;;  %8420 = vmatprep.subr.bf16.mxu1 %v8969_v47  ;;  %v2302_v29 = vrot.slane %v9655_v28, %v9279_v30 }
 0x859   : > { %8422 = vmatpush3.bf16.msra.mxu1 %v8421_v25  ;;  %7566 = vmatprep.mubr.msk.f32.mxu1 %vm8972_vm5, %v8973_v60 }
 0x85a   : > { %8423 = vmatprep.subr.bf16.mxu1 %v8969_v47  ;;  %8449 = vmatpush3.bf16.msra.mxu0 %v8448_v40 }
 0x85b   : > { %8450 = vmatprep.subr.bf16.mxu0 %v8969_v47 }
 0x85d   : > { %8425 = vmatpush3.bf16.msra.mxu1 %v8424_v2  ;;  %v6561_v2 = vld [vmem:[%s9423_s28 + $0x48] sm:$0xff] }
 0x85e   : > { %8426 = vmatprep.subr.bf16.mxu1 %v8969_v47  ;;  %8452 = vmatpush3.bf16.msra.mxu0 %v8451_v4  ;;  %v8463_v11 = vpack.c.bf16 %v6561_v2, %v6560_v32  ;;  %v6566_v4 = vld [vmem:[%s9393_s25 + $0x128] sm:$0xff] }
 0x85f   : > { %8453 = vmatprep.subr.bf16.mxu0 %v8969_v47  ;;  %v8469_v6 = vpack.c.bf16 %v6566_v4, %v6565_v3  ;;  %v2429_v4 = vrot.slane %v9655_v28, %v9406_v21 }
 0x861   : > { %8428 = vmatpush3.bf16.msra.mxu1 %v8427_v33 }
 0x862   : > { %8429 = vmatprep.subr.bf16.mxu1 %v8969_v47  ;;  %8455 = vmatpush3.bf16.msra.mxu0 %v8454_v8  ;;  %v6568_v8 = vld [vmem:[%s9393_s25 + $0x138] sm:$0xff] }
 0x863   : > { %8456 = vmatprep.subr.bf16.mxu0 %v8969_v47  ;;  %v8472_v10 = vpack.c.bf16 %v6568_v8, %v6567_v5 }
 0x865   : > { %8431 = vmatpush3.bf16.msra.mxu1 %v8430_v38 }
 0x866   : > { %8432 = vmatprep.subr.bf16.mxu1 %v8969_v47  ;;  %8458 = vmatpush3.bf16.msra.mxu0 %v8457_v16  ;;  %v6571_v16 = vld [vmem:[%s9393_s25 + $0x150] sm:$0xff] }
 0x867   : > { %8459 = vmatprep.subr.bf16.mxu0 %v8969_v47 }
 0x869   : > { %8434 = vmatpush3.bf16.msra.mxu1 %v8433_v43 }
 0x86a   : > { %8435 = vmatprep.subr.bf16.mxu1 %v8969_v47  ;;  %8461 = vmatpush3.bf16.msra.mxu0 %v8460_v53  ;;  %v6573_v53 = vld [vmem:[%s9393_s25 + $0x160] sm:$0xff] }
 0x86b   : > { %8486 = vmatprep.subr.bf16.mxu0 %v8969_v47 }
 0x86d   : > { %8437 = vmatpush3.bf16.msra.mxu1 %v8436_v48 }
 0x86e   : > { %8438 = vmatprep.subr.bf16.mxu1 %v8969_v47 }
 0x871   : > { %8440 = vmatpush3.bf16.msra.mxu1 %v8439_v51 }
 0x872   : > { %8441 = vmatprep.subr.bf16.mxu1 %v8969_v47 }
 0x875   : > { %8443 = vmatpush3.bf16.msra.mxu1 %v8442_v17 }
 0x876   : > { %8462 = vmatprep.subr.bf16.mxu1 %v8969_v47 }
 0x926   : > { %v1981_v1 = vpop.f32.mrb[18].mxu1 }
 0x927   : > { %v7528_v18 = vpop.f32.mrb[19].mxu1 }
 0x92b   : > { %v2080_v59 = vpop.f32.mrb[20].mxu1 }
 0x92c   : > { %v2085_v61 = vrot.slane %v2080_v59, 4  ;;  %v7533_v62 = vpop.f32.mrb[21].mxu1 }
 0x92d   : > { %v6562_v62 = vld [vmem:[%s9423_s28 + $0x50] sm:$0xff] }
 0x92e   : > { %v2088_v63 = vsel %vm2087_vm1, %v1981_v1, %v2085_v61 }
 0x92f   : > { %7567 = vmatmul.mubr.f32.vlgmr.msra.gmra.mrb[22].mxu1 %v2088_v63  ;;  %v6563_v63 = vld [vmem:[%s9423_s28 + $0x58] sm:$0xff] }
 0x930   : > { %7604 = vmatprep.mubr.msk.f32.mxu1 %vm8972_vm5, %v8973_v60  ;;  %8464 = vmatpush3.bf16.msra.mxu1 %v8463_v11  ;;  %v8466_v24 = vpack.c.bf16 %v6563_v63, %v6562_v62 }
 0x931   : > { %8465 = vmatprep.subr.bf16.mxu1 %v8969_v47 }
 0x934   : > { %8467 = vmatpush3.bf16.msra.mxu1 %v8466_v24 }
 0x935   : > { %8468 = vmatprep.subr.bf16.mxu1 %v8969_v47 }
 0xa02   : > { %v2159_v22 = vpop.f32.mrb[22].mxu1 }
 0xa03   : > { %v9599_v26 = vadd.f32 %v2159_v22, %v2092_v12  ;;  %v7568_v27 = vpop.f32.mrb[23].mxu1  ;;  %v6569_v12 = vld [vmem:[%s9393_s25 + $0x140] sm:$0xff]  ;;  %v6572_v22 = vld [vmem:[%s9393_s25 + $0x158] sm:$0xff] }
 0xa04   : > { %v8475_v14 = vpack.c.bf16 %v6570_v13, %v6569_v12  ;;  %v8478_v27 = vpack.c.bf16 %v6572_v22, %v6571_v16  ;;  %v2512_v12 = vrot.slane %v9655_v28, %v9448_v19 }
 0xa05   : > { %v2163_v25 = vmax.f32 %v9599_v26, 0.0 }
 0xa07   : > { %v2178_v52 = vrot.slane %v2163_v25, 5  ;;  %v2196_v56 = vrot.slane %v2163_v25, 1  ;;  %v6574_v25 = vld [vmem:[%s9393_s25 + $0x168] sm:$0xff] }
 0xa09   : > { %v2180_v20 = vsel %vm1411_vm13, 0.0, %v2178_v52  ;;  %v2198_v33 = vsel %vm1411_vm13, 0.0, %v2196_v56  ;;  %v8481_v56 = vpack.c.bf16 %v6574_v25, %v6573_v53 }
 0xa0a   : > { %v2199_v35 = vsel %vm695_vm2, %v2198_v33, 0.0  ;;  %v2181_v38 = vsel %vm695_vm2, %v2180_v20, 0.0  ;;  %v6575_v20 = vld [vmem:[%s9393_s25 + $0x170] sm:$0xff]  ;;  %v6576_v33 = vld [vmem:[%s9393_s25 + $0x178] sm:$0xff] }
 0xa0b   : > { %v2201_v39 = vrot.slane %v2199_v35, 3  ;;  %v2205_v41 = vrot.slane %v2199_v35, 6  ;;  %v2188_v45 = vrot.slane %v2181_v38, 6  ;;  %v2183_v46 = vrot.slane %v2181_v38, 3 }
 0xa0d   : > { %2202 = vrot.lane.b32.xlu0 %v2201_v39, %s8971_s13  ;;  %v2206_v43 = vsel %vm1422_vm14, %v2205_v41, %v9611_v34  ;;  %v2190_v48 = vsel %vm1422_vm14, %v2188_v45, %v9611_v34  ;;  %v6579_v45 = vld [vmem:[%s9423_s28 + $0x68] sm:$0xff] }
 0xa0e   : > { %2207 = vrot.lane.b32.xlu1 %v2206_v43, %s8974_s14  ;;  %v6578_v43 = vld [vmem:[%s9423_s28 + $0x60] sm:$0xff] }
 0xa11   : > { %2184 = vrot.lane.b32.xlu0 %v2183_v46, %s8971_s13  ;;  %v8487_v46 = vpack.c.bf16 %v6579_v45, %v6578_v43  ;;  %v6583_v43 = vld [vmem:[%s9350_s21 + $0x100] sm:$0xff]  ;;  %v6584_v45 = vld [vmem:[%s9350_s21 + $0x108] sm:$0xff] }
 0xa12   : > { %2191 = vrot.lane.b32.xlu1 %v2190_v48, %s8974_s14 }
 0xa7f   : > { %v2203_v49 = vpop.permute.xlu0 %2202 }
 0xa80   : > { %v2210_v50 = vsel %vm1107_vm6, %v2199_v35, %v2203_v49  ;;  %v2208_v51 = vpop.permute.xlu1 %2207  ;;  %v8484_v35 = vpack.c.bf16 %v6576_v33, %v6575_v20 }
 0xa81   : > { %v2211_v54 = vsel %vm1110_vm7, %v2210_v50, %v2208_v51 }
 0xa82   : > { %v2213_v17 = vrot.slane %v2211_v54, 4 }
 0xa83   : > { %v2185_v55 = vpop.permute.xlu0 %2184 }
 0xa84   : > { %v2194_v1 = vsel %vm1107_vm6, %v2181_v38, %v2185_v55  ;;  %v2192_v18 = vpop.permute.xlu1 %2191 }
 0xa85   : > { %v2195_v59 = vsel %vm1110_vm7, %v2194_v1, %v2192_v18 }
 0xa86   : > { %v2215_v61 = vsel %vm2087_vm1, %v2195_v59, %v2213_v17 }
 0xa87   : > { %7594 = vmatmul.mubr.msk.f32.vlgmr.msra.gmra.mrb[20].mxu0 %vm1113_vm8, %v2215_v61 }
 0xa88   : > { %7642 = vmatprep.mubr.msk.f32.mxu0 %vm8972_vm5, %v8973_v60  ;;  %8488 = vmatpush3.bf16.msra.mxu0 %v8487_v46 }
 0xa89   : > { %8489 = vmatprep.subr.bf16.mxu0 %v8969_v47 }
 0xb5a   : > { %v2289_v58 = vpop.f32.mrb[20].mxu0 }
 0xb5b   : > { %v2290_v36 = vadd.f32 %v2289_v58, %v2219_v57  ;;  %v7595_v40 = vpop.f32.mrb[21].mxu0 }
 0xb5c   : > { %v6580_v40 = vld [vmem:[%s9423_s28 + $0x70] sm:$0xff] }
 0xb5d   : > { %v2293_v7 = vmax.f32 %v2290_v36, 0.0 }
 0xb5f   : > { %7605 = vmatmul.mubr.msk.f32.vlgmr.msra.gmra.mrb[24].mxu1 %vm1107_vm6, %v2293_v7  ;;  %v6581_v7 = vld [vmem:[%s9423_s28 + $0x78] sm:$0xff] }
 0xb60   : > { %7631 = vmatprep.mubr.msk.f32.mxu1 %vm8972_vm5, %v8973_v60  ;;  %8470 = vmatpush3.bf16.msra.mxu1 %v8469_v6  ;;  %v8490_v3 = vpack.c.bf16 %v6581_v7, %v6580_v40  ;;  %v6592_v40 = vld [vmem:[%s9350_s21 + $0x148] sm:$0xff] }
 0xb61   : > { %8471 = vmatprep.subr.bf16.mxu1 %v8969_v47 }
 0xb62   : > { %8491 = vmatpush3.bf16.msra.mxu0 %v8490_v3  ;;  %v6593_v3 = vld [vmem:[%s9350_s21 + $0x150] sm:$0xff] }
 0xb63   : > { %7650 = vmatprep.subr.mxu0 %v8973_v60 }
 0xb64   : > { %8473 = vmatpush3.bf16.msra.mxu1 %v8472_v10 }
 0xb65   : > { %8474 = vmatprep.subr.bf16.mxu1 %v8969_v47 }
 0xb68   : > { %8476 = vmatpush3.bf16.msra.mxu1 %v8475_v14 }
 0xb69   : > { %8477 = vmatprep.subr.bf16.mxu1 %v8969_v47 }
 0xb6c   : > { %8479 = vmatpush3.bf16.msra.mxu1 %v8478_v27 }
 0xb6d   : > { %8480 = vmatprep.subr.bf16.mxu1 %v8969_v47 }
 0xb70   : > { %8482 = vmatpush3.bf16.msra.mxu1 %v8481_v56 }
 0xb71   : > { %8483 = vmatprep.subr.bf16.mxu1 %v8969_v47 }
 0xb74   : > { %8485 = vmatpush3.bf16.msra.mxu1 %v8484_v35 }
 0xb75   : > { %7645 = vmatprep.subr.mxu1 %v8973_v60 }
 0xc32   : > { %v2372_v52 = vpop.f32.mrb[24].mxu1 }
 0xc33   : > { %v2373_v32 = vadd.f32 %v2372_v52, %v2302_v29  ;;  %v7606_v2 = vpop.f32.mrb[25].mxu1 }
 0xc35   : > { %v2376_v11 = vadd.f32 %v2373_v32, %v9599_v26 }
 0xc37   : > { %v2377_v38 = vmax.f32 %v2376_v11, 0.0 }
 0xc39   : > { %v2392_v39 = vrot.slane %v2377_v38, 7  ;;  %v2407_v41 = vrot.slane %v2377_v38, 3 }
 0xc3b   : > { %v2409_v48 = vsel %vm674_vm0, 0.0, %v2407_v41  ;;  %v2394_v49 = vsel %vm674_vm0, 0.0, %v2392_v39 }
 0xc3c   : > { %v2410_v26 = vsel %vm1095_vm4, %v2409_v48, 0.0  ;;  %v2395_v54 = vsel %vm1095_vm4, %v2394_v49, 0.0 }
 0xc3d   : > { %v2416_v50 = vrot.slane %v2410_v26, 2  ;;  %v2412_v51 = vrot.slane %v2410_v26, 1  ;;  %v2401_v55 = vrot.slane %v2395_v54, 2  ;;  %v2397_v17 = vrot.slane %v2395_v54, 1 }
 0xc3f   : > { %2417 = vrot.lane.b32.xlu1 %v2416_v50, %s8974_s14  ;;  %2413 = vrot.lane.b32.xlu0 %v2412_v51, %s8971_s13  ;;  %v6585_v51 = vld [vmem:[%s9350_s21 + $0x110] sm:$0xff] }
 0xc43   : > { %2402 = vrot.lane.b32.xlu1 %v2401_v55, %s8974_s14  ;;  %2398 = vrot.lane.b32.xlu0 %v2397_v17, %s8971_s13 }
 0xcb1   : > { %v2418_v1 = vpop.permute.xlu1 %2417  ;;  %v2414_v18 = vpop.permute.xlu0 %2413 }
 0xcb2   : > { %v2420_v59 = vsel %vm1107_vm6, %v2410_v26, %v2414_v18  ;;  %v8493_v26 = vpack.c.bf16 %v6584_v45, %v6583_v43  ;;  %v2801_v45 = vrot.slane %v9655_v28, %v9465_v44 }
 0xcb3   : > { %v2421_v61 = vsel %vm1110_vm7, %v2420_v59, %v2418_v1 }
 0xcb4   : > { %v2423_v24 = vrot.slane %v2421_v61, 4  ;;  %v6587_v61 = vld [vmem:[%s9350_s21 + $0x120] sm:$0xff] }
 0xcb5   : > { %v2403_v62 = vpop.permute.xlu1 %2402  ;;  %v2399_v63 = vpop.permute.xlu0 %2398 }
 0xcb6   : > { %v2405_v57 = vsel %vm1107_vm6, %v2395_v54, %v2399_v63  ;;  %v6586_v54 = vld [vmem:[%s9350_s21 + $0x118] sm:$0xff] }
 0xcb7   : > { %v2406_v58 = vsel %vm1110_vm7, %v2405_v57, %v2403_v62  ;;  %v8496_v18 = vpack.c.bf16 %v6586_v54, %v6585_v51  ;;  %v6588_v62 = vld [vmem:[%s9350_s21 + $0x128] sm:$0xff]  ;;  %v6589_v57 = vld [vmem:[%s9350_s21 + $0x130] sm:$0xff] }
 0xcb8   : > { %v2425_v36 = vsel %vm2087_vm1, %v2406_v58, %v2423_v24  ;;  %v8499_v24 = vpack.c.bf16 %v6588_v62, %v6587_v61  ;;  %v6590_v58 = vld [vmem:[%s9350_s21 + $0x138] sm:$0xff]  ;;  %v6613_v54 = vld [vmem:[%s9393_s25 + $0x1d0] sm:$0xff] }
 0xcb9   : > { %7632 = vmatmul.mubr.msk.f32.vlgmr.msra.gmra.mrb[26].mxu1 %vm1113_vm8, %v2425_v36  ;;  %v8502_v36 = vpack.c.bf16 %v6590_v58, %v6589_v57 }
 0xcba   : > { %7647 = vmatprep.mubr.msk.f32.mxu1 %vm8972_vm5, %v8973_v60 }
 0xd8c   : > { %v2499_v5 = vpop.f32.mrb[26].mxu1 }
 0xd8d   : > { %v2500_v6 = vadd.f32 %v2499_v5, %v2429_v4  ;;  %v7633_v8 = vpop.f32.mrb[27].mxu1  ;;  %v6594_v4 = vld [vmem:[%s9350_s21 + $0x158] sm:$0xff] }
 0xd8e   : > { %v8508_v5 = vpack.c.bf16 %v6594_v4, %v6593_v3  ;;  %v6596_v8 = vld [vmem:[%s9350_s21 + $0x168] sm:$0xff] }
 0xd8f   : > { %v2503_v10 = vmax.f32 %v2500_v6, 0.0  ;;  %v6595_v6 = vld [vmem:[%s9350_s21 + $0x160] sm:$0xff] }
 0xd91   : > { %7643 = vmatmul.mubr.msk.f32.vlgmr.msra.gmra.mrb[22].mxu0 %vm1107_vm6, %v2503_v10  ;;  %v8511_v10 = vpack.c.bf16 %v6596_v8, %v6595_v6  ;;  %v6617_v6 = vld [vmem:[%s9423_s28 + $0x88] sm:$0xff] }
 0xd92   : > { %7652 = vmatprep.mubr.msk.f32.mxu0 %vm8972_vm5, %v8973_v60 }
 0xe64   : > { %v2582_v13 = vpop.f32.mrb[22].mxu0 }
 0xe65   : > { %v2583_v14 = vadd.f32 %v2582_v13, %v2512_v12  ;;  %v7644_v16 = vpop.f32.mrb[23].mxu0  ;;  %v6597_v12 = vld [vmem:[%s9350_s21 + $0x170] sm:$0xff]  ;;  %v6598_v13 = vld [vmem:[%s9350_s21 + $0x178] sm:$0xff] }
 0xe67   : > { %v2586_v22 = vadd.f32 %v2583_v14, %v2376_v11  ;;  %v8514_v14 = vpack.c.bf16 %v6598_v13, %v6597_v12 }
 0xe69   : > { %v2605_v27 = vrot.slane %v2586_v22, 7  ;;  %v2701_v29 = vrot.slane %v2586_v22, 3 }
 0xe6b   : > { %v2607_v53 = vsel %vm674_vm0, 0.0, %v2605_v27  ;;  %v2703_v25 = vsel %vm674_vm0, 0.0, %v2701_v29 }
 0xe6c   : > { %v2704_v52 = vsel %vm1095_vm4, %v2703_v25, 0.0  ;;  %v2608_v2 = vsel %vm1095_vm4, %v2607_v53, 0.0 }
 0xe6d   : > { %v2710_v56 = vrot.slane %v2704_v52, 2  ;;  %v2706_v32 = vrot.slane %v2704_v52, 1  ;;  %v2714_v20 = vrot.slane %v2704_v52, 3  ;;  %v2610_v11 = vrot.slane %v2608_v2, 1 }
 0xe6e   : > { %v2618_v33 = vrot.slane %v2608_v2, 3  ;;  %v2614_v35 = vrot.slane %v2608_v2, 2 }
 0xe6f   : > { %2711 = vrot.lane.b32.xlu1 %v2710_v56, %s8974_s14  ;;  %2707 = vrot.lane.b32.xlu0 %v2706_v32, %s8971_s13  ;;  %v6604_v56 = vld [vmem:[%s9393_s25 + $0x188] sm:$0xff]  ;;  %v6605_v32 = vld [vmem:[%s9393_s25 + $0x190] sm:$0xff] }
 0xe73   : > { %2715 = vrot.lane.b32.xlu1 %v2714_v20, %s8970_s12  ;;  %2611 = vrot.lane.b32.xlu0 %v2610_v11, %s8971_s13  ;;  %v6606_v20 = vld [vmem:[%s9393_s25 + $0x198] sm:$0xff] }
 0xe74   : > { %v8520_v11 = vpack.c.bf16 %v6606_v20, %v6605_v32  ;;  %v6621_v20 = vld [vmem:[%s9393_s25 + $0x1e0] sm:$0xff] }
 0xe77   : > { %2619 = vrot.lane.b32.xlu1 %v2618_v33, %s8970_s12  ;;  %2615 = vrot.lane.b32.xlu0 %v2614_v35, %s8974_s14  ;;  %v6607_v33 = vld [vmem:[%s9393_s25 + $0x1a0] sm:$0xff]  ;;  %v6608_v35 = vld [vmem:[%s9393_s25 + $0x1a8] sm:$0xff] }
 0xee1   : > { %v2712_v38 = vpop.permute.xlu1 %2711  ;;  %v2708_v39 = vpop.permute.xlu0 %2707 }
 0xee2   : > { %v2718_v41 = vsel %vm1107_vm6, %v2704_v52, %v2708_v39  ;;  %v6603_v52 = vld [vmem:[%s9393_s25 + $0x180] sm:$0xff]  ;;  %v6609_v39 = vld [vmem:[%s9393_s25 + $0x1b0] sm:$0xff] }
 0xee3   : > { %v2719_v48 = vsel %vm1110_vm7, %v2718_v41, %v2712_v38  ;;  %v8523_v38 = vpack.c.bf16 %v6608_v35, %v6607_v33  ;;  %v6610_v41 = vld [vmem:[%s9393_s25 + $0x1b8] sm:$0xff]  ;;  %v6623_v33 = vld [vmem:[%s9393_s25 + $0x1f0] sm:$0xff] }
 0xee4   : > { %v8526_v43 = vpack.c.bf16 %v6610_v41, %v6609_v39  ;;  %v6625_v41 = vld [vmem:[%s9393_s25 + $0x200] sm:$0xff] }
 0xee5   : > { %v2716_v46 = vpop.permute.xlu1 %2715  ;;  %v2612_v49 = vpop.permute.xlu0 %2611 }
 0xee6   : > { %v2720_v50 = vsel %vm1113_vm8, %v2719_v48, %v2716_v46  ;;  %v2622_v55 = vsel %vm1107_vm6, %v2608_v2, %v2612_v49  ;;  %v8517_v2 = vpack.c.bf16 %v6604_v56, %v6603_v52  ;;  %v6611_v46 = vld [vmem:[%s9393_s25 + $0x1c0] sm:$0xff]  ;;  %v6612_v48 = vld [vmem:[%s9393_s25 + $0x1c8] sm:$0xff] }
 0xee7   : > { %7651 = vmatpush3.msk.msra.mxu0 %vm1411_vm13, %v2720_v50  ;;  %v8529_v49 = vpack.c.bf16 %v6612_v48, %v6611_v46  ;;  %v6627_v46 = vld [vmem:[%s9393_s25 + $0x210] sm:$0xff]  ;;  %v6628_v48 = vld [vmem:[%s9393_s25 + $0x218] sm:$0xff] }
 0xee8   : > { %7653 = vmatmul.mubr.msk.f32.vlgmr.msra.gmra.mrb[24].mxu0 %vm2625_vm9, %v9358_v37  ;;  %8492 = vmatprep.subr.bf16.mxu0 %v8969_v47 }
 0xee9   : > { %v2620_v17 = vpop.permute.xlu1 %2619  ;;  %v2616_v1 = vpop.permute.xlu0 %2615  ;;  %8494 = vmatpush3.bf16.msra.mxu0 %v8493_v26  ;;  %7687 = vmatprep.mubr.msk.f32.mxu0 %vm8972_vm5, %v8973_v60 }
 0xeea   : > { %v2623_v59 = vsel %vm1110_vm7, %v2622_v55, %v2616_v1  ;;  %8495 = vmatprep.subr.bf16.mxu0 %v8969_v47  ;;  %v6614_v55 = vld [vmem:[%s9393_s25 + $0x1d8] sm:$0xff] }
 0xeeb   : > { %v2624_v63 = vsel %vm1113_vm8, %v2623_v59, %v2620_v17  ;;  %v8532_v17 = vpack.c.bf16 %v6614_v55, %v6613_v54  ;;  %v6630_v54 = vld [vmem:[%s9393_s25 + $0x228] sm:$0xff] }
 0xeec   : > { %7646 = vmatpush3.msk.msra.mxu1 %vm1411_vm13, %v2624_v63 }
 0xeed   : > { %7648 = vmatmul.mubr.msk.f32.vlgmr.msra.gmra.mrb[28].mxu1 %vm2625_vm9, %v9358_v37  ;;  %8497 = vmatpush3.bf16.msra.mxu0 %v8496_v18  ;;  %v6591_v37 = vld [vmem:[%s9350_s21 + $0x140] sm:$0xff] }
 0xeee   : > { %8498 = vmatprep.subr.bf16.mxu0 %v8969_v47  ;;  %8516 = vmatprep.subr.bf16.mxu1 %v8969_v47  ;;  %v8505_v7 = vpack.c.bf16 %v6592_v40, %v6591_v37 }
 0xeef   : > { %7714 = vmatprep.mubr.msk.f32.mxu1 %vm8972_vm5, %v8973_v60  ;;  %8518 = vmatpush3.bf16.msra.mxu1 %v8517_v2 }
 0xef0   : > { %8519 = vmatprep.subr.bf16.mxu1 %v8969_v47 }
 0xef1   : > { %8500 = vmatpush3.bf16.msra.mxu0 %v8499_v24 }
 0xef2   : > { %8501 = vmatprep.subr.bf16.mxu0 %v8969_v47 }
 0xef3   : > { %8521 = vmatpush3.bf16.msra.mxu1 %v8520_v11  ;;  %v6622_v11 = vld [vmem:[%s9393_s25 + $0x1e8] sm:$0xff] }
 0xef4   : > { %8522 = vmatprep.subr.bf16.mxu1 %v8969_v47  ;;  %v8541_v35 = vpack.c.bf16 %v6622_v11, %v6621_v20  ;;  %v3134_v20 = vrot.slane %v9655_v28, %v9593_v9 }
 0xef5   : > { %8503 = vmatpush3.bf16.msra.mxu0 %v8502_v36 }
 0xef6   : > { %8504 = vmatprep.subr.bf16.mxu0 %v8969_v47 }
 0xef7   : > { %8524 = vmatpush3.bf16.msra.mxu1 %v8523_v38  ;;  %v6624_v38 = vld [vmem:[%s9393_s25 + $0x1f8] sm:$0xff] }
 0xef8   : > { %8525 = vmatprep.subr.bf16.mxu1 %v8969_v47  ;;  %v8544_v39 = vpack.c.bf16 %v6624_v38, %v6623_v33 }
 0xef9   : > { %8506 = vmatpush3.bf16.msra.mxu0 %v8505_v7 }
 0xefa   : > { %8507 = vmatprep.subr.bf16.mxu0 %v8969_v47 }
 0xefb   : > { %8527 = vmatpush3.bf16.msra.mxu1 %v8526_v43  ;;  %v6626_v43 = vld [vmem:[%s9393_s25 + $0x208] sm:$0xff] }
 0xefc   : > { %8528 = vmatprep.subr.bf16.mxu1 %v8969_v47 }
 0xefd   : > { %8509 = vmatpush3.bf16.msra.mxu0 %v8508_v5  ;;  %v6616_v5 = vld [vmem:[%s9423_s28 + $0x80] sm:$0xff] }
 0xefe   : > { %8510 = vmatprep.subr.bf16.mxu0 %v8969_v47 }
 0xeff   : > { %8530 = vmatpush3.bf16.msra.mxu1 %v8529_v49  ;;  %v8550_v49 = vpack.c.bf16 %v6628_v48, %v6627_v46  ;;  %v6642_v46 = vld [vmem:[%s9393_s25 + $0x258] sm:$0xff] }
 0xf00   : > { %8531 = vmatprep.subr.bf16.mxu1 %v8969_v47 }
 0xf01   : > { %8512 = vmatpush3.bf16.msra.mxu0 %v8511_v10 }
 0xf02   : > { %8513 = vmatprep.subr.bf16.mxu0 %v8969_v47 }
 0xf03   : > { %8533 = vmatpush3.bf16.msra.mxu1 %v8532_v17 }
 0xf04   : > { %8534 = vmatprep.subr.bf16.mxu1 %v8969_v47 }
 0xf05   : > { %8515 = vmatpush3.bf16.msra.mxu0 %v8514_v14  ;;  %v8535_v14 = vpack.c.bf16 %v6617_v6, %v6616_v5 }
 0xf06   : > { %8540 = vmatprep.subr.bf16.mxu0 %v8969_v47 }
 0xfbb   : > { %v2790_v16 = vpop.f32.mrb[24].mxu0 }
 0xfbc   : > { %v7654_v22 = vpop.f32.mrb[25].mxu0  ;;  %v2795_v27 = vrot.slane %v2790_v16, 6 }
 0xfc0   : > { %v2697_v29 = vpop.f32.mrb[28].mxu1 }
 0xfc1   : > { %v2797_v53 = vsel %vm1422_vm14, %v2697_v29, %v2795_v27  ;;  %v7649_v25 = vpop.f32.mrb[29].mxu1  ;;  %v6618_v27 = vld [vmem:[%s9423_s28 + $0x90] sm:$0xff]  ;;  %v6619_v29 = vld [vmem:[%s9423_s28 + $0x98] sm:$0xff] }
 0xfc2   : > { %7688 = vmatmul.mubr.f32.vlgmr.msra.gmra.mrb[26].mxu0 %v2797_v53  ;;  %v8538_v53 = vpack.c.bf16 %v6619_v29, %v6618_v27  ;;  %v2924_v25 = vrot.slane %v9655_v28, %v9506_v31 }
 0xfc3   : > { %7752 = vmatprep.mubr.msk.f32.mxu0 %vm8972_vm5, %v8973_v60  ;;  %8542 = vmatpush3.bf16.msra.mxu0 %v8541_v35 }
 0xfc4   : > { %8543 = vmatprep.subr.bf16.mxu0 %v8969_v47 }
 0xfc7   : > { %8545 = vmatpush3.bf16.msra.mxu0 %v8544_v39  ;;  %v6639_v39 = vld [vmem:[%s9393_s25 + $0x240] sm:$0xff] }
 0xfc8   : > { %8546 = vmatprep.subr.bf16.mxu0 %v8969_v47 }
0x1095   : > { %v2868_v26 = vpop.f32.mrb[26].mxu0 }
0x1096   : > { %v9766_v50 = vadd.f32 %v2868_v26, %v2801_v45  ;;  %v7689_v51 = vpop.f32.mrb[27].mxu0  ;;  %v8547_v45 = vpack.c.bf16 %v6626_v43, %v6625_v41  ;;  %v3007_v26 = vrot.slane %v9655_v28, %v9515_v42  ;;  %v6640_v41 = vld [vmem:[%s9393_s25 + $0x248] sm:$0xff]  ;;  %v6641_v43 = vld [vmem:[%s9393_s25 + $0x250] sm:$0xff] }
0x1097   : > { %v6629_v51 = vld [vmem:[%s9393_s25 + $0x220] sm:$0xff]  ;;  %v8568_v48 = vpack.c.bf16 %v6642_v46, %v6641_v43 }
0x1098   : > { %v2872_v1 = vmax.f32 %v9766_v50, 0.0  ;;  %8548 = vmatpush3.bf16.msra.mxu0 %v8547_v45  ;;  %v8553_v17 = vpack.c.bf16 %v6630_v54, %v6629_v51  ;;  %v8565_v45 = vpack.c.bf16 %v6640_v41, %v6639_v39  ;;  %v6645_v54 = vld [vmem:[%s9393_s25 + $0x270] sm:$0xff]  ;;  %v3424_v41 = vld [vmem:[%s549_s15 + $0x38] sm:$0xff] }
0x1099   : > { %8549 = vmatprep.subr.bf16.mxu0 %v8969_v47 }
0x109a   : > { %v2887_v18 = vrot.slane %v2872_v1, 5  ;;  %v2902_v59 = vrot.slane %v2872_v1, 7 }
0x109c   : > { %v2889_v61 = vsel %vm1411_vm13, 0.0, %v2887_v18  ;;  %v2904_v62 = vsel %vm1411_vm13, 0.0, %v2902_v59  ;;  %8551 = vmatpush3.bf16.msra.mxu0 %v8550_v49  ;;  %v6643_v49 = vld [vmem:[%s9393_s25 + $0x260] sm:$0xff] }
0x109d   : > { %v2905_v63 = vsel %vm1095_vm4, %v2904_v62, 0.0  ;;  %v2890_v58 = vsel %vm1095_vm4, %v2889_v61, 0.0  ;;  %8552 = vmatprep.subr.bf16.mxu0 %v8969_v47  ;;  %v6631_v61 = vld [vmem:[%s9393_s25 + $0x230] sm:$0xff]  ;;  %v6632_v62 = vld [vmem:[%s9393_s25 + $0x238] sm:$0xff] }
0x109e   : > { %v2907_v24 = vrot.slane %v2905_v63, 3  ;;  %v2911_v57 = vrot.slane %v2905_v63, 6  ;;  %v2892_v36 = vrot.slane %v2890_v58, 3  ;;  %v2896_v37 = vrot.slane %v2890_v58, 6 }
0x10a0   : > { %2908 = vrot.lane.b32.xlu0 %v2907_v24, %s8971_s13  ;;  %2912 = vrot.lane.b32.xlu1 %v2911_v57, %s8974_s14 }
0x10a1   : > { %8554 = vmatpush3.bf16.msra.mxu0 %v8553_v17 }
0x10a2   : > { %8555 = vmatprep.subr.bf16.mxu0 %v8969_v47 }
0x10a4   : > { %2893 = vrot.lane.b32.xlu0 %v2892_v36, %s8971_s13  ;;  %2897 = vrot.lane.b32.xlu1 %v2896_v37, %s8974_s14  ;;  %v6634_v36 = vld [vmem:[%s9423_s28 + $0xa0] sm:$0xff]  ;;  %v6635_v37 = vld [vmem:[%s9423_s28 + $0xa8] sm:$0xff] }
0x1112   : > { %v2909_v40 = vpop.permute.xlu0 %2908  ;;  %v2913_v7 = vpop.permute.xlu1 %2912 }
0x1113   : > { %v2915_v3 = vsel %vm1107_vm6, %v2905_v63, %v2909_v40  ;;  %v8556_v63 = vpack.c.bf16 %v6632_v62, %v6631_v61  ;;  %v8559_v40 = vpack.c.bf16 %v6635_v37, %v6634_v36  ;;  %v6648_v61 = vld [vmem:[%s9393_s25 + $0x288] sm:$0xff]  ;;  %v6650_v36 = vld [vmem:[%s9393_s25 + $0x298] sm:$0xff] }
0x1114   : > { %v2916_v4 = vsel %vm1110_vm7, %v2915_v3, %v2913_v7 }
0x1115   : > { %v2918_v12 = vrot.slane %v2916_v4, 6  ;;  %8557 = vmatpush3.bf16.msra.mxu0 %v8556_v63 }
0x1116   : > { %v2894_v8 = vpop.permute.xlu0 %2893  ;;  %v2898_v10 = vpop.permute.xlu1 %2897  ;;  %8582 = vmatprep.subr.bf16.mxu0 %v8969_v47 }
0x1117   : > { %v2900_v13 = vsel %vm1107_vm6, %v2890_v58, %v2894_v8 }
0x1118   : > { %v2901_v16 = vsel %vm1110_vm7, %v2900_v13, %v2898_v10 }
0x1119   : > { %v2920_v22 = vsel %vm1422_vm14, %v2901_v16, %v2918_v12 }
0x111a   : > { %7715 = vmatmul.mubr.msk.f32.vlgmr.msra.gmra.mrb[30].mxu1 %vm1113_vm8, %v2920_v22 }
0x111b   : > { %8536 = vmatpush3.bf16.msra.mxu1 %v8535_v14  ;;  %7725 = vmatprep.mubr.msk.f32.mxu1 %vm8972_vm5, %v8973_v60 }
0x111c   : > { %8537 = vmatprep.subr.bf16.mxu1 %v8969_v47 }
0x111f   : > { %8539 = vmatpush3.bf16.msra.mxu1 %v8538_v53 }
0x1120   : > { %8558 = vmatprep.subr.bf16.mxu1 %v8969_v47 }
0x11ed   : > { %v2994_v52 = vpop.f32.mrb[30].mxu1 }
0x11ee   : > { %v2995_v56 = vadd.f32 %v2994_v52, %v2924_v25  ;;  %v7716_v32 = vpop.f32.mrb[31].mxu1 }
0x11ef   : > { %v6637_v32 = vld [vmem:[%s9423_s28 + $0xb8] sm:$0xff] }
0x11f0   : > { %v2998_v2 = vmax.f32 %v2995_v56, 0.0  ;;  %v6636_v56 = vld [vmem:[%s9423_s28 + $0xb0] sm:$0xff] }
0x11f2   : > { %7726 = vmatmul.mubr.msk.f32.vlgmr.msra.gmra.mrb[32].mxu1 %vm1107_vm6, %v2998_v2  ;;  %v8562_v2 = vpack.c.bf16 %v6637_v32, %v6636_v56 }
0x11f3   : > { %7763 = vmatprep.mubr.msk.f32.mxu1 %vm8972_vm5, %v8973_v60  ;;  %8560 = vmatpush3.bf16.msra.mxu1 %v8559_v40 }
0x11f4   : > { %8561 = vmatprep.subr.bf16.mxu1 %v8969_v47 }
0x11f7   : > { %8563 = vmatpush3.bf16.msra.mxu1 %v8562_v2 }
0x11f8   : > { %8564 = vmatprep.subr.bf16.mxu1 %v8969_v47 }
0x12c5   : > { %v3077_v55 = vpop.f32.mrb[32].mxu1 }
0x12c6   : > { %v3078_v1 = vadd.f32 %v3077_v55, %v3007_v26  ;;  %v7727_v18 = vpop.f32.mrb[33].mxu1  ;;  %v6644_v26 = vld [vmem:[%s9393_s25 + $0x268] sm:$0xff]  ;;  %v6646_v55 = vld [vmem:[%s9393_s25 + $0x278] sm:$0xff] }
0x12c7   : > { %v8571_v51 = vpack.c.bf16 %v6644_v26, %v6643_v49  ;;  %v8574_v17 = vpack.c.bf16 %v6646_v55, %v6645_v54  ;;  %v6647_v18 = vld [vmem:[%s9393_s25 + $0x280] sm:$0xff] }
0x12c8   : > { %v9817_v59 = vadd.f32 %v3078_v1, %v9766_v50  ;;  %v3217_v1 = vrot.slane %v9655_v28, %v9636_v0  ;;  %v8577_v62 = vpack.c.bf16 %v6648_v61, %v6647_v18 }
0x12ca   : > { %v3082_v24 = vmax.f32 %v9817_v59, 0.0 }
0x12cc   : > { %v3097_v57 = vrot.slane %v3082_v24, 7  ;;  %v3112_v58 = vrot.slane %v3082_v24, 1 }
0x12ce   : > { %v3114_v7 = vsel %vm674_vm0, 0.0, %v3112_v58  ;;  %v3099_v50 = vsel %vm674_vm0, 0.0, %v3097_v57  ;;  %v6649_v58 = vld [vmem:[%s9393_s25 + $0x290] sm:$0xff] }
0x12cf   : > { %v3115_v3 = vsel %vm1411_vm13, %v3114_v7, 0.0  ;;  %v3100_v6 = vsel %vm1411_vm13, %v3099_v50, 0.0  ;;  %v8580_v37 = vpack.c.bf16 %v6650_v36, %v6649_v58 }
0x12d0   : > { %v3121_v4 = vrot.slane %v3115_v3, 2  ;;  %v3117_v5 = vrot.slane %v3115_v3, 1  ;;  %v3106_v8 = vrot.slane %v3100_v6, 2  ;;  %v3102_v10 = vrot.slane %v3100_v6, 1 }
0x12d2   : > { %3122 = vrot.lane.b32.xlu1 %v3121_v4, %s8974_s14  ;;  %3118 = vrot.lane.b32.xlu0 %v3117_v5, %s8971_s13 }
0x12d6   : > { %3107 = vrot.lane.b32.xlu1 %v3106_v8, %s8974_s14  ;;  %3103 = vrot.lane.b32.xlu0 %v3102_v10, %s8971_s13 }
0x1344   : > { %v3123_v12 = vpop.permute.xlu1 %3122  ;;  %v3119_v13 = vpop.permute.xlu0 %3118 }
0x1345   : > { %v3125_v14 = vsel %vm1107_vm6, %v3115_v3, %v3119_v13 }
0x1346   : > { %v3126_v16 = vsel %vm1110_vm7, %v3125_v14, %v3123_v12  ;;  %v3417_v12 = vld [vmem:[%s549_s15] sm:$0xff]  ;;  %v9884_v14 = vld [vmem:[%s549_s15 + $0x10] sm:$0xff] }
0x1347   : > { %v3128_v29 = vrot.slane %v3126_v16, 6  ;;  %v3425_v13 = vmul.f32 %v3417_v12, %v3417_v12  ;;  %v3418_v16 = vld [vmem:[%s549_s15 + $0x8] sm:$0xff] }
0x1348   : > { %v3108_v22 = vpop.permute.xlu1 %3107  ;;  %v3104_v27 = vpop.permute.xlu0 %3103  ;;  %v8599_v61 = vpack.c.bf16 %v3418_v16, %v3417_v12 }
0x1349   : > { %v3110_v53 = vsel %vm1107_vm6, %v3100_v6, %v3104_v27  ;;  %v3427_v27 = vmul.f32 %v9884_v14, %v9884_v14 }
0x134a   : > { %v3111_v25 = vsel %vm1110_vm7, %v3110_v53, %v3108_v22  ;;  %v3433_v22 = vsel %vm1107_vm6, %v3425_v13, 0.0  ;;  %v3420_v53 = vld [vmem:[%s549_s15 + $0x18] sm:$0xff] }
0x134b   : > { %v3130_v52 = vsel %vm1422_vm14, %v3111_v25, %v3128_v29  ;;  %v3426_v29 = vmul.f32 %v3418_v16, %v3418_v16  ;;  %v9889_v25 = vld [vmem:[%s549_s15 + $0x20] sm:$0xff]  ;;  %v3428_v56 = vmul.f32 %v3420_v53, %v3420_v53 }
0x134c   : > { %7753 = vmatmul.mubr.msk.f32.vlgmr.msra.gmra.mrb[28].mxu0 %vm1113_vm8, %v3130_v52  ;;  %v3439_v52 = vsel %vm1107_vm6, %v3427_v27, 0.0  ;;  %v3429_v2 = vmul.f32 %v9889_v25, %v9889_v25 }
0x134d   : > { %7809 = vmatprep.mubr.msk.f32.mxu0 %vm8972_vm5, %v8973_v60  ;;  %v3436_v32 = vsel %vm1107_vm6, %v3426_v29, 0.0 }
0x141f   : > { %v3204_v11 = vpop.f32.mrb[28].mxu0 }
0x1420   : > { %v3205_v33 = vadd.f32 %v3204_v11, %v3134_v20  ;;  %v7754_v35 = vpop.f32.mrb[29].mxu0  ;;  %v3422_v20 = vld [vmem:[%s549_s15 + $0x28] sm:$0xff]  ;;  %v9895_v11 = vld [vmem:[%s549_s15 + $0x30] sm:$0xff] }
0x1421   : > { %v3430_v35 = vmul.f32 %v3422_v20, %v3422_v20  ;;  %v3431_v39 = vmul.f32 %v9895_v11, %v9895_v11  ;;  %v8608_v58 = vpack.c.bf16 %v3424_v41, %v9895_v11 }
0x1422   : > { %v3208_v38 = vmax.f32 %v3205_v33, 0.0  ;;  %v3442_v33 = vsel %vm1107_vm6, %v3428_v56, 0.0 }
0x1423   : > { %v3448_v43 = vsel %vm1107_vm6, %v3430_v35, 0.0  ;;  %v3451_v46 = vsel %vm1107_vm6, %v3431_v39, 0.0  ;;  %v3565_v39 = vcvt.s32.f32 %v9327_v15 }
0x1424   : > { %7764 = vmatmul.mubr.msk.f32.vlgmr.msra.gmra.mrb[34].mxu1 %vm1107_vm6, %v3208_v38  ;;  %v3445_v38 = vsel %vm1107_vm6, %v3429_v2, 0.0 }
0x1425   : > { %7790 = vmatprep.mubr.msk.f32.mxu1 %vm8972_vm5, %v8973_v60  ;;  %8566 = vmatpush3.bf16.msra.mxu1 %v8565_v45  ;;  %v3432_v45 = vmul.f32 %v3424_v41, %v3424_v41 }
0x1426   : > { %8567 = vmatprep.subr.bf16.mxu1 %v8969_v47 }
0x1429   : > { %8569 = vmatpush3.bf16.msra.mxu1 %v8568_v48  ;;  %v3454_v48 = vsel %vm1107_vm6, %v3432_v45, 0.0 }
0x142a   : > { %8570 = vmatprep.subr.bf16.mxu1 %v8969_v47 }
0x142d   : > { %8572 = vmatpush3.bf16.msra.mxu1 %v8571_v51 }
0x142e   : > { %8573 = vmatprep.subr.bf16.mxu1 %v8969_v47 }
0x1431   : > { %8575 = vmatpush3.bf16.msra.mxu1 %v8574_v17 }
0x1432   : > { %8576 = vmatprep.subr.bf16.mxu1 %v8969_v47 }
0x1435   : > { %8578 = vmatpush3.bf16.msra.mxu1 %v8577_v62 }
0x1436   : > { %8579 = vmatprep.subr.bf16.mxu1 %v8969_v47 }
0x1439   : > { %8581 = vmatpush3.bf16.msra.mxu1 %v8580_v37 }
0x143a   : > { %8598 = vmatprep.subr.bf16.mxu1 %v8969_v47 }
0x14f7   : > { %v3287_v63 = vpop.f32.mrb[34].mxu1 }
0x14f8   : > { %v3288_v24 = vadd.f32 %v3287_v63, %v3217_v1  ;;  %v7765_v57 = vpop.f32.mrb[35].mxu1 }
0x14f9   : > { %v8605_v57 = vpack.c.bf16 %v3422_v20, %v9889_v25 }
0x14fa   : > { %v3291_v40 = vadd.f32 %v3288_v24, %v9817_v59  ;;  %v8602_v24 = vpack.c.bf16 %v3420_v53, %v9884_v14 }
0x14fc   : > { %v3306_v7 = vrot.slane %v3291_v40, 7  ;;  %v3321_v50 = vrot.slane %v3291_v40, 1 }
0x14fe   : > { %v3308_v28 = vsel %vm674_vm0, 0.0, %v3306_v7  ;;  %v3323_v3 = vsel %vm674_vm0, 0.0, %v3321_v50 }
0x14ff   : > { %v3324_v4 = vsel %vm1411_vm13, %v3323_v3, 0.0  ;;  %v3309_v8 = vsel %vm1411_vm13, %v3308_v28, 0.0 }
0x1500   : > { %v3330_v5 = vrot.slane %v3324_v4, 2  ;;  %v3326_v6 = vrot.slane %v3324_v4, 1  ;;  %v3315_v59 = vrot.slane %v3309_v8, 2  ;;  %v3311_v10 = vrot.slane %v3309_v8, 1 }
0x1502   : > { %3331 = vrot.lane.b32.xlu1 %v3330_v5, %s8974_s14  ;;  %3327 = vrot.lane.b32.xlu0 %v3326_v6, %s8971_s13 }
0x1506   : > { %3316 = vrot.lane.b32.xlu1 %v3315_v59, %s8974_s14  ;;  %3312 = vrot.lane.b32.xlu0 %v3311_v10, %s8971_s13 }
0x1525   : > { %3434 = vadd.xlane.f32.xlu0 %v3433_v22 }
0x1529   : > { %3440 = vadd.xlane.f32.xlu0 %v3439_v52 }
0x152a   : > { %3437 = vadd.xlane.f32.xlu1 %v3436_v32 }
0x152d   : > { %3443 = vadd.xlane.f32.xlu0 %v3442_v33 }
0x152e   : > { %3446 = vadd.xlane.f32.xlu1 %v3445_v38 }
0x1531   : > { %3449 = vadd.xlane.f32.xlu0 %v3448_v43 }
0x1532   : > { %3452 = vadd.xlane.f32.xlu1 %v3451_v46 }
0x1535   : > { %3455 = vadd.xlane.f32.xlu0 %v3454_v48 }
0x1574   : > { %v3332_v49 = vpop.permute.xlu1 %3331  ;;  %v3328_v26 = vpop.permute.xlu0 %3327 }
0x1575   : > { %v3334_v51 = vsel %vm1107_vm6, %v3324_v4, %v3328_v26  ;;  %v6663_v26 = vld [vmem:[%s9393_s25 + $0x2a8] sm:$0xff] }
0x1576   : > { %v3335_v54 = vsel %vm1110_vm7, %v3334_v51, %v3332_v49  ;;  %v6662_v49 = vld [vmem:[%s9393_s25 + $0x2a0] sm:$0xff]  ;;  %v6664_v51 = vld [vmem:[%s9393_s25 + $0x2b0] sm:$0xff] }
0x1577   : > { %v3337_v1 = vrot.slane %v3335_v54, 6  ;;  %v8611_v54 = vpack.c.bf16 %v6663_v26, %v6662_v49  ;;  %v6681_v26 = vld [vmem:[%s9393_s25 + $0x330] sm:$0xff] }
0x1578   : > { %v3317_v55 = vpop.permute.xlu1 %3316  ;;  %v3313_v17 = vpop.permute.xlu0 %3312 }
0x1579   : > { %v3319_v18 = vsel %vm1107_vm6, %v3309_v8, %v3313_v17 }
0x157a   : > { %v3320_v62 = vsel %vm1110_vm7, %v3319_v18, %v3317_v55  ;;  %v6665_v55 = vld [vmem:[%s9393_s25 + $0x2b8] sm:$0xff]  ;;  %v6667_v18 = vld [vmem:[%s9393_s25 + $0x2c8] sm:$0xff] }
0x157b   : > { %v3339_v63 = vsel %vm1422_vm14, %v3320_v62, %v3337_v1  ;;  %v8614_v17 = vpack.c.bf16 %v6665_v55, %v6664_v51  ;;  %v6666_v1 = vld [vmem:[%s9393_s25 + $0x2c0] sm:$0xff]  ;;  %v6668_v62 = vld [vmem:[%s9393_s25 + $0x2d0] sm:$0xff]  ;;  %v6682_v51 = vld [vmem:[%s9393_s25 + $0x338] sm:$0xff] }
0x157c   : > { %7791 = vmatmul.mubr.msk.f32.vlgmr.msra.gmra.mrb[36].mxu1 %vm1113_vm8, %v3339_v63  ;;  %v6669_v63 = vld [vmem:[%s9393_s25 + $0x2d8] sm:$0xff] }
0x157d   : > { %8600 = vmatpush3.bf16.msra.mxu1 %v8599_v61  ;;  %7828 = vmatprep.mubr.msk.f32.mxu1 %vm8972_vm5, %v8973_v60  ;;  %v8617_v61 = vpack.c.bf16 %v6667_v18, %v6666_v1  ;;  %v6684_v1 = vld [vmem:[%s9393_s25 + $0x348] sm:$0xff] }
0x157e   : > { %8601 = vmatprep.subr.bf16.mxu1 %v8969_v47 }
0x1581   : > { %8603 = vmatpush3.bf16.msra.mxu1 %v8602_v24  ;;  %v8620_v24 = vpack.c.bf16 %v6669_v63, %v6668_v62 }
0x1582   : > { %8604 = vmatprep.subr.bf16.mxu1 %v8969_v47 }
0x1585   : > { %8606 = vmatpush3.bf16.msra.mxu1 %v8605_v57  ;;  %v6670_v57 = vld [vmem:[%s9393_s25 + $0x2e0] sm:$0xff] }
0x1586   : > { %8607 = vmatprep.subr.bf16.mxu1 %v8969_v47 }
0x1589   : > { %8609 = vmatpush3.bf16.msra.mxu1 %v8608_v58  ;;  %v6671_v58 = vld [vmem:[%s9393_s25 + $0x2e8] sm:$0xff] }
0x158a   : > { %8610 = vmatprep.subr.bf16.mxu1 %v8969_v47 }
0x15b2   : > { %v3435_v36 = vpop.xlane.xlu0 %3434 }
0x15b3   : > { %v3459_v37 = vsel %vm1107_vm6, %v3417_v12, %v3435_v36  ;;  %v8623_v36 = vpack.c.bf16 %v6671_v58, %v6670_v57  ;;  %v6685_v57 = vld [vmem:[%s9393_s25 + $0x350] sm:$0xff]  ;;  %v6686_v58 = vld [vmem:[%s9393_s25 + $0x358] sm:$0xff] }
0x15b6   : > { %v3441_v40 = vpop.xlane.xlu0 %3440 }
0x15b7   : > { %v3438_v7 = vpop.xlane.xlu1 %3437  ;;  %v3461_v5 = vsel %vm1107_vm6, %v9884_v14, %v3441_v40  ;;  %v6673_v40 = vld [vmem:[%s9393_s25 + $0x2f8] sm:$0xff] }
0x15b8   : > { %v3460_v50 = vsel %vm1107_vm6, %v3418_v16, %v3438_v7 }
0x15b9   : > { %v8583_v3 = vpack.c.bf16 %v3460_v50, %v3459_v37  ;;  %v6672_v37 = vld [vmem:[%s9393_s25 + $0x2f0] sm:$0xff] }
0x15ba   : > { %v3444_v4 = vpop.xlane.xlu0 %3443  ;;  %v8626_v7 = vpack.c.bf16 %v6673_v40, %v6672_v37 }
0x15bb   : > { %8585 = vmatpush3.bf16.xpose.msk.msra.mxu0 %vm9923_vm11, %v8583_v3  ;;  %v3462_v6 = vsel %vm1107_vm6, %v3420_v53, %v3444_v4  ;;  %v3447_v59 = vpop.xlane.xlu1 %3446 }
0x15bc   : > { %8586 = vmatprep.subr.bf16.mxu0 %v8969_v47  ;;  %v8587_v8 = vpack.c.bf16 %v3462_v6, %v3461_v5  ;;  %v3463_v12 = vsel %vm1107_vm6, %v9889_v25, %v3447_v59  ;;  %v9949_v25 = vld [vmem:[%s9276_s30 + $0x10] sm:$0xff] }
0x15bd   : > { %v3343_v52 = vrot.slane %v9949_v25, %v9279_v30  ;;  %v3735_v55 = vrot.slane %v9949_v25, %v9406_v21 }
0x15be   : > { %v3450_v10 = vpop.xlane.xlu0 %3449 }
0x15bf   : > { %v3464_v13 = vsel %vm1107_vm6, %v3422_v20, %v3450_v10  ;;  %v3453_v14 = vpop.xlane.xlu1 %3452 }
0x15c0   : > { %v8591_v16 = vpack.c.bf16 %v3464_v13, %v3463_v12  ;;  %v3465_v27 = vsel %vm1107_vm6, %v9895_v11, %v3453_v14 }
0x15c2   : > { %v3456_v22 = vpop.xlane.xlu0 %3455 }
0x15c3   : > { %8589 = vmatpush3.bf16.xpose.msk.msra.mxu0 %vm9923_vm11, %v8587_v8  ;;  %v3466_v29 = vsel %vm1107_vm6, %v3424_v41, %v3456_v22 }
0x15c4   : > { %8590 = vmatprep.subr.bf16.mxu0 %v8969_v47  ;;  %v8595_v53 = vpack.c.bf16 %v3466_v29, %v3465_v27 }
0x15cb   : > { %8593 = vmatpush3.bf16.xpose.msk.msra.mxu0 %vm9923_vm11, %v8591_v16 }
0x15cc   : > { %8594 = vmatprep.subr.bf16.mxu0 %v8969_v47 }
0x15d3   : > { %8597 = vmatpush3.bf16.xpose.msk.msra.mxu0 %vm9923_vm11, %v8595_v53 }
0x15d4   : > { %8628 = vmatprep.subr.bf16.mxu0 %v8969_v47 }
0x164f   : > { %v3413_v56 = vpop.f32.mrb[36].mxu1 }
0x1650   : > { %v9953_v32 = vadd.f32 %v3413_v56, %v3343_v52  ;;  %v7792_v2 = vpop.f32.mrb[37].mxu1 }
0x1652   : > { %v3457_v20 = vmul.f32 -2.0, %v9953_v32 }
0x1654   : > { %v3458_v11 = vsel %vm1107_vm6, %v3457_v20, 1.0 }
0x1655   : > { %7810 = vmatmul.mubr.msk.f32.vlgmr.msra.gmra.mrb[30].mxu0 %vm3467_vm10, %v3458_v11 }
0x1656   : > { %7882 = vmatprep.mubr.msk.f32.mxu0 %vm8972_vm5, %v8973_v60 }
0x1728   : > { %v3561_v33 = vpop.f32.mrb[30].mxu0 }
0x1729   : > { %v7811_v35 = vpop.f32.mrb[31].mxu0  ;;  %v3567_v38 = vsel %vm3566_vm12, %v3561_v33, inf }
0x172a   : > { %3568 = vmin.xlane.f32.xlu1 %v3567_v38  ;;  %v6676_v35 = vld [vmem:[%s9393_s25 + $0x308] sm:$0xff]  ;;  %v6677_v38 = vld [vmem:[%s9393_s25 + $0x310] sm:$0xff] }
0x17b7   : > { %v3569_v41 = vpop.xlane.xlu1 %3568 }
0x17b8   : > { %vm3570_vm15 = vcmp.le.f32.partialorder %v3561_v33, %v3569_v41  ;;  %v6675_v33 = vld [vmem:[%s9393_s25 + $0x300] sm:$0xff]  ;;  %v6678_v41 = vld [vmem:[%s9393_s25 + $0x318] sm:$0xff] }
0x17b9   : > { %v3571_v43 = vsel %vm3570_vm15, %v3565_v39, 64.0 }
0x17ba   : > { %v3572_v45 = vsel %vm3566_vm12, %v3571_v43, inf  ;;  %v8632_v43 = vpack.c.bf16 %v6678_v41, %v6677_v38 }
0x17bb   : > { %3573 = vmin.xlane.f32.xlu0 %v3572_v45  ;;  %v6679_v45 = vld [vmem:[%s9393_s25 + $0x320] sm:$0xff] }
0x1848   : > { %v3574_v46 = vpop.xlane.xlu0 %3573 }
0x1849   : > { %vm3575_vm9 = vcmp.eq.f32.partialorder %v3565_v39, %v3574_v46  ;;  %v8629_v39 = vpack.c.bf16 %v6676_v35, %v6675_v33  ;;  %v6680_v46 = vld [vmem:[%s9393_s25 + $0x328] sm:$0xff]  ;;  %v6690_v33 = vld [vmem:[%s9423_s28 + $0xd0] sm:$0xff]  ;;  %v6691_v35 = vld [vmem:[%s9423_s28 + $0xd8] sm:$0xff] }
0x184a   : > { %v9964_v48 = vsel %vm3575_vm9, 1.0, %v8973_v60  ;;  %v8635_v49 = vpack.c.bf16 %v6680_v46, %v6679_v45  ;;  %v8650_v38 = vpack.c.bf16 %v6691_v35, %v6690_v33  ;;  %vm4236_vm9 = vcmask 31744  }
0x184b   : > { %7829 = vmatmul.mubr.msk.f32.vlgmr.msra.gmra.mrb[38].mxu1 %vm1110_vm7, %v9964_v48  ;;  %8630 = vmatpush3.bf16.msra.mxu0 %v8629_v39  ;;  %v3862_v39 = vrot.slane %v9949_v25, %v9448_v19 }
0x184c   : > { %7855 = vmatprep.mubr.msk.f32.mxu1 %vm8972_vm5, %v8973_v60  ;;  %8612 = vmatpush3.bf16.msra.mxu1 %v8611_v54  ;;  %v8638_v54 = vpack.c.bf16 %v6682_v51, %v6681_v26  ;;  %v6694_v26 = vld [vmem:[%s9393_s25 + $0x368] sm:$0xff]  ;;  %v6695_v51 = vld [vmem:[%s9393_s25 + $0x370] sm:$0xff] }
0x184d   : > { %8613 = vmatprep.subr.bf16.mxu1 %v8969_v47  ;;  %8631 = vmatprep.subr.bf16.mxu0 %v8969_v47 }
0x184f   : > { %8633 = vmatpush3.bf16.msra.mxu0 %v8632_v43 }
0x1850   : > { %8615 = vmatpush3.bf16.msra.mxu1 %v8614_v17  ;;  %8634 = vmatprep.subr.bf16.mxu0 %v8969_v47  ;;  %v6683_v17 = vld [vmem:[%s9393_s25 + $0x340] sm:$0xff] }
0x1851   : > { %8616 = vmatprep.subr.bf16.mxu1 %v8969_v47 }
0x1853   : > { %8636 = vmatpush3.bf16.msra.mxu0 %v8635_v49  ;;  %v6693_v49 = vld [vmem:[%s9393_s25 + $0x360] sm:$0xff] }
0x1854   : > { %8618 = vmatpush3.bf16.msra.mxu1 %v8617_v61  ;;  %8637 = vmatprep.subr.bf16.mxu0 %v8969_v47  ;;  %v8641_v61 = vpack.c.bf16 %v6684_v1, %v6683_v17  ;;  %v6697_v1 = vld [vmem:[%s9393_s25 + $0x380] sm:$0xff] }
0x1855   : > { %8619 = vmatprep.subr.bf16.mxu1 %v8969_v47 }
0x1857   : > { %8639 = vmatpush3.bf16.msra.mxu0 %v8638_v54  ;;  %v8653_v54 = vpack.c.bf16 %v6694_v26, %v6693_v49  ;;  %v6708_v49 = vld [vmem:[%s9423_s28 + $0xf0] sm:$0xff]  ;;  %v6709_v26 = vld [vmem:[%s9423_s28 + $0xf8] sm:$0xff] }
0x1858   : > { %8621 = vmatpush3.bf16.msra.mxu1 %v8620_v24  ;;  %8640 = vmatprep.subr.bf16.mxu0 %v8969_v47 }
0x1859   : > { %8622 = vmatprep.subr.bf16.mxu1 %v8969_v47 }
0x185b   : > { %8642 = vmatpush3.bf16.msra.mxu0 %v8641_v61 }
0x185c   : > { %8624 = vmatpush3.bf16.msra.mxu1 %v8623_v36  ;;  %8643 = vmatprep.subr.bf16.mxu0 %v8969_v47  ;;  %v8644_v36 = vpack.c.bf16 %v6686_v58, %v6685_v57  ;;  %v6700_v57 = vld [vmem:[%s9393_s25 + $0x398] sm:$0xff] }
0x185d   : > { %8625 = vmatprep.subr.bf16.mxu1 %v8969_v47 }
0x185f   : > { %8645 = vmatpush3.bf16.msra.mxu0 %v8644_v36  ;;  %v3945_v36 = vrot.slane %v9949_v25, %v9465_v44 }
0x1860   : > { %8627 = vmatpush3.bf16.msra.mxu1 %v8626_v7  ;;  %8652 = vmatprep.subr.bf16.mxu0 %v8969_v47 }
0x1861   : > { %8646 = vmatprep.subr.bf16.mxu1 %v8969_v47 }
0x191e   : > { %v9986_v50 = vpop.f32.mrb[38].mxu1 }
0x191f   : > { %v3698_v28 = vrot.slane %v9986_v50, 7  ;;  %v3713_v3 = vrot.slane %v9986_v50, 1  ;;  %v7830_v4 = vpop.f32.mrb[39].mxu1 }
0x1921   : > { %v3700_v5 = vsel %vm674_vm0, 0.0, %v3698_v28  ;;  %v3715_v6 = vsel %vm674_vm0, 0.0, %v3713_v3  ;;  %v6688_v28 = vld [vmem:[%s9423_s28 + $0xc0] sm:$0xff]  ;;  %v6689_v3 = vld [vmem:[%s9423_s28 + $0xc8] sm:$0xff] }
0x1922   : > { %v3716_v8 = vsel %vm1411_vm13, %v3715_v6, 0.0  ;;  %v3701_v12 = vsel %vm1411_vm13, %v3700_v5, 0.0  ;;  %v8647_v4 = vpack.c.bf16 %v6689_v3, %v6688_v28 }
0x1923   : > { %v3722_v59 = vrot.slane %v3716_v8, 2  ;;  %v3718_v10 = vrot.slane %v3716_v8, 1  ;;  %v3703_v13 = vrot.slane %v3701_v12, 1  ;;  %v3707_v16 = vrot.slane %v3701_v12, 2 }
0x1925   : > { %3723 = vrot.lane.b32.xlu0 %v3722_v59, %s8974_s14  ;;  %3719 = vrot.lane.b32.xlu1 %v3718_v10, %s8971_s13 }
0x1929   : > { %3704 = vrot.lane.b32.xlu1 %v3703_v13, %s8971_s13 }
0x192d   : > { %3708 = vrot.lane.b32.xlu1 %v3707_v16, %s8974_s14 }
0x1997   : > { %v3720_v14 = vpop.permute.xlu1 %3719  ;;  %v3724_v22 = vpop.permute.xlu0 %3723 }
0x1998   : > { %v3726_v27 = vsel %vm1107_vm6, %v3716_v8, %v3720_v14 }
0x1999   : > { %v3727_v53 = vsel %vm1110_vm7, %v3726_v27, %v3724_v22 }
0x199a   : > { %v3729_v52 = vrot.slane %v3727_v53, 6 }
0x199b   : > { %v3705_v29 = vpop.permute.xlu1 %3704 }
0x199c   : > { %v3711_v56 = vsel %vm1107_vm6, %v3701_v12, %v3705_v29 }
0x199f   : > { %v3709_v2 = vpop.permute.xlu1 %3708 }
0x19a0   : > { %v3712_v20 = vsel %vm1110_vm7, %v3711_v56, %v3709_v2 }
0x19a1   : > { %v3731_v11 = vsel %vm1422_vm14, %v3712_v20, %v3729_v52 }
0x19a2   : > { %7856 = vmatmul.mubr.msk.f32.vlgmr.msra.gmra.mrb[40].mxu1 %vm1113_vm8, %v3731_v11 }
0x19a3   : > { %7893 = vmatprep.mubr.msk.f32.mxu1 %vm8972_vm5, %v8973_v60  ;;  %8648 = vmatpush3.bf16.msra.mxu1 %v8647_v4 }
0x19a4   : > { %8649 = vmatprep.subr.bf16.mxu1 %v8969_v47 }
0x19a7   : > { %8651 = vmatpush3.bf16.msra.mxu1 %v8650_v38 }
0x19a8   : > { %8670 = vmatprep.subr.bf16.mxu1 %v8969_v47 }
0x1a75   : > { %v3805_v18 = vpop.f32.mrb[40].mxu1 }
0x1a76   : > { %v10024_v62 = vadd.f32 %v3805_v18, %v3735_v55  ;;  %v7857_v63 = vpop.f32.mrb[41].mxu1  ;;  %v6696_v55 = vld [vmem:[%s9393_s25 + $0x378] sm:$0xff]  ;;  %v6698_v18 = vld [vmem:[%s9393_s25 + $0x388] sm:$0xff] }
0x1a77   : > { %v8656_v17 = vpack.c.bf16 %v6696_v55, %v6695_v51  ;;  %v8659_v61 = vpack.c.bf16 %v6698_v18, %v6697_v1  ;;  %v6699_v63 = vld [vmem:[%s9393_s25 + $0x390] sm:$0xff]  ;;  %v8674_v51 = vpack.c.bf16 %v6709_v26, %v6708_v49 }
0x1a78   : > { %v3809_v24 = vmax.f32 %v10024_v62, 0.0  ;;  %v8662_v58 = vpack.c.bf16 %v6700_v57, %v6699_v63  ;;  %v4155_v57 = vrot.slane %v9949_v25, %v9515_v42 }
0x1a7a   : > { %v3810_v37 = vmax.f32 %v3809_v24, 0.0 }
0x1a7c   : > { %v3825_v40 = vrot.slane %v3810_v37, 5  ;;  %v3840_v7 = vrot.slane %v3810_v37, 7  ;;  %v6701_v37 = vld [vmem:[%s9393_s25 + $0x3a0] sm:$0xff] }
0x1a7e   : > { %v3827_v5 = vsel %vm1411_vm13, 0.0, %v3825_v40  ;;  %v3842_v6 = vsel %vm1411_vm13, 0.0, %v3840_v7  ;;  %v6702_v40 = vld [vmem:[%s9393_s25 + $0x3a8] sm:$0xff] }
0x1a7f   : > { %v3843_v8 = vsel %vm1095_vm4, %v3842_v6, 0.0  ;;  %v3828_v12 = vsel %vm1095_vm4, %v3827_v5, 0.0  ;;  %v8665_v28 = vpack.c.bf16 %v6702_v40, %v6701_v37  ;;  %v6703_v6 = vld [vmem:[%s9393_s25 + $0x3b0] sm:$0xff] }
0x1a80   : > { %v3849_v59 = vrot.slane %v3843_v8, 6  ;;  %v3845_v10 = vrot.slane %v3843_v8, 3  ;;  %v3834_v13 = vrot.slane %v3828_v12, 6  ;;  %v3830_v16 = vrot.slane %v3828_v12, 3 }
0x1a82   : > { %3850 = vrot.lane.b32.xlu1 %v3849_v59, %s8974_s14  ;;  %3846 = vrot.lane.b32.xlu0 %v3845_v10, %s8971_s13 }
0x1a86   : > { %3835 = vrot.lane.b32.xlu1 %v3834_v13, %s8974_s14  ;;  %3831 = vrot.lane.b32.xlu0 %v3830_v16, %s8971_s13  ;;  %v6706_v16 = vld [vmem:[%s9423_s28 + $0xe0] sm:$0xff] }
0x1af4   : > { %v3851_v14 = vpop.permute.xlu1 %3850  ;;  %v3847_v22 = vpop.permute.xlu0 %3846 }
0x1af5   : > { %v3853_v27 = vsel %vm1107_vm6, %v3843_v8, %v3847_v22  ;;  %v6704_v8 = vld [vmem:[%s9393_s25 + $0x3b8] sm:$0xff] }
0x1af6   : > { %v3854_v29 = vsel %vm1110_vm7, %v3853_v27, %v3851_v14  ;;  %v8668_v59 = vpack.c.bf16 %v6704_v8, %v6703_v6  ;;  %v6707_v14 = vld [vmem:[%s9423_s28 + $0xe8] sm:$0xff]  ;;  %v6717_v8 = vld [vmem:[%s9393_s25 + $0x3e0] sm:$0xff] }
0x1af7   : > { %v3856_v56 = vrot.slane %v3854_v29, 6  ;;  %v8671_v22 = vpack.c.bf16 %v6707_v14, %v6706_v16  ;;  %v6721_v14 = vld [vmem:[%s9393_s25 + $0x400] sm:$0xff] }
0x1af8   : > { %v3836_v53 = vpop.permute.xlu1 %3835  ;;  %v3832_v52 = vpop.permute.xlu0 %3831 }
0x1af9   : > { %v3838_v2 = vsel %vm1107_vm6, %v3828_v12, %v3832_v52 }
0x1afa   : > { %v3839_v20 = vsel %vm1110_vm7, %v3838_v2, %v3836_v53 }
0x1afb   : > { %v3858_v11 = vsel %vm1422_vm14, %v3839_v20, %v3856_v56 }
0x1afc   : > { %7883 = vmatmul.mubr.msk.f32.vlgmr.msra.gmra.mrb[32].mxu0 %vm1113_vm8, %v3858_v11 }
0x1afd   : > { %7920 = vmatprep.mubr.msk.f32.mxu0 %vm8972_vm5, %v8973_v60  ;;  %8654 = vmatpush3.bf16.msra.mxu0 %v8653_v54  ;;  %v4072_v54 = vrot.slane %v9949_v25, %v9506_v31 }
0x1afe   : > { %8655 = vmatprep.subr.bf16.mxu0 %v8969_v47 }
0x1b01   : > { %8657 = vmatpush3.bf16.msra.mxu0 %v8656_v17 }
0x1b02   : > { %8658 = vmatprep.subr.bf16.mxu0 %v8969_v47 }
0x1b05   : > { %8660 = vmatpush3.bf16.msra.mxu0 %v8659_v61  ;;  %v10110_v61 = vmul.u32 2, %v9327_v15 }
0x1b06   : > { %8661 = vmatprep.subr.bf16.mxu0 %v8969_v47 }
0x1b07   : > { %v10113_v63 = vadd.s32 1, %v10110_v61  ;;  %vm4231_vm10 = vcmp.eq.s32.totalorder %v9271_v23, %v10110_v61 }
0x1b09   : > { %8663 = vmatpush3.bf16.msra.mxu0 %v8662_v58  ;;  %vm4233_vm11 = vcmp.eq.s32.totalorder %v9271_v23, %v10113_v63 }
0x1b0a   : > { %8664 = vmatprep.subr.bf16.mxu0 %v8969_v47  ;;  %vm4234_vm15 = vmor %vm4231_vm10, %vm4233_vm11 }
0x1b0b   : > { %v10122_v40 = vsel %vm4234_vm15, 1.0, %v8973_v60 }
0x1b0d   : > { %8666 = vmatpush3.bf16.msra.mxu0 %v8665_v28  ;;  %v6714_v28 = vld [vmem:[%s9393_s25 + $0x3c8] sm:$0xff] }
0x1b0e   : > { %8667 = vmatprep.subr.bf16.mxu0 %v8969_v47 }
0x1b11   : > { %8669 = vmatpush3.bf16.msra.mxu0 %v8668_v59  ;;  %v6718_v59 = vld [vmem:[%s9393_s25 + $0x3e8] sm:$0xff] }
0x1b12   : > { %8694 = vmatprep.subr.bf16.mxu0 %v8969_v47 }
0x1bcf   : > { %v3932_v41 = vpop.f32.mrb[32].mxu0 }
0x1bd0   : > { %v3933_v43 = vadd.f32 %v3932_v41, %v3862_v39  ;;  %v7884_v45 = vpop.f32.mrb[33].mxu0 }
0x1bd2   : > { %v3936_v46 = vmax.f32 %v3933_v43, 0.0 }
0x1bd4   : > { %7894 = vmatmul.mubr.msk.f32.vlgmr.msra.gmra.mrb[42].mxu1 %vm1107_vm6, %v3936_v46 }
0x1bd5   : > { %7931 = vmatprep.mubr.msk.f32.mxu1 %vm8972_vm5, %v8973_v60  ;;  %8672 = vmatpush3.bf16.msra.mxu1 %v8671_v22  ;;  %v6722_v22 = vld [vmem:[%s9393_s25 + $0x408] sm:$0xff] }
0x1bd6   : > { %8673 = vmatprep.subr.bf16.mxu1 %v8969_v47 }
0x1bd9   : > { %8675 = vmatpush3.bf16.msra.mxu1 %v8674_v51 }
0x1bda   : > { %7934 = vmatprep.subr.mxu1 %v8973_v60 }
0x1ca7   : > { %v4015_v7 = vpop.f32.mrb[42].mxu1 }
0x1ca8   : > { %v4016_v3 = vadd.f32 %v4015_v7, %v3945_v36  ;;  %v7895_v4 = vpop.f32.mrb[43].mxu1  ;;  %v6713_v7 = vld [vmem:[%s9393_s25 + $0x3c0] sm:$0xff] }
0x1ca9   : > { %v8677_v4 = vpack.c.bf16 %v6714_v28, %v6713_v7  ;;  %v6730_v28 = vld [vmem:[%s9393_s25 + $0x440] sm:$0xff] }
0x1caa   : > { %v4019_v5 = vadd.f32 %v4016_v3, %v3809_v24  ;;  %v6715_v3 = vld [vmem:[%s9393_s25 + $0x3d0] sm:$0xff] }
0x1cac   : > { %v4020_v10 = vmax.f32 %v4019_v5, 0.0 }
0x1cae   : > { %v4035_v12 = vrot.slane %v4020_v10, 7  ;;  %v4050_v13 = vrot.slane %v4020_v10, 1  ;;  %v8683_v10 = vpack.c.bf16 %v6718_v59, %v6717_v8  ;;  %v4364_v59 = vrot.slane %v9949_v25, %v9593_v9 }
0x1cb0   : > { %v4052_v27 = vsel %vm674_vm0, 0.0, %v4050_v13  ;;  %v4037_v29 = vsel %vm674_vm0, 0.0, %v4035_v12  ;;  %v6719_v12 = vld [vmem:[%s9393_s25 + $0x3f0] sm:$0xff]  ;;  %v6720_v13 = vld [vmem:[%s9393_s25 + $0x3f8] sm:$0xff] }
0x1cb1   : > { %v4053_v62 = vsel %vm1411_vm13, %v4052_v27, 0.0  ;;  %v4038_v52 = vsel %vm1411_vm13, %v4037_v29, 0.0  ;;  %v8686_v16 = vpack.c.bf16 %v6720_v13, %v6719_v12  ;;  %v8689_v27 = vpack.c.bf16 %v6722_v22, %v6721_v14  ;;  %v6723_v29 = vld [vmem:[%s9393_s25 + $0x410] sm:$0xff]  ;;  %v6735_v12 = vld [vmem:[%s9393_s25 + $0x468] sm:$0xff] }
0x1cb2   : > { %v4059_v24 = vrot.slane %v4053_v62, 2  ;;  %v4055_v53 = vrot.slane %v4053_v62, 1  ;;  %v4044_v56 = vrot.slane %v4038_v52, 2  ;;  %v4040_v2 = vrot.slane %v4038_v52, 1 }
0x1cb4   : > { %4060 = vrot.lane.b32.xlu1 %v4059_v24, %s8974_s14  ;;  %4056 = vrot.lane.b32.xlu0 %v4055_v53, %s8971_s13 }
0x1cb8   : > { %4045 = vrot.lane.b32.xlu1 %v4044_v56, %s8974_s14  ;;  %4041 = vrot.lane.b32.xlu0 %v4040_v2, %s8971_s13 }
0x1d26   : > { %v4061_v20 = vpop.permute.xlu1 %4060  ;;  %v4057_v11 = vpop.permute.xlu0 %4056 }
0x1d27   : > { %v4063_v33 = vsel %vm1107_vm6, %v4053_v62, %v4057_v11  ;;  %v6724_v62 = vld [vmem:[%s9393_s25 + $0x418] sm:$0xff] }
0x1d28   : > { %v4064_v35 = vsel %vm1110_vm7, %v4063_v33, %v4061_v20  ;;  %v8692_v24 = vpack.c.bf16 %v6724_v62, %v6723_v29  ;;  %v6737_v29 = vld [vmem:[%s9393_s25 + $0x478] sm:$0xff] }
0x1d29   : > { %v4066_v41 = vrot.slane %v4064_v35, 6 }
0x1d2a   : > { %v4046_v38 = vpop.permute.xlu1 %4045  ;;  %v4042_v39 = vpop.permute.xlu0 %4041 }
0x1d2b   : > { %v4048_v43 = vsel %vm1107_vm6, %v4038_v52, %v4042_v39 }
0x1d2c   : > { %v4049_v45 = vsel %vm1110_vm7, %v4048_v43, %v4046_v38 }
0x1d2d   : > { %v4068_v46 = vsel %vm1422_vm14, %v4049_v45, %v4066_v41 }
0x1d2e   : > { %7921 = vmatmul.mubr.msk.f32.vlgmr.msra.gmra.mrb[34].mxu0 %vm1113_vm8, %v4068_v46 }
0x1d2f   : > { %7990 = vmatprep.mubr.msk.f32.mxu0 %vm8972_vm5, %v8973_v60 }
0x1e01   : > { %v4142_v55 = vpop.f32.mrb[34].mxu0 }
0x1e02   : > { %v4143_v17 = vadd.f32 %v4142_v55, %v4072_v54  ;;  %v7922_v1 = vpop.f32.mrb[35].mxu0 }
0x1e04   : > { %v4146_v18 = vmax.f32 %v4143_v17, 0.0 }
0x1e06   : > { %7932 = vmatmul.mubr.msk.f32.vlgmr.msra.gmra.mrb[44].mxu1 %vm1107_vm6, %v4146_v18 }
0x1e07   : > { %7936 = vmatprep.mubr.msk.f32.mxu1 %vm8972_vm5, %v8973_v60 }
0x1ed9   : > { %v4225_v58 = vpop.f32.mrb[44].mxu1 }
0x1eda   : > { %v4226_v15 = vadd.f32 %v4225_v58, %v4155_v57  ;;  %v7933_v36 = vpop.f32.mrb[45].mxu1  ;;  %v6726_v57 = vld [vmem:[%s9393_s25 + $0x420] sm:$0xff]  ;;  %v6727_v58 = vld [vmem:[%s9393_s25 + $0x428] sm:$0xff] }
0x1edb   : > { %v8695_v36 = vpack.c.bf16 %v6727_v58, %v6726_v57 }
0x1edc   : > { %v4229_v37 = vadd.f32 %v4226_v15, %v4019_v5  ;;  %v6716_v5 = vld [vmem:[%s9393_s25 + $0x3d8] sm:$0xff]  ;;  %v6728_v15 = vld [vmem:[%s9393_s25 + $0x430] sm:$0xff] }
0x1edd   : > { %v8680_v6 = vpack.c.bf16 %v6716_v5, %v6715_v3  ;;  %8696 = vmatpush3.bf16.msra.mxu0 %v8695_v36  ;;  %v6731_v3 = vld [vmem:[%s9393_s25 + $0x448] sm:$0xff]  ;;  %v6732_v5 = vld [vmem:[%s9393_s25 + $0x450] sm:$0xff]  ;;  %v6742_v36 = vld [vmem:[%s9423_s28 + $0x118] sm:$0xff] }
0x1ede   : > { %7935 = vmatpush3.msk.msra.mxu1 %vm2087_vm1, %v4229_v37  ;;  %v6729_v37 = vld [vmem:[%s9393_s25 + $0x438] sm:$0xff]  ;;  %8697 = vmatprep.subr.bf16.mxu0 %v8969_v47 }
0x1edf   : > { %7937 = vmatmul.mubr.msk.f32.vlgmr.msra.gmra.mrb[46].mxu1 %vm4236_vm9, %v10122_v40  ;;  %8676 = vmatprep.subr.bf16.mxu1 %v8969_v47  ;;  %v8698_v7 = vpack.c.bf16 %v6729_v37, %v6728_v15 }
0x1ee0   : > { %7963 = vmatprep.mubr.msk.f32.mxu1 %vm8972_vm5, %v8973_v60  ;;  %8678 = vmatpush3.bf16.msra.mxu1 %v8677_v4  ;;  %v8701_v4 = vpack.c.bf16 %v6731_v3, %v6730_v28 }
0x1ee1   : > { %8679 = vmatprep.subr.bf16.mxu1 %v8969_v47  ;;  %8699 = vmatpush3.bf16.msra.mxu0 %v8698_v7  ;;  %v4492_v7 = vrot.slane %v9949_v25, %v9636_v0 }
0x1ee2   : > { %8700 = vmatprep.subr.bf16.mxu0 %v8969_v47 }
0x1ee4   : > { %8681 = vmatpush3.bf16.msra.mxu1 %v8680_v6  ;;  %v6733_v6 = vld [vmem:[%s9393_s25 + $0x458] sm:$0xff] }
0x1ee5   : > { %8682 = vmatprep.subr.bf16.mxu1 %v8969_v47  ;;  %8702 = vmatpush3.bf16.msra.mxu0 %v8701_v4  ;;  %v8704_v8 = vpack.c.bf16 %v6733_v6, %v6732_v5  ;;  %v6744_v6 = vld [vmem:[%s9393_s25 + $0x480] sm:$0xff] }
0x1ee6   : > { %8703 = vmatprep.subr.bf16.mxu0 %v8969_v47 }
0x1ee8   : > { %8684 = vmatpush3.bf16.msra.mxu1 %v8683_v10  ;;  %v6734_v10 = vld [vmem:[%s9393_s25 + $0x460] sm:$0xff] }
0x1ee9   : > { %8685 = vmatprep.subr.bf16.mxu1 %v8969_v47  ;;  %8705 = vmatpush3.bf16.msra.mxu0 %v8704_v8  ;;  %v8707_v13 = vpack.c.bf16 %v6735_v12, %v6734_v10  ;;  %v6745_v8 = vld [vmem:[%s9393_s25 + $0x488] sm:$0xff]  ;;  %v6747_v12 = vld [vmem:[%s9393_s25 + $0x498] sm:$0xff] }
0x1eea   : > { %8706 = vmatprep.subr.bf16.mxu0 %v8969_v47  ;;  %v8719_v10 = vpack.c.bf16 %v6745_v8, %v6744_v6  ;;  %v6759_v6 = vld [vmem:[%s9423_s28 + $0x130] sm:$0xff]  ;;  %v6760_v8 = vld [vmem:[%s9423_s28 + $0x138] sm:$0xff] }
0x1eec   : > { %8687 = vmatpush3.bf16.msra.mxu1 %v8686_v16 }
0x1eed   : > { %8688 = vmatprep.subr.bf16.mxu1 %v8969_v47  ;;  %8708 = vmatpush3.bf16.msra.mxu0 %v8707_v13  ;;  %v6748_v13 = vld [vmem:[%s9393_s25 + $0x4a0] sm:$0xff] }
0x1eee   : > { %8709 = vmatprep.subr.bf16.mxu0 %v8969_v47 }
0x1ef0   : > { %8690 = vmatpush3.bf16.msra.mxu1 %v8689_v27  ;;  %v6736_v27 = vld [vmem:[%s9393_s25 + $0x470] sm:$0xff] }
0x1ef1   : > { %8691 = vmatprep.subr.bf16.mxu1 %v8969_v47  ;;  %v8710_v62 = vpack.c.bf16 %v6737_v29, %v6736_v27  ;;  %v6750_v27 = vld [vmem:[%s9393_s25 + $0x4b0] sm:$0xff]  ;;  %v6751_v29 = vld [vmem:[%s9393_s25 + $0x4b8] sm:$0xff] }
0x1ef3   : > { %8711 = vmatpush3.bf16.msra.mxu0 %v8710_v62  ;;  %v8728_v62 = vpack.c.bf16 %v6751_v29, %v6750_v27 }
0x1ef4   : > { %8693 = vmatpush3.bf16.msra.mxu1 %v8692_v24  ;;  %8718 = vmatprep.subr.bf16.mxu0 %v8969_v47 }
0x1ef5   : > { %8712 = vmatprep.subr.bf16.mxu1 %v8969_v47 }
0x1fb2   : > { %v4309_v53 = vpop.f32.mrb[46].mxu1 }
0x1fb3   : > { %v4327_v52 = vrot.slane %v4309_v53, 7  ;;  %v4342_v56 = vrot.slane %v4309_v53, 3  ;;  %v7938_v2 = vpop.f32.mrb[47].mxu1 }
0x1fb4   : > { %v6740_v2 = vld [vmem:[%s9423_s28 + $0x108] sm:$0xff] }
0x1fb5   : > { %v4329_v20 = vsel %vm674_vm0, 0.0, %v4327_v52  ;;  %v4344_v11 = vsel %vm674_vm0, 0.0, %v4342_v56  ;;  %v6739_v56 = vld [vmem:[%s9423_s28 + $0x100] sm:$0xff] }
0x1fb6   : > { %v4345_v33 = vsel %vm1095_vm4, %v4344_v11, 0.0  ;;  %v4330_v39 = vsel %vm1095_vm4, %v4329_v20, 0.0  ;;  %v8713_v20 = vpack.c.bf16 %v6740_v2, %v6739_v56  ;;  %v6753_v56 = vld [vmem:[%s9393_s25 + $0x4c8] sm:$0xff] }
0x1fb7   : > { %v4347_v35 = vrot.slane %v4345_v33, 1  ;;  %v4351_v38 = vrot.slane %v4345_v33, 2  ;;  %v4332_v41 = vrot.slane %v4330_v39, 1  ;;  %v4336_v43 = vrot.slane %v4330_v39, 2 }
0x1fb9   : > { %4348 = vrot.lane.b32.xlu0 %v4347_v35, %s8971_s13  ;;  %4352 = vrot.lane.b32.xlu1 %v4351_v38, %s8974_s14 }
0x1fbd   : > { %4333 = vrot.lane.b32.xlu0 %v4332_v41, %s8971_s13  ;;  %4337 = vrot.lane.b32.xlu1 %v4336_v43, %s8974_s14 }
0x202b   : > { %v4349_v45 = vpop.permute.xlu0 %4348  ;;  %v4353_v46 = vpop.permute.xlu1 %4352 }
0x202c   : > { %v4355_v49 = vsel %vm1107_vm6, %v4345_v33, %v4349_v45 }
0x202d   : > { %v4356_v26 = vsel %vm1110_vm7, %v4355_v49, %v4353_v46 }
0x202e   : > { %v4358_v55 = vrot.slane %v4356_v26, 4 }
0x202f   : > { %v4334_v51 = vpop.permute.xlu0 %4333  ;;  %v4338_v54 = vpop.permute.xlu1 %4337 }
0x2030   : > { %v4340_v17 = vsel %vm1107_vm6, %v4330_v39, %v4334_v51 }
0x2031   : > { %v4341_v1 = vsel %vm1110_vm7, %v4340_v17, %v4338_v54 }
0x2032   : > { %v4360_v18 = vsel %vm2087_vm1, %v4341_v1, %v4358_v55 }
0x2033   : > { %7964 = vmatmul.mubr.msk.f32.vlgmr.msra.gmra.mrb[48].mxu1 %vm1113_vm8, %v4360_v18 }
0x2034   : > { %8001 = vmatprep.mubr.msk.f32.mxu1 %vm8972_vm5, %v8973_v60  ;;  %8714 = vmatpush3.bf16.msra.mxu1 %v8713_v20 }
0x2035   : > { %8715 = vmatprep.subr.bf16.mxu1 %v8969_v47 }
0x2106   : > { %v4434_v16 = vpop.f32.mrb[48].mxu1 }
0x2107   : > { %v10179_v14 = vadd.f32 %v4434_v16, %v4364_v59  ;;  %v7965_v22 = vpop.f32.mrb[49].mxu1  ;;  %v6746_v59 = vld [vmem:[%s9393_s25 + $0x490] sm:$0xff]  ;;  %v6749_v16 = vld [vmem:[%s9393_s25 + $0x4a8] sm:$0xff] }
0x2108   : > { %v8722_v25 = vpack.c.bf16 %v6747_v12, %v6746_v59  ;;  %v8725_v22 = vpack.c.bf16 %v6749_v16, %v6748_v13  ;;  %v8740_v59 = vpack.c.bf16 %v6760_v8, %v6759_v6 }
0x2109   : > { %v4438_v24 = vmax.f32 %v10179_v14, 0.0 }
0x210b   : > { %v4453_v53 = vrot.slane %v4438_v24, 5  ;;  %v4469_v52 = vrot.slane %v4438_v24, 1  ;;  %v10230_v24 = vld [vmem:[%s9276_s30 + $0x18] sm:$0xff] }
0x210c   : > { %v4785_v27 = vrot.slane %v10230_v24, %v9448_v19  ;;  %v6764_v19 = vld [vmem:[%s9393_s25 + $0x4e0] sm:$0xff] }
0x210d   : > { %v4455_v11 = vsel %vm1411_vm13, 0.0, %v4453_v53  ;;  %v4471_v33 = vsel %vm1411_vm13, 0.0, %v4469_v52  ;;  %v4575_v53 = vrot.slane %v10230_v24, %v9279_v30  ;;  %v6752_v52 = vld [vmem:[%s9393_s25 + $0x4c0] sm:$0xff] }
0x210e   : > { %v4472_v35 = vsel %vm695_vm2, %v4471_v33, 0.0  ;;  %v4456_v38 = vsel %vm695_vm2, %v4455_v11, 0.0  ;;  %v8731_v20 = vpack.c.bf16 %v6753_v56, %v6752_v52 }
0x210f   : > { %v4474_v39 = vrot.slane %v4472_v35, 3  ;;  %v4478_v41 = vrot.slane %v4472_v35, 6  ;;  %v4462_v45 = vrot.slane %v4456_v38, 6  ;;  %v4458_v46 = vrot.slane %v4456_v38, 3 }
0x2111   : > { %4475 = vrot.lane.b32.xlu0 %v4474_v39, %s8971_s13  ;;  %v4479_v43 = vsel %vm1422_vm14, %v4478_v41, %v9611_v34  ;;  %v4463_v49 = vsel %vm1422_vm14, %v4462_v45, %v9611_v34  ;;  %v6741_v34 = vld [vmem:[%s9423_s28 + $0x110] sm:$0xff]  ;;  %v6755_v39 = vld [vmem:[%s9393_s25 + $0x4d8] sm:$0xff] }
0x2112   : > { %4480 = vrot.lane.b32.xlu1 %v4479_v43, %s8974_s14  ;;  %v8716_v37 = vpack.c.bf16 %v6742_v36, %v6741_v34 }
0x2114   : > { %8717 = vmatpush3.bf16.msra.mxu1 %v8716_v37 }
0x2115   : > { %4459 = vrot.lane.b32.xlu0 %v4458_v46, %s8971_s13  ;;  %8736 = vmatprep.subr.bf16.mxu1 %v8969_v47 }
0x2116   : > { %4464 = vrot.lane.b32.xlu1 %v4463_v49, %s8974_s14  ;;  %v6757_v49 = vld [vmem:[%s9423_s28 + $0x120] sm:$0xff] }
0x2183   : > { %v4476_v26 = vpop.permute.xlu0 %4475 }
0x2184   : > { %v4483_v51 = vsel %vm1107_vm6, %v4472_v35, %v4476_v26  ;;  %v4481_v54 = vpop.permute.xlu1 %4480  ;;  %v6758_v26 = vld [vmem:[%s9423_s28 + $0x128] sm:$0xff] }
0x2185   : > { %v4484_v55 = vsel %vm1110_vm7, %v4483_v51, %v4481_v54  ;;  %v8737_v51 = vpack.c.bf16 %v6758_v26, %v6757_v49  ;;  %v6772_v49 = vld [vmem:[%s9393_s25 + $0x520] sm:$0xff]  ;;  %v6773_v26 = vld [vmem:[%s9393_s25 + $0x528] sm:$0xff] }
0x2186   : > { %v4486_v1 = vrot.slane %v4484_v55, 4 }
0x2187   : > { %v4460_v17 = vpop.permute.xlu0 %4459 }
0x2188   : > { %v4467_v18 = vsel %vm1107_vm6, %v4456_v38, %v4460_v17  ;;  %v4465_v57 = vpop.permute.xlu1 %4464  ;;  %v6754_v38 = vld [vmem:[%s9393_s25 + $0x4d0] sm:$0xff] }
0x2189   : > { %v4468_v58 = vsel %vm1110_vm7, %v4467_v18, %v4465_v57  ;;  %v8734_v41 = vpack.c.bf16 %v6755_v39, %v6754_v38  ;;  %v6768_v39 = vld [vmem:[%s9393_s25 + $0x500] sm:$0xff] }
0x218a   : > { %v4488_v15 = vsel %vm2087_vm1, %v4468_v58, %v4486_v1 }
0x218b   : > { %7991 = vmatmul.mubr.msk.f32.vlgmr.msra.gmra.mrb[36].mxu0 %vm1113_vm8, %v4488_v15 }
0x218c   : > { %8028 = vmatprep.mubr.msk.f32.mxu0 %vm8972_vm5, %v8973_v60  ;;  %8720 = vmatpush3.bf16.msra.mxu0 %v8719_v10  ;;  %v4702_v10 = vrot.slane %v10230_v24, %v9406_v21 }
0x218d   : > { %8721 = vmatprep.subr.bf16.mxu0 %v8969_v47 }
0x2190   : > { %8723 = vmatpush3.bf16.msra.mxu0 %v8722_v25 }
0x2191   : > { %8724 = vmatprep.subr.bf16.mxu0 %v8969_v47 }
0x2194   : > { %8726 = vmatpush3.bf16.msra.mxu0 %v8725_v22  ;;  %v4860_v22 = vadd.s32 8, %v9271_v23 }
0x2195   : > { %8727 = vmatprep.subr.bf16.mxu0 %v8969_v47 }
0x2196   : > { %vm4861_vm10 = vcmp.eq.s32.totalorder %v4860_v22, %v10110_v61  ;;  %vm4862_vm11 = vcmp.eq.s32.totalorder %v4860_v22, %v10113_v63 }
0x2197   : > { %vm4863_vm15 = vmor %vm4861_vm10, %vm4862_vm11 }
0x2198   : > { %8729 = vmatpush3.bf16.msra.mxu0 %v8728_v62  ;;  %v10269_v56 = vsel %vm4863_vm15, 1.0, %v8973_v60 }
0x2199   : > { %8730 = vmatprep.subr.bf16.mxu0 %v8969_v47 }
0x219c   : > { %8732 = vmatpush3.bf16.msra.mxu0 %v8731_v20  ;;  %v6766_v20 = vld [vmem:[%s9393_s25 + $0x4f0] sm:$0xff] }
0x219d   : > { %8733 = vmatprep.subr.bf16.mxu0 %v8969_v47 }
0x21a0   : > { %8735 = vmatpush3.bf16.msra.mxu0 %v8734_v41  ;;  %v6769_v41 = vld [vmem:[%s9393_s25 + $0x508] sm:$0xff] }
0x225e   : > { %v4562_v28 = vpop.f32.mrb[36].mxu0 }
0x225f   : > { %v4563_v3 = vadd.f32 %v4562_v28, %v4492_v7  ;;  %v7992_v4 = vpop.f32.mrb[37].mxu0 }
0x2261   : > { %v4566_v5 = vmax.f32 %v4563_v3, 0.0 }
0x2263   : > { %8002 = vmatmul.mubr.msk.f32.vlgmr.msra.gmra.mrb[50].mxu1 %vm1107_vm6, %v4566_v5 }
0x2264   : > { %8039 = vmatprep.mubr.msk.f32.mxu1 %vm8972_vm5, %v8973_v60  ;;  %8738 = vmatpush3.bf16.msra.mxu1 %v8737_v51  ;;  %vm4865_vm5 = vcmask 64512   ;;  %v8758_v51 = vpack.c.bf16 %v6773_v26, %v6772_v49  ;;  %v6787_v49 = vld [vmem:[%s9393_s25 + $0x588] sm:$0xff] }
0x2265   : > { %8739 = vmatprep.subr.bf16.mxu1 %v8969_v47 }
0x2268   : > { %8741 = vmatpush3.bf16.msra.mxu1 %v8740_v59 }
0x2336   : > { %v4645_v2 = vpop.f32.mrb[50].mxu1 }
0x2337   : > { %v4646_v11 = vadd.f32 %v4645_v2, %v4575_v53  ;;  %v8003_v33 = vpop.f32.mrb[51].mxu1  ;;  %v6765_v2 = vld [vmem:[%s9393_s25 + $0x4e8] sm:$0xff] }
0x2338   : > { %v6767_v33 = vld [vmem:[%s9393_s25 + $0x4f8] sm:$0xff] }
0x2339   : > { %v4649_v35 = vadd.f32 %v4646_v11, %v10179_v14  ;;  %v8742_v11 = vpack.c.bf16 %v6765_v2, %v6764_v19  ;;  %v8746_v38 = vpack.c.bf16 %v6767_v33, %v6766_v20  ;;  %v6779_v19 = vld [vmem:[%s9393_s25 + $0x548] sm:$0xff]  ;;  %v6780_v2 = vld [vmem:[%s9393_s25 + $0x550] sm:$0xff] }
0x233b   : > { %v4650_v43 = vmax.f32 %v4649_v35, 0.0 }
0x233d   : > { %v4665_v45 = vrot.slane %v4650_v43, 7  ;;  %v4680_v46 = vrot.slane %v4650_v43, 3  ;;  %v6770_v43 = vld [vmem:[%s9393_s25 + $0x510] sm:$0xff] }
0x233f   : > { %v4682_v54 = vsel %vm674_vm0, 0.0, %v4680_v46  ;;  %v4667_v55 = vsel %vm674_vm0, 0.0, %v4665_v45  ;;  %v6771_v45 = vld [vmem:[%s9393_s25 + $0x518] sm:$0xff] }
0x2340   : > { %v4683_v17 = vsel %vm1095_vm4, %v4682_v54, 0.0  ;;  %v4668_v18 = vsel %vm1095_vm4, %v4667_v55, 0.0  ;;  %v8754_v46 = vpack.c.bf16 %v6771_v45, %v6770_v43  ;;  %v6774_v54 = vld [vmem:[%s9393_s25 + $0x530] sm:$0xff]  ;;  %v6775_v55 = vld [vmem:[%s9393_s25 + $0x538] sm:$0xff] }
0x2341   : > { %v4689_v14 = vrot.slane %v4683_v17, 2  ;;  %v4685_v1 = vrot.slane %v4683_v17, 1  ;;  %v4674_v57 = vrot.slane %v4668_v18, 2  ;;  %v4670_v58 = vrot.slane %v4668_v18, 1  ;;  %v6785_v43 = vld [vmem:[%s9393_s25 + $0x578] sm:$0xff] }
0x2343   : > { %4690 = vrot.lane.b32.xlu1 %v4689_v14, %s8974_s14  ;;  %4686 = vrot.lane.b32.xlu0 %v4685_v1, %s8971_s13 }
0x2347   : > { %4675 = vrot.lane.b32.xlu1 %v4674_v57, %s8974_s14  ;;  %4671 = vrot.lane.b32.xlu0 %v4670_v58, %s8971_s13 }
0x23b5   : > { %v4691_v15 = vpop.permute.xlu1 %4690  ;;  %v4687_v34 = vpop.permute.xlu0 %4686 }
0x23b6   : > { %v4693_v36 = vsel %vm1107_vm6, %v4683_v17, %v4687_v34  ;;  %v8762_v17 = vpack.c.bf16 %v6775_v55, %v6774_v54  ;;  %v6788_v54 = vld [vmem:[%s9393_s25 + $0x590] sm:$0xff]  ;;  %v6789_v55 = vld [vmem:[%s9393_s25 + $0x598] sm:$0xff] }
0x23b7   : > { %v4694_v47 = vsel %vm1110_vm7, %v4693_v36, %v4691_v15 }
0x23b8   : > { %v4696_v28 = vrot.slane %v4694_v47, 4 }
0x23b9   : > { %v4676_v37 = vpop.permute.xlu1 %4675  ;;  %v4672_v7 = vpop.permute.xlu0 %4671 }
0x23ba   : > { %v4678_v3 = vsel %vm1107_vm6, %v4668_v18, %v4672_v7 }
0x23bb   : > { %v4679_v4 = vsel %vm1110_vm7, %v4678_v3, %v4676_v37 }
0x23bc   : > { %v4698_v5 = vsel %vm2087_vm1, %v4679_v4, %v4696_v28 }
0x23bd   : > { %8029 = vmatmul.mubr.msk.f32.vlgmr.msra.gmra.mrb[38].mxu0 %vm1113_vm8, %v4698_v5 }
0x2490   : > { %v4772_v12 = vpop.f32.mrb[38].mxu0 }
0x2491   : > { %v4773_v25 = vadd.f32 %v4772_v12, %v4702_v10  ;;  %v8030_v13 = vpop.f32.mrb[39].mxu0 }
0x2493   : > { %v4776_v16 = vmax.f32 %v4773_v25, 0.0 }
0x2495   : > { %8040 = vmatmul.mubr.msk.f32.vlgmr.msra.gmra.mrb[52].mxu1 %vm1107_vm6, %v4776_v16 }
0x2496   : > { %8044 = vmatprep.mubr.msk.f32.mxu1 %vm4865_vm5, %v10122_v40 }
0x2568   : > { %v4855_v29 = vpop.f32.mrb[52].mxu1 }
0x2569   : > { %v4856_v62 = vadd.f32 %v4855_v29, %v4785_v27  ;;  %v8041_v53 = vpop.f32.mrb[53].mxu1 }
0x256b   : > { %v4859_v52 = vadd.f32 %v4856_v62, %v4649_v35  ;;  %v8750_v35 = vpack.c.bf16 %v6769_v41, %v6768_v39  ;;  %v6783_v39 = vld [vmem:[%s9393_s25 + $0x568] sm:$0xff] }
0x256d   : > { %8042 = vmatprep.subr.mxu1 %v4859_v52 }
0x256e   : > { %8043 = vmatpush3.msra.mxu1 %v4859_v52  ;;  %v6778_v52 = vld [vmem:[%s9393_s25 + $0x540] sm:$0xff] }
0x256f   : > { %8045 = vmatmul.mubr.msk.f32.vlgmr.msra.gmra.mrb[54].mxu1 %vm4865_vm5, %v10269_v56  ;;  %8743 = vmatprep.subr.bf16.mxu1 %v8742_v11  ;;  %v8766_v20 = vpack.c.bf16 %v6779_v19, %v6778_v52 }
0x2570   : > { %8745 = vmatpush3.bf16.msra.mxu1 %v8742_v11  ;;  %v6781_v11 = vld [vmem:[%s9393_s25 + $0x558] sm:$0xff] }
0x2571   : > { %8747 = vmatprep.subr.bf16.mxu1 %v8746_v38  ;;  %v8770_v33 = vpack.c.bf16 %v6781_v11, %v6780_v2  ;;  %8767 = vmatprep.subr.bf16.mxu0 %v8766_v20 }
0x2572   : > { %8769 = vmatpush3.bf16.msra.mxu0 %v8766_v20 }
0x2573   : > { %8771 = vmatprep.subr.bf16.mxu0 %v8770_v33 }
0x2574   : > { %8749 = vmatpush3.bf16.msra.mxu1 %v8746_v38  ;;  %v6782_v38 = vld [vmem:[%s9393_s25 + $0x560] sm:$0xff] }
0x2575   : > { %8751 = vmatprep.subr.bf16.mxu1 %v8750_v35  ;;  %v8774_v41 = vpack.c.bf16 %v6783_v39, %v6782_v38  ;;  %v6794_v38 = vld [vmem:[%s9423_s28 + $0x150] sm:$0xff]  ;;  %v6795_v39 = vld [vmem:[%s9423_s28 + $0x158] sm:$0xff] }
0x2576   : > { %8773 = vmatpush3.bf16.msra.mxu0 %v8770_v33 }
0x2577   : > { %8775 = vmatprep.subr.bf16.mxu0 %v8774_v41 }
0x2578   : > { %8753 = vmatpush3.bf16.msra.mxu1 %v8750_v35  ;;  %v6784_v35 = vld [vmem:[%s9393_s25 + $0x570] sm:$0xff] }
0x2579   : > { %8755 = vmatprep.subr.bf16.mxu1 %v8754_v46  ;;  %v8778_v45 = vpack.c.bf16 %v6785_v43, %v6784_v35  ;;  %v5146_v35 = vrot.slane %v10230_v24, %v9506_v31  ;;  %v6801_v31 = vld [vmem:[%s9393_s25 + $0x5b8] sm:$0xff] }
0x257a   : > { %8777 = vmatpush3.bf16.msra.mxu0 %v8774_v41  ;;  %v8794_v41 = vpack.c.bf16 %v6795_v39, %v6794_v38 }
0x257b   : > { %8779 = vmatprep.subr.bf16.mxu0 %v8778_v45 }
0x257c   : > { %8757 = vmatpush3.bf16.msra.mxu1 %v8754_v46  ;;  %v6786_v46 = vld [vmem:[%s9393_s25 + $0x580] sm:$0xff] }
0x257d   : > { %8759 = vmatprep.subr.bf16.mxu1 %v8758_v51  ;;  %v8782_v26 = vpack.c.bf16 %v6787_v49, %v6786_v46 }
0x257e   : > { %8781 = vmatpush3.bf16.msra.mxu0 %v8778_v45 }
0x257f   : > { %8783 = vmatprep.subr.bf16.mxu0 %v8782_v26 }
0x2580   : > { %8761 = vmatpush3.bf16.msra.mxu1 %v8758_v51  ;;  %v5004_v51 = vrot.slane %v10230_v24, %v9465_v44 }
0x2581   : > { %8763 = vmatprep.subr.bf16.mxu1 %v8762_v17 }
0x2582   : > { %8785 = vmatpush3.bf16.msra.mxu0 %v8782_v26 }
0x2584   : > { %8765 = vmatpush3.bf16.msra.mxu1 %v8762_v17 }
0x2642   : > { %v8046_v14 = vpop.f32.mrb[54].mxu1 }
0x2643   : > { %v4981_v1 = vrot.slane %v8046_v14, 7  ;;  %v4937_v18 = vpop.f32.mrb[55].mxu1  ;;  %v8786_v14 = vpack.c.bf16 %v6789_v55, %v6788_v54  ;;  %v6798_v54 = vld [vmem:[%s9393_s25 + $0x5a0] sm:$0xff]  ;;  %v6799_v55 = vld [vmem:[%s9393_s25 + $0x5a8] sm:$0xff] }
0x2644   : > { %v4960_v57 = vrot.slane %v4937_v18, 7 }
0x2645   : > { %v4983_v58 = vsel %vm674_vm0, 0.0, %v4981_v1  ;;  %v4984_v15 = vsel %vm674_vm0, %v4981_v1, 0.0  ;;  %8787 = vmatprep.subr.bf16.mxu0 %v8786_v14 }
0x2646   : > { %v4962_v34 = vsel %vm674_vm0, 0.0, %v4960_v57  ;;  %v4963_v36 = vsel %vm674_vm0, %v4960_v57, 0.0  ;;  %v4987_v3 = vrot.slane %v4983_v58, 1  ;;  %v4988_v4 = vrot.slane %v4984_v15, 1  ;;  %8789 = vmatpush3.bf16.msra.mxu0 %v8786_v14 }
0x2647   : > { %v4966_v47 = vrot.slane %v4962_v34, 1  ;;  %v4967_v37 = vrot.slane %v4963_v36, 1  ;;  %v4972_v7 = vrot.slane %v4962_v34, 2  ;;  %v4973_v28 = vrot.slane %v4963_v36, 2  ;;  %v6792_v36 = vld [vmem:[%s9423_s28 + $0x140] sm:$0xff] }
0x2648   : > { %v4993_v5 = vrot.slane %v4983_v58, 2  ;;  %v4994_v6 = vrot.slane %v4984_v15, 2  ;;  %v4989_v10 = vsel %vm695_vm2, %v4987_v3, %v4988_v4  ;;  %v8798_v14 = vpack.c.bf16 %v6799_v55, %v6798_v54 }
0x2649   : > { %v4968_v8 = vsel %vm695_vm2, %v4966_v47, %v4967_v37  ;;  %v4974_v59 = vsel %vm710_vm3, %v4972_v7, %v4973_v28  ;;  %v6793_v47 = vld [vmem:[%s9423_s28 + $0x148] sm:$0xff] }
0x264a   : > { %4969 = vrot.lane.b32.xlu0 %v4968_v8, %s8971_s13  ;;  %4975 = vrot.lane.b32.xlu1 %v4974_v59, %s8974_s14  ;;  %v4995_v12 = vsel %vm710_vm3, %v4993_v5, %v4994_v6  ;;  %v8790_v44 = vpack.c.bf16 %v6793_v47, %v6792_v36  ;;  %v6804_v36 = vld [vmem:[%s9393_s25 + $0x5d0] sm:$0xff]  ;;  %v6805_v47 = vld [vmem:[%s9393_s25 + $0x5d8] sm:$0xff] }
0x264c   : > { %8791 = vmatprep.subr.bf16.mxu1 %v8790_v44 }
0x264e   : > { %4990 = vrot.lane.b32.xlu0 %v4989_v10, %s8971_s13  ;;  %4996 = vrot.lane.b32.xlu1 %v4995_v12, %s8974_s14 }
0x26bc   : > { %v4970_v25 = vpop.permute.xlu0 %4969  ;;  %v4976_v13 = vpop.permute.xlu1 %4975 }
0x26bd   : > { %v4978_v16 = vsel %vm1107_vm6, %v4962_v34, %v4970_v25 }
0x26be   : > { %v4979_v22 = vsel %vm1110_vm7, %v4978_v16, %v4976_v13 }
0x26bf   : > { %8071 = vmatprep.mubr.msk.f32.mxu1 %vm1113_vm8, %v4979_v22 }
0x26c0   : > { %v4991_v27 = vpop.permute.xlu0 %4990  ;;  %v4997_v29 = vpop.permute.xlu1 %4996 }
0x26c1   : > { %v4999_v62 = vsel %vm1107_vm6, %v4983_v58, %v4991_v27 }
0x26c2   : > { %v5000_v53 = vsel %vm1110_vm7, %v4999_v62, %v4997_v29 }
0x26c3   : > { %8072 = vmatmul.mubr.msk.f32.vlgmr.msra.gmra.mrb[56].mxu1 %vm1113_vm8, %v5000_v53 }
0x26c4   : > { %8793 = vmatpush3.bf16.msra.mxu1 %v8790_v44  ;;  %v6806_v44 = vld [vmem:[%s9393_s25 + $0x5e0] sm:$0xff] }
0x26c5   : > { %8795 = vmatprep.subr.bf16.mxu1 %v8794_v41 }
0x26c8   : > { %8797 = vmatpush3.bf16.msra.mxu1 %v8794_v41 }
0x26c9   : > { %8799 = vmatprep.subr.bf16.mxu1 %v8798_v14 }
0x2796   : > { %v8073_v17 = vpop.f32.mrb[56].mxu1 }
0x2797   : > { %v10316_v1 = vadd.f32 %v8073_v17, %v5004_v51  ;;  %v5077_v18 = vpop.f32.mrb[57].mxu1  ;;  %v6800_v17 = vld [vmem:[%s9393_s25 + $0x5b0] sm:$0xff] }
0x2798   : > { %v10318_v57 = vadd.f32 %v5077_v18, %v5004_v51  ;;  %v8802_v18 = vpack.c.bf16 %v6801_v31, %v6800_v17 }
0x2799   : > { %v5087_v58 = vmax.f32 %v10316_v1, 0.0 }
0x279a   : > { %v5086_v15 = vmax.f32 %v10318_v57, 0.0 }
0x279b   : > { %v5123_v34 = vrot.slane %v5087_v58, 5  ;;  %v6802_v58 = vld [vmem:[%s9393_s25 + $0x5c0] sm:$0xff] }
0x279c   : > { %v5102_v37 = vrot.slane %v5086_v15, 5  ;;  %v6803_v15 = vld [vmem:[%s9393_s25 + $0x5c8] sm:$0xff] }
0x279d   : > { %v5126_v7 = vsel %vm1411_vm13, %v5123_v34, 0.0  ;;  %v5125_v28 = vsel %vm1411_vm13, 0.0, %v5123_v34  ;;  %v8806_v34 = vpack.c.bf16 %v6803_v15, %v6802_v58  ;;  %v6814_v58 = vld [vmem:[%s9423_s28 + $0x170] sm:$0xff]  ;;  %v6815_v15 = vld [vmem:[%s9423_s28 + $0x178] sm:$0xff] }
0x279e   : > { %v5104_v3 = vsel %vm1411_vm13, 0.0, %v5102_v37  ;;  %v5105_v4 = vsel %vm1411_vm13, %v5102_v37, 0.0  ;;  %v5130_v10 = vrot.slane %v5126_v7, 3  ;;  %v5136_v12 = vrot.slane %v5126_v7, 6  ;;  %v6807_v7 = vld [vmem:[%s9393_s25 + $0x5e8] sm:$0xff] }
0x279f   : > { %v5109_v5 = vrot.slane %v5105_v4, 3  ;;  %v5115_v6 = vrot.slane %v5105_v4, 6  ;;  %v5114_v8 = vrot.slane %v5104_v3, 6  ;;  %v5108_v59 = vrot.slane %v5104_v3, 3 }
0x27a0   : > { %v5135_v16 = vrot.slane %v5125_v28, 6  ;;  %v5129_v22 = vrot.slane %v5125_v28, 3  ;;  %v8810_v37 = vpack.c.bf16 %v6805_v47, %v6804_v36  ;;  %v5382_v36 = vrot.slane %v10230_v24, %v9593_v9 }
0x27a1   : > { %v5116_v25 = vsel %vm1422_vm14, %v5114_v8, %v5115_v6  ;;  %v5110_v13 = vsel %vm1095_vm4, %v5108_v59, %v5109_v5  ;;  %v6808_v8 = vld [vmem:[%s9393_s25 + $0x5f0] sm:$0xff]  ;;  %v6809_v59 = vld [vmem:[%s9393_s25 + $0x5f8] sm:$0xff]  ;;  %v5558_v9 = vadd.s32 16, %v9271_v23 }
0x27a2   : > { %5117 = vrot.lane.b32.xlu1 %v5116_v25, %s8974_s14  ;;  %5111 = vrot.lane.b32.xlu0 %v5110_v13, %s8971_s13  ;;  %v5137_v27 = vsel %vm1422_vm14, %v5135_v16, %v5136_v12  ;;  %v5131_v29 = vsel %vm1095_vm4, %v5129_v22, %v5130_v10  ;;  %v8818_v12 = vpack.c.bf16 %v6809_v59, %v6808_v8  ;;  %vm5568_vm4 = vcmask 130048  }
0x27a3   : > { %vm5560_vm13 = vcmp.eq.s32.totalorder %v5558_v9, %v10110_v61  ;;  %vm5562_vm14 = vcmp.eq.s32.totalorder %v5558_v9, %v10113_v63 }
0x27a4   : > { %vm5564_vm9 = vmor %vm5560_vm13, %vm5562_vm14 }
0x27a6   : > { %5138 = vrot.lane.b32.xlu1 %v5137_v27, %s8974_s14  ;;  %5132 = vrot.lane.b32.xlu0 %v5131_v29, %s8971_s13  ;;  %v6812_v27 = vld [vmem:[%s9423_s28 + $0x160] sm:$0xff]  ;;  %v6813_v29 = vld [vmem:[%s9423_s28 + $0x168] sm:$0xff] }
0x2814   : > { %v5118_v62 = vpop.permute.xlu1 %5117  ;;  %v5112_v53 = vpop.permute.xlu0 %5111 }
0x2815   : > { %v5120_v52 = vsel %vm1107_vm6, %v5104_v3, %v5112_v53  ;;  %v5238_v3 = vrot.slane %v10230_v24, %v9515_v42  ;;  %v8822_v53 = vpack.c.bf16 %v6813_v29, %v6812_v27  ;;  %v6827_v27 = vld [vmem:[%s9393_s25 + $0x628] sm:$0xff]  ;;  %v6828_v29 = vld [vmem:[%s9393_s25 + $0x630] sm:$0xff] }
0x2816   : > { %v5121_v19 = vsel %vm1110_vm7, %v5120_v52, %v5118_v62 }
0x2817   : > { %8098 = vmatprep.mubr.msk.f32.mxu0 %vm1113_vm8, %v5121_v19  ;;  %8823 = vmatprep.subr.bf16.mxu0 %v8822_v53 }
0x2818   : > { %v5139_v2 = vpop.permute.xlu1 %5138  ;;  %v5133_v20 = vpop.permute.xlu0 %5132 }
0x2819   : > { %v5141_v11 = vsel %vm1107_vm6, %v5125_v28, %v5133_v20  ;;  %v8814_v28 = vpack.c.bf16 %v6807_v7, %v6806_v44 }
0x281a   : > { %v5142_v33 = vsel %vm1110_vm7, %v5141_v11, %v5139_v2 }
0x281b   : > { %8099 = vmatmul.mubr.msk.f32.vlgmr.msra.gmra.mrb[40].mxu0 %vm1113_vm8, %v5142_v33 }
0x281c   : > { %8825 = vmatpush3.bf16.msra.mxu0 %v8822_v53 }
0x28ee   : > { %v8100_v43 = vpop.f32.mrb[40].mxu0 }
0x28ef   : > { %v5225_v45 = vadd.f32 %v8100_v43, %v5146_v35  ;;  %v5219_v46 = vpop.f32.mrb[41].mxu0 }
0x28f0   : > { %v5220_v49 = vadd.f32 %v5219_v46, %v5146_v35 }
0x28f1   : > { %v5229_v51 = vmax.f32 %v5225_v45, 0.0 }
0x28f2   : > { %v5228_v26 = vmax.f32 %v5220_v49, 0.0 }
0x28f4   : > { %8109 = vmatprep.mubr.msk.f32.mxu1 %vm1107_vm6, %v5228_v26 }
0x28f5   : > { %8110 = vmatmul.mubr.msk.f32.vlgmr.msra.gmra.mrb[58].mxu1 %vm1107_vm6, %v5229_v51 }
0x28f6   : > { %8801 = vmatpush3.bf16.msra.mxu1 %v8798_v14 }
0x28f7   : > { %8803 = vmatprep.subr.bf16.mxu1 %v8802_v18 }
0x28fa   : > { %8805 = vmatpush3.bf16.msra.mxu1 %v8802_v18 }
0x28fb   : > { %8807 = vmatprep.subr.bf16.mxu1 %v8806_v34 }
0x28fe   : > { %8809 = vmatpush3.bf16.msra.mxu1 %v8806_v34  ;;  %v8826_v34 = vpack.c.bf16 %v6815_v15, %v6814_v58 }
0x28ff   : > { %8811 = vmatprep.subr.bf16.mxu1 %v8810_v37 }
0x2900   : > { %8827 = vmatprep.subr.bf16.mxu0 %v8826_v34 }
0x2901   : > { %8829 = vmatpush3.bf16.msra.mxu0 %v8826_v34 }
0x2902   : > { %8813 = vmatpush3.bf16.msra.mxu1 %v8810_v37 }
0x2903   : > { %8815 = vmatprep.subr.bf16.mxu1 %v8814_v28 }
0x2906   : > { %8817 = vmatpush3.bf16.msra.mxu1 %v8814_v28 }
0x2907   : > { %8819 = vmatprep.subr.bf16.mxu1 %v8818_v12 }
0x290a   : > { %8821 = vmatpush3.bf16.msra.mxu1 %v8818_v12  ;;  %v5559_v12 = vadd.s32 24, %v9271_v23  ;;  %v5566_v23 = vsel %vm5564_vm9, 1.0, %v8973_v60 }
0x290c   : > { %vm5561_vm5 = vcmp.eq.s32.totalorder %v5559_v12, %v10110_v61  ;;  %vm5563_vm10 = vcmp.eq.s32.totalorder %v5559_v12, %v10113_v63  ;;  %v6822_v61 = vld [vmem:[%s9393_s25 + $0x600] sm:$0xff]  ;;  %v6824_v63 = vld [vmem:[%s9393_s25 + $0x610] sm:$0xff] }
0x290d   : > { %vm5565_vm11 = vmor %vm5561_vm5, %vm5563_vm10 }
0x29c8   : > { %v8111_v4 = vpop.f32.mrb[58].mxu1 }
0x29c9   : > { %v5317_v5 = vadd.f32 %v8111_v4, %v5238_v3  ;;  %v5311_v6 = vpop.f32.mrb[59].mxu1  ;;  %v5474_v4 = vrot.slane %v10230_v24, %v9636_v0  ;;  %v6823_v24 = vld [vmem:[%s9393_s25 + $0x608] sm:$0xff] }
0x29ca   : > { %v5312_v10 = vadd.f32 %v5311_v6, %v5238_v3 }
0x29cb   : > { %v10363_v25 = vadd.f32 %v5317_v5, %v10316_v1 }
0x29cc   : > { %v10366_v13 = vadd.f32 %v5312_v10, %v10318_v57 }
0x29cd   : > { %v5323_v16 = vmax.f32 %v10363_v25, 0.0 }
0x29ce   : > { %v5322_v42 = vmax.f32 %v10366_v13, 0.0 }
0x29cf   : > { %v5359_v22 = vrot.slane %v5323_v16, 7 }
0x29d0   : > { %v5338_v62 = vrot.slane %v5322_v42, 7 }
0x29d1   : > { %v5361_v52 = vsel %vm674_vm0, 0.0, %v5359_v22  ;;  %v5362_v19 = vsel %vm674_vm0, %v5359_v22, 0.0  ;;  %v6826_v22 = vld [vmem:[%s9393_s25 + $0x620] sm:$0xff] }
0x29d2   : > { %v5340_v1 = vsel %vm674_vm0, 0.0, %v5338_v62  ;;  %v5341_v57 = vsel %vm674_vm0, %v5338_v62, 0.0  ;;  %v5371_v38 = vrot.slane %v5361_v52, 2  ;;  %v5372_v39 = vrot.slane %v5362_v19, 2  ;;  %v6829_v62 = vld [vmem:[%s9393_s25 + $0x638] sm:$0xff] }
0x29d3   : > { %v5350_v2 = vrot.slane %v5340_v1, 2  ;;  %v5351_v20 = vrot.slane %v5341_v57, 2  ;;  %v5344_v11 = vrot.slane %v5340_v1, 1  ;;  %v5345_v33 = vrot.slane %v5341_v57, 1  ;;  %v6832_v57 = vld [vmem:[%s9393_s25 + $0x650] sm:$0xff] }
0x29d4   : > { %v5365_v43 = vrot.slane %v5361_v52, 1  ;;  %v5366_v45 = vrot.slane %v5362_v19, 1  ;;  %v5373_v46 = vsel %vm710_vm3, %v5371_v38, %v5372_v39  ;;  %v8846_v53 = vpack.c.bf16 %v6829_v62, %v6828_v29  ;;  %v6831_v19 = vld [vmem:[%s9393_s25 + $0x648] sm:$0xff]  ;;  %v6838_v62 = vld [vmem:[%s9393_s25 + $0x660] sm:$0xff] }
0x29d5   : > { %v5352_v41 = vsel %vm710_vm3, %v5350_v2, %v5351_v20  ;;  %v5346_v35 = vsel %vm695_vm2, %v5344_v11, %v5345_v33  ;;  %v6833_v2 = vld [vmem:[%s9393_s25 + $0x658] sm:$0xff] }
0x29d6   : > { %5353 = vrot.lane.b32.xlu1 %v5352_v41, %s8974_s14  ;;  %5347 = vrot.lane.b32.xlu0 %v5346_v35, %s8971_s13  ;;  %v5367_v49 = vsel %vm695_vm2, %v5365_v43, %v5366_v45  ;;  %v8854_v20 = vpack.c.bf16 %v6833_v2, %v6832_v57  ;;  %v6842_v2 = vld [vmem:[%s9393_s25 + $0x680] sm:$0xff] }
0x29da   : > { %5374 = vrot.lane.b32.xlu1 %v5373_v46, %s8974_s14  ;;  %5368 = vrot.lane.b32.xlu0 %v5367_v49, %s8971_s13 }
0x2a48   : > { %v5354_v26 = vpop.permute.xlu1 %5353  ;;  %v5348_v51 = vpop.permute.xlu0 %5347 }
0x2a49   : > { %v5356_v54 = vsel %vm1107_vm6, %v5340_v1, %v5348_v51 }
0x2a4a   : > { %v5357_v55 = vsel %vm1110_vm7, %v5356_v54, %v5354_v26 }
0x2a4b   : > { %8136 = vmatprep.mubr.msk.f32.mxu1 %vm1113_vm8, %v5357_v55 }
0x2a4c   : > { %v5375_v17 = vpop.permute.xlu1 %5374  ;;  %v5369_v14 = vpop.permute.xlu0 %5368 }
0x2a4d   : > { %v5377_v31 = vsel %vm1107_vm6, %v5361_v52, %v5369_v14  ;;  %v6830_v52 = vld [vmem:[%s9393_s25 + $0x640] sm:$0xff] }
0x2a4e   : > { %v5378_v18 = vsel %vm1110_vm7, %v5377_v31, %v5375_v17  ;;  %v8850_v1 = vpack.c.bf16 %v6831_v19, %v6830_v52  ;;  %v6840_v52 = vld [vmem:[%s9393_s25 + $0x670] sm:$0xff] }
0x2a4f   : > { %8137 = vmatmul.mubr.msk.f32.vlgmr.msra.gmra.mrb[60].mxu1 %vm1113_vm8, %v5378_v18 }
0x2b22   : > { %v8138_v47 = vpop.f32.mrb[60].mxu1 }
0x2b23   : > { %v5461_v37 = vadd.f32 %v8138_v47, %v5382_v36  ;;  %v5455_v44 = vpop.f32.mrb[61].mxu1 }
0x2b24   : > { %v5456_v7 = vadd.f32 %v5455_v44, %v5382_v36 }
0x2b25   : > { %v5465_v3 = vmax.f32 %v5461_v37, 0.0 }
0x2b26   : > { %v5464_v28 = vmax.f32 %v5456_v7, 0.0 }
0x2b28   : > { %8147 = vmatprep.mubr.msk.f32.mxu0 %vm1107_vm6, %v5464_v28 }
0x2b29   : > { %8148 = vmatmul.mubr.msk.f32.vlgmr.msra.gmra.mrb[42].mxu0 %vm1107_vm6, %v5465_v3 }
0x2b2a   : > { %8154 = vmatprep.mubr.msk.f32.mxu0 %vm5568_vm4, %v10122_v40  ;;  %v5567_v40 = vsel %vm5565_vm11, 1.0, %v8973_v60 }
0x2bfc   : > { %v8149_v5 = vpop.f32.mrb[42].mxu0 }
0x2bfd   : > { %v5553_v6 = vadd.f32 %v8149_v5, %v5474_v4  ;;  %v5547_v8 = vpop.f32.mrb[43].mxu0 }
0x2bfe   : > { %v5548_v59 = vadd.f32 %v5547_v8, %v5474_v4 }
0x2bff   : > { %v5557_v10 = vadd.f32 %v5553_v6, %v10363_v25  ;;  %v8834_v25 = vpack.c.bf16 %v6823_v24, %v6822_v61 }
0x2c00   : > { %v5556_v16 = vadd.f32 %v5548_v59, %v10366_v13  ;;  %v6825_v13 = vld [vmem:[%s9393_s25 + $0x618] sm:$0xff] }
0x2c01   : > { %v8838_v42 = vpack.c.bf16 %v6825_v13, %v6824_v63 }
0x2c02   : > { %v8830_v0 = vpack.c.bf16 %v5557_v10, %v5556_v16 }
0x2c04   : > { %8831 = vmatprep.subr.bf16.mxu0 %v8830_v0 }
0x2c05   : > { %8833 = vmatpush3.bf16.msra.mxu0 %v8830_v0 }
0x2c06   : > { %8835 = vmatprep.subr.bf16.mxu0 %v8834_v25 }
0x2c08   : > { %8155 = vmatmul.mubr.msk.f32.vlgmr.msra.gmra.mrb[44].mxu0 %vm5568_vm4, %v10269_v56  ;;  %v8842_v56 = vpack.c.bf16 %v6827_v27, %v6826_v22 }
0x2c09   : > { %8157 = vmatprep.mubr.msk.f32.mxu0 %vm5568_vm4, %v5566_v23  ;;  %8837 = vmatpush3.bf16.msra.mxu0 %v8834_v25 }
0x2c0a   : > { %8839 = vmatprep.subr.bf16.mxu0 %v8838_v42 }
0x2c0c   : > { %8158 = vmatmul.mubr.msk.f32.gmra.mrb[46].mxu0 %vm5568_vm4, %v5567_v40 }
0x2c0d   : > { %8841 = vmatpush3.bf16.msra.mxu0 %v8838_v42 }
0x2c0e   : > { %8843 = vmatprep.subr.bf16.mxu0 %v8842_v56 }
0x2c11   : > { %8845 = vmatpush3.bf16.msra.mxu0 %v8842_v56 }
0x2c12   : > { %8847 = vmatprep.subr.bf16.mxu0 %v8846_v53 }
0x2c15   : > { %8849 = vmatpush3.bf16.msra.mxu0 %v8846_v53  ;;  %v6839_v53 = vld [vmem:[%s9393_s25 + $0x668] sm:$0xff] }
0x2c16   : > { %8851 = vmatprep.subr.bf16.mxu0 %v8850_v1  ;;  %v8858_v19 = vpack.c.bf16 %v6839_v53, %v6838_v62 }
0x2c18   : > { %8859 = vmatprep.subr.bf16.mxu1 %v8858_v19 }
0x2c19   : > { %8853 = vmatpush3.bf16.msra.mxu0 %v8850_v1  ;;  %v6841_v1 = vld [vmem:[%s9393_s25 + $0x678] sm:$0xff]  ;;  %8861 = vmatpush3.bf16.msra.mxu1 %v8858_v19 }
0x2c1a   : > { %8855 = vmatprep.subr.bf16.mxu0 %v8854_v20  ;;  %v8862_v57 = vpack.c.bf16 %v6841_v1, %v6840_v52 }
0x2c1c   : > { %8863 = vmatprep.subr.bf16.mxu1 %v8862_v57 }
0x2c1d   : > { %8857 = vmatpush3.bf16.msra.mxu0 %v8854_v20  ;;  %v6843_v20 = vld [vmem:[%s9393_s25 + $0x688] sm:$0xff]  ;;  %8865 = vmatpush3.bf16.msra.mxu1 %v8862_v57 }
0x2cdb   : > { %v8156_v11 = vpop.f32.mrb[44].mxu0 }
0x2cdc   : > { %v5680_v33 = vrot.slane %v8156_v11, 7  ;;  %v5645_v38 = vpop.f32.mrb[45].mxu0  ;;  %v8866_v11 = vpack.c.bf16 %v6843_v20, %v6842_v2 }
0x2cdd   : > { %v5679_v39 = vrot.slane %v5645_v38, 7  ;;  %v6845_v38 = vld [vmem:[%s9393_s25 + $0x698] sm:$0xff] }
0x2cde   : > { %v5686_v41 = vsel %vm674_vm0, %v5680_v33, 0.0  ;;  %8867 = vmatprep.subr.bf16.mxu1 %v8866_v11 }
0x2cdf   : > { %v5692_v35 = vrot.slane %v5686_v41, 1  ;;  %v5681_v43 = vsel %vm674_vm0, %v5679_v39, %v5680_v33  ;;  %v5685_v45 = vsel %vm674_vm0, 0.0, %v5679_v39  ;;  %v8159_v46 = vpop.f32.mrb[46].mxu0  ;;  %v5703_v55 = vrot.slane %v5686_v41, 2  ;;  %v6844_v33 = vld [vmem:[%s9393_s25 + $0x690] sm:$0xff]  ;;  %v6846_v41 = vld [vmem:[%s9393_s25 + $0x6a0] sm:$0xff]  ;;  %8869 = vmatpush3.bf16.msra.mxu1 %v8866_v11 }
0x2ce0   : > { %v5689_v49 = vrot.slane %v5685_v45, 1  ;;  %v5690_v26 = vrot.slane %v5681_v43, 1  ;;  %v5718_v51 = vrot.slane %v8159_v46, 7  ;;  %v5655_v54 = vpop.f32.mrb[47].mxu0  ;;  %v5700_v17 = vrot.slane %v5685_v45, 2 }
0x2ce1   : > { %v5717_v14 = vrot.slane %v5655_v54, 7  ;;  %v5701_v15 = vrot.slane %v5681_v43, 2  ;;  %v8870_v39 = vpack.c.bf16 %v6845_v38, %v6844_v33 }
0x2ce2   : > { %v5693_v31 = vsel %vm695_vm2, %v5690_v26, %v5692_v35  ;;  %v5691_v18 = vsel %vm695_vm2, %v5689_v49, %v5690_v26  ;;  %v5724_v58 = vsel %vm674_vm0, %v5718_v51, 0.0  ;;  %v6847_v35 = vld [vmem:[%s9393_s25 + $0x6a8] sm:$0xff]  ;;  %v6848_v49 = vld [vmem:[%s9393_s25 + $0x6b0] sm:$0xff]  ;;  %v6849_v26 = vld [vmem:[%s9393_s25 + $0x6b8] sm:$0xff]  ;;  %s560_s25 = scalar_lea.vmem %s10624_s11, %s10632_s18 }
0x2ce3   : > { %5696 = vrot.lane.b32.xlu1 %v5693_v31, %s8971_s13  ;;  %5694 = vrot.lane.b32.xlu0 %v5691_v18, %s8971_s13  ;;  %v5719_v34 = vsel %vm674_vm0, %v5717_v14, %v5718_v51  ;;  %v5723_v36 = vsel %vm674_vm0, 0.0, %v5717_v14  ;;  %v5730_v47 = vrot.slane %v5724_v58, 1  ;;  %v5704_v7 = vsel %vm710_vm3, %v5701_v15, %v5703_v55 }
0x2ce4   : > { %v5727_v37 = vrot.slane %v5723_v36, 1  ;;  %v5728_v44 = vrot.slane %v5719_v34, 1  ;;  %v5702_v28 = vsel %vm710_vm3, %v5700_v17, %v5701_v15  ;;  %v5741_v5 = vrot.slane %v5724_v58, 2  ;;  %8871 = vmatprep.subr.bf16.mxu1 %v8870_v39 }
0x2ce5   : > { %v5738_v9 = vrot.slane %v5723_v36, 2  ;;  %v5739_v6 = vrot.slane %v5719_v34, 2  ;;  %8873 = vmatpush3.bf16.msra.mxu1 %v8870_v39  ;;  %v8878_v51 = vpack.c.bf16 %v6849_v26, %v6848_v49 }
0x2ce6   : > { %v5731_v3 = vsel %vm695_vm2, %v5728_v44, %v5730_v47  ;;  %v5729_v4 = vsel %vm695_vm2, %v5727_v37, %v5728_v44 }
0x2ce7   : > { %5707 = vrot.lane.b32.xlu1 %v5704_v7, %s8974_s14  ;;  %5705 = vrot.lane.b32.xlu0 %v5702_v28, %s8974_s14  ;;  %v5742_v8 = vsel %vm710_vm3, %v5739_v6, %v5741_v5  ;;  %v5740_v59 = vsel %vm710_vm3, %v5738_v9, %v5739_v6 }
0x2ceb   : > { %5734 = vrot.lane.b32.xlu1 %v5731_v3, %s8971_s13  ;;  %5732 = vrot.lane.b32.xlu0 %v5729_v4, %s8971_s13 }
0x2cef   : > { %5745 = vrot.lane.b32.xlu1 %v5742_v8, %s8974_s14  ;;  %5743 = vrot.lane.b32.xlu0 %v5740_v59, %s8974_s14 }
0x2d55   : > { %v5697_v10 = vpop.permute.xlu1 %5696  ;;  %v5695_v12 = vpop.permute.xlu0 %5694 }
0x2d56   : > { %v5712_v16 = vsel %vm1107_vm6, %v5681_v43, %v5697_v10  ;;  %v5711_v0 = vsel %vm1107_vm6, %v5685_v45, %v5695_v12  ;;  %v8874_v43 = vpack.c.bf16 %v6847_v35, %v6846_v41  ;;  %v10472_v45 = vld [vmem:[%s9276_s30 + $0x20] sm:$0x3]  ;;  %s8909_s30 = smul.u32 192, %s10632_s18 }
0x2d57   : > { %v5756_v46 = vrot.slane %v10472_v45, %v9279_v30 }
0x2d58   : > { %8875 = vmatprep.subr.bf16.mxu1 %v8874_v43  ;;  %s10516_s21 = scalar_lea.vmem %s10618_s5, %s8909_s30  ;;  %s554_s30 = scalar_lea.vmem %s10622_s9, %s9048_s20 }
0x2d59   : > { %v5708_v23 = vpop.permute.xlu1 %5707  ;;  %v5706_v40 = vpop.permute.xlu0 %5705  ;;  %8877 = vmatpush3.bf16.msra.mxu1 %v8874_v43  ;;  %v6049_v49 = vld [vmem:[%s10516_s21 + $0x8] sm:$0xff]  ;;  %v6051_v26 = vld [vmem:[%s10516_s21 + $0x18] sm:$0xff] }
0x2d5a   : > { %v5714_v61 = vsel %vm1110_vm7, %v5712_v16, %v5708_v23  ;;  %v5713_v24 = vsel %vm1110_vm7, %v5711_v0, %v5706_v40  ;;  %8879 = vmatprep.subr.bf16.mxu1 %v8878_v51 }
0x2d5b   : > { %8184 = vmatprep.mubr.msk.f32.mxu0 %vm1113_vm8, %v5713_v24 }
0x2d5c   : > { %8185 = vmatmul.mubr.msk.f32.vlgmr.msra.gmra.mrb[48].mxu0 %vm1113_vm8, %v5714_v61 }
0x2d5d   : > { %v5735_v63 = vpop.permute.xlu1 %5734  ;;  %v5733_v25 = vpop.permute.xlu0 %5732  ;;  %8881 = vmatpush3.bf16.msra.mxu1 %v8878_v51  ;;  %v6048_v51 = vld [vmem:[%s10516_s21] sm:$0xff] }
0x2d5e   : > { %v5750_v13 = vsel %vm1107_vm6, %v5719_v34, %v5735_v63  ;;  %v5749_v42 = vsel %vm1107_vm6, %v5723_v36, %v5733_v25 }
0x2d61   : > { %v5746_v22 = vpop.permute.xlu1 %5745  ;;  %v5744_v27 = vpop.permute.xlu0 %5743 }
0x2d62   : > { %v5752_v56 = vsel %vm1110_vm7, %v5750_v13, %v5746_v22  ;;  %v5751_v29 = vsel %vm1110_vm7, %v5749_v42, %v5744_v27 }
0x2d63   : > { %8187 = vmatprep.mubr.msk.f32.mxu0 %vm1113_vm8, %v5751_v29 }
0x2d64   : > { %8188 = vmatmul.mubr.msk.f32.gmra.mrb[50].mxu0 %vm1113_vm8, %v5752_v56 }
0x2d65   : > { %6236 = vmatprep.mubr.f32.mxu0 %v8973_v60 }
0x2e2f   : > { %v8186_v54 = vpop.f32.mrb[48].mxu0 }
0x2e30   : > { %v5841_v55 = vadd.f32 %v8186_v54, %v5756_v46  ;;  %v5835_v17 = vpop.f32.mrb[49].mxu0  ;;  %v8882_v54 = vpack.c.bf16 %v6051_v26, %v6049_v49 }
0x2e31   : > { %v5836_v14 = vadd.f32 %v5835_v17, %v5756_v46  ;;  %v6053_v17 = vld [vmem:[%s10516_s21 + $0x28] sm:$0xff] }
0x2e32   : > { %v5870_v31 = vrot.slane %v5841_v55, 7  ;;  %v6050_v55 = vld [vmem:[%s10516_s21 + $0x10] sm:$0xff]  ;;  %8883 = vmatprep.subr.bf16.mxu0 %v8882_v54 }
0x2e33   : > { %v5869_v18 = vrot.slane %v5836_v14, 7  ;;  %v6055_v14 = vld [vmem:[%s10516_s21 + $0x38] sm:$0xff] }
0x2e34   : > { %v5876_v58 = vsel %vm674_vm0, %v5870_v31, 0.0 }
0x2e35   : > { %v5882_v15 = vrot.slane %v5876_v58, 1  ;;  %v5871_v34 = vsel %vm674_vm0, %v5869_v18, %v5870_v31  ;;  %v5875_v36 = vsel %vm674_vm0, 0.0, %v5869_v18  ;;  %v5893_v44 = vrot.slane %v5876_v58, 2  ;;  %v6052_v58 = vld [vmem:[%s10516_s21 + $0x20] sm:$0xff] }
0x2e36   : > { %v5879_v47 = vrot.slane %v5875_v36, 1  ;;  %v5880_v37 = vrot.slane %v5871_v34, 1  ;;  %v5890_v7 = vrot.slane %v5875_v36, 2  ;;  %v5891_v3 = vrot.slane %v5871_v34, 2 }
0x2e37   : > { %v8189_v28 = vpop.f32.mrb[50].mxu0  ;;  %v8884_v31 = vpack.c.bf16 %v6050_v55, %v6048_v51  ;;  %v8886_v18 = vpack.c.bf16 %v6055_v14, %v6053_v17 }
0x2e38   : > { %v5851_v4 = vadd.f32 %v8189_v28, %v5756_v46  ;;  %v5845_v5 = vpop.f32.mrb[51].mxu0  ;;  %v5883_v9 = vsel %vm695_vm2, %v5880_v37, %v5882_v15  ;;  %v5881_v6 = vsel %vm695_vm2, %v5879_v47, %v5880_v37  ;;  %v5894_v16 = vsel %vm710_vm3, %v5891_v3, %v5893_v44  ;;  %v6054_v15 = vld [vmem:[%s10516_s21 + $0x30] sm:$0xff]  ;;  %v6056_v44 = vld [vmem:[%s10516_s21 + $0x40] sm:$0xff]  ;;  %v6061_v28 = vld [vmem:[%s10516_s21 + $0x68] sm:$0xff] }
0x2e39   : > { %v5846_v8 = vadd.f32 %v5845_v5, %v5756_v46  ;;  %5886 = vrot.lane.b32.xlu1 %v5883_v9, %s8971_s13  ;;  %5884 = vrot.lane.b32.xlu0 %v5881_v6, %s8971_s13  ;;  %v5892_v0 = vsel %vm710_vm3, %v5890_v7, %v5891_v3  ;;  %v8888_v47 = vpack.c.bf16 %v6054_v15, %v6052_v58  ;;  %v6058_v7 = vld [vmem:[%s10516_s21 + $0x50] sm:$0xff]  ;;  %v6063_v3 = vld [vmem:[%s10516_s21 + $0x78] sm:$0xff] }
0x2e3a   : > { %v5908_v59 = vrot.slane %v5851_v4, 7  ;;  %8885 = vmatpush1.bf16.msra.mxu0 %v8884_v31  ;;  %v8892_v4 = vpack.c.bf16 %v6058_v7, %v6056_v44  ;;  %v8894_v5 = vpack.c.bf16 %v6063_v3, %v6061_v28  ;;  %v6060_v9 = vld [vmem:[%s10516_s21 + $0x60] sm:$0xff]  ;;  %v6062_v6 = vld [vmem:[%s10516_s21 + $0x70] sm:$0xff] }
0x2e3b   : > { %v5907_v10 = vrot.slane %v5846_v8, 7  ;;  %8887 = vmatprep.subr.bf16.mxu0 %v8886_v18  ;;  %v6065_v8 = vld [vmem:[%s10516_s21 + $0x88] sm:$0xff] }
0x2e3c   : > { %v5914_v12 = vsel %vm674_vm0, %v5908_v59, 0.0 }
0x2e3d   : > { %v5920_v23 = vrot.slane %v5914_v12, 1  ;;  %v5909_v40 = vsel %vm674_vm0, %v5907_v10, %v5908_v59  ;;  %v5913_v61 = vsel %vm674_vm0, 0.0, %v5907_v10  ;;  %5897 = vrot.lane.b32.xlu1 %v5894_v16, %s8974_s14  ;;  %5895 = vrot.lane.b32.xlu0 %v5892_v0, %s8974_s14  ;;  %v5931_v25 = vrot.slane %v5914_v12, 2  ;;  %v6067_v59 = vld [vmem:[%s10516_s21 + $0x98] sm:$0xff]  ;;  %v6064_v16 = vld [vmem:[%s10516_s21 + $0x80] sm:$0xff] }
0x2e3e   : > { %v5917_v24 = vrot.slane %v5913_v61, 1  ;;  %v5918_v63 = vrot.slane %v5909_v40, 1  ;;  %v5928_v13 = vrot.slane %v5913_v61, 2  ;;  %v5929_v42 = vrot.slane %v5909_v40, 2  ;;  %8889 = vmatpush1.bf16.msra.mxu0 %v8888_v47  ;;  %v6066_v0 = vld [vmem:[%s10516_s21 + $0x90] sm:$0xff] }
0x2e3f   : > { %v8896_v10 = vpack.c.bf16 %v6062_v6, %v6060_v9  ;;  %v8898_v12 = vpack.c.bf16 %v6067_v59, %v6065_v8 }
0x2e40   : > { %v5921_v22 = vsel %vm695_vm2, %v5918_v63, %v5920_v23  ;;  %v5919_v27 = vsel %vm695_vm2, %v5917_v24, %v5918_v63  ;;  %v5932_v56 = vsel %vm710_vm3, %v5929_v42, %v5931_v25  ;;  %v5930_v29 = vsel %vm710_vm3, %v5928_v13, %v5929_v42  ;;  %v6069_v23 = vld [vmem:[%s10516_s21 + $0xa8] sm:$0xff]  ;;  %v6068_v63 = vld [vmem:[%s10516_s21 + $0xa0] sm:$0xff]  ;;  %v6070_v25 = vld [vmem:[%s10516_s21 + $0xb0] sm:$0xff] }
0x2e41   : > { %5924 = vrot.lane.b32.xlu1 %v5921_v22, %s8971_s13  ;;  %5922 = vrot.lane.b32.xlu0 %v5919_v27, %s8971_s13  ;;  %v8904_v13 = vpack.c.bf16 %v6070_v25, %v6068_v63  ;;  %v5946_v42 = vrot.slane %v10472_v45, %v9406_v21 }
0x2e45   : > { %5935 = vrot.lane.b32.xlu1 %v5932_v56, %s8974_s14  ;;  %5933 = vrot.lane.b32.xlu0 %v5930_v29, %s8974_s14 }
0x2eab   : > { %v5887_v62 = vpop.permute.xlu1 %5886  ;;  %v5885_v53 = vpop.permute.xlu0 %5884 }
0x2eac   : > { %v5902_v52 = vsel %vm1107_vm6, %v5871_v34, %v5887_v62  ;;  %v5901_v19 = vsel %vm1107_vm6, %v5875_v36, %v5885_v53  ;;  %v6057_v34 = vld [vmem:[%s10516_s21 + $0x48] sm:$0xff]  ;;  %v6059_v36 = vld [vmem:[%s10516_s21 + $0x58] sm:$0xff]  ;;  %v3665_v62 = vsel %vm3566_vm12, %v9964_v48, 0.0 }
0x2ead   : > { %v8890_v37 = vpack.c.bf16 %v6059_v36, %v6057_v34 }
0x2eaf   : > { %v5898_v1 = vpop.permute.xlu1 %5897  ;;  %v5896_v57 = vpop.permute.xlu0 %5895  ;;  %8891 = vmatprep.subr.bf16.mxu0 %v8890_v37 }
0x2eb0   : > { %v5904_v2 = vsel %vm1110_vm7, %v5902_v52, %v5898_v1  ;;  %v5903_v20 = vsel %vm1110_vm7, %v5901_v19, %v5896_v57  ;;  %8893 = vmatpush1.bf16.msra.mxu0 %v8892_v4  ;;  %v3666_v1 = vrot.slane %v3665_v62, 4 }
0x2eb1   : > { %8214 = vmatprep.mubr.msk.f32.mxu1 %vm1113_vm8, %v5903_v20  ;;  %8895 = vmatprep.subr.bf16.mxu0 %v8894_v5 }
0x2eb2   : > { %8215 = vmatmul.mubr.msk.f32.vlgmr.msra.gmra.mrb[62].mxu1 %vm1113_vm8, %v5904_v2  ;;  %v3667_v48 = vadd.f32 %v3666_v1, %v3665_v62 }
0x2eb3   : > { %v5925_v11 = vpop.permute.xlu1 %5924  ;;  %v5923_v33 = vpop.permute.xlu0 %5922 }
0x2eb4   : > { %v5940_v38 = vsel %vm1107_vm6, %v5909_v40, %v5925_v11  ;;  %v5939_v39 = vsel %vm1107_vm6, %v5913_v61, %v5923_v33  ;;  %v6071_v40 = vld [vmem:[%s10516_s21 + $0xb8] sm:$0xff]  ;;  %8897 = vmatpush1.bf16.msra.mxu0 %v8896_v10  ;;  %v8900_v61 = vpack.c.bf16 %v6066_v0, %v6064_v16  ;;  %v3668_v31 = vrot.slane %v3667_v48, 2 }
0x2eb5   : > { %8899 = vmatprep.subr.bf16.mxu0 %v8898_v12  ;;  %v8902_v24 = vpack.c.bf16 %v6071_v40, %v6069_v23  ;;  %v3650_v23 = vsub.f32 %v9953_v32, %v9986_v50 }
0x2eb6   : > { %v3669_v3 = vadd.f32 %v3668_v31, %v3667_v48 }
0x2eb7   : > { %v5936_v41 = vpop.permute.xlu1 %5935  ;;  %v5934_v35 = vpop.permute.xlu0 %5933 }
0x2eb8   : > { %v5942_v43 = vsel %vm1110_vm7, %v5940_v38, %v5936_v41  ;;  %v5941_v46 = vsel %vm1110_vm7, %v5939_v39, %v5934_v35  ;;  %8901 = vmatpush1.bf16.msra.mxu0 %v8900_v61  ;;  %v3670_v8 = vrot.slane %v3669_v3, 1  ;;  %v3651_v61 = vmul.f32 %v3650_v23, %v3650_v23 }
0x2eb9   : > { %8217 = vmatprep.mubr.msk.f32.mxu1 %vm1113_vm8, %v5941_v46  ;;  %8903 = vmatprep.subr.bf16.mxu0 %v8902_v24 }
0x2eba   : > { %8218 = vmatmul.mubr.msk.f32.gmra.mrb[64].mxu1 %vm1113_vm8, %v5942_v43  ;;  %v3671_v12 = vadd.f32 %v3670_v8, %v3669_v3 }
0x2ebc   : > { %8905 = vmatpush1.bf16.msra.mxu0 %v8904_v13  ;;  %v3673_v16 = vmul.f32 0.25, %v3671_v12 }
0x2ebe   : > { %v3674_v0 = vadd.f32 1e-07, %v3673_v16 }
0x2ec0   : > { %8956 = vlog2.f32 %v3674_v0 }
0x2eca   : > { %v8957_v40 = vpop.eup %8956 }
0x2ecb   : > { %v3676_v24 = vmul.f32 0.6931472, %v8957_v40 }
0x2ecd   : > { %v3677_v25 = vmul.f32 %v3676_v24, %v3673_v16 }
0x2ecf   : > { %v3678_v13 = vsel %vm1110_vm7, %v3677_v25, 0.0 }
0x2f85   : > { %v8216_v22 = vpop.f32.mrb[62].mxu1 }
0x2f86   : > { %v6031_v27 = vadd.f32 %v8216_v22, %v5946_v42  ;;  %v6025_v56 = vpop.f32.mrb[63].mxu1 }
0x2f87   : > { %v6026_v29 = vadd.f32 %v6025_v56, %v5946_v42 }
0x2f88   : > { %v6045_v53 = vmax.f32 %v6031_v27, 0.0 }
0x2f89   : > { %v6044_v52 = vmax.f32 %v6026_v29, 0.0 }
0x2f8a   : > { %v6076_v19 = vrot.slane %v6045_v53, 7 }
0x2f8b   : > { %v6075_v57 = vrot.slane %v6044_v52, 7 }
0x2f8c   : > { %v6082_v2 = vsel %vm674_vm0, %v6076_v19, 0.0 }
0x2f8d   : > { %v10548_v20 = vsel %vm674_vm0, %v6075_v57, %v6076_v19  ;;  %v6081_v11 = vsel %vm674_vm0, 0.0, %v6075_v57  ;;  %v8219_v45 = vpop.f32.mrb[64].mxu1  ;;  %v6099_v49 = vrot.slane %v6082_v2, 2  ;;  %v6088_v54 = vrot.slane %v6082_v2, 1 }
0x2f8e   : > { %v6085_v33 = vrot.slane %v6081_v11, 1  ;;  %v6096_v38 = vrot.slane %v6081_v11, 2  ;;  %v6041_v39 = vadd.f32 %v8219_v45, %v5946_v42  ;;  %v6035_v41 = vpop.f32.mrb[65].mxu1  ;;  %v6097_v35 = vrot.slane %v10548_v20, 2 }
0x2f8f   : > { %v6036_v43 = vadd.f32 %v6035_v41, %v5946_v42  ;;  %v6086_v46 = vrot.slane %v10548_v20, 1 }
0x2f90   : > { %v6047_v26 = vmax.f32 %v6041_v39, 0.0  ;;  %v6098_v51 = vsel %vm710_vm3, %v6096_v38, %v6097_v35  ;;  %v6100_v58 = vsel %vm710_vm3, %v6097_v35, %v6099_v49 }
0x2f91   : > { %v6046_v55 = vmax.f32 %v6036_v43, 0.0  ;;  %6101 = vrot.lane.b32.xlu1 %v6098_v51, %s8974_s14  ;;  %v6087_v17 = vsel %vm695_vm2, %v6085_v33, %v6086_v46  ;;  %v6089_v47 = vsel %vm695_vm2, %v6086_v46, %v6088_v54  ;;  %v6072_v54 = vld [vmem:[%s544_s29] sm:$0x3] }
0x2f92   : > { %v6114_v14 = vrot.slane %v6047_v26, 7  ;;  %6090 = vrot.lane.b32.xlu0 %v6087_v17, %s8971_s13  ;;  %v6157_v17 = vrot.slane %v6072_v54, %v9406_v21 }
0x2f93   : > { %v6113_v18 = vrot.slane %v6046_v55, 7  ;;  %v6153_v55 = vrot.slane %v6072_v54, %v9279_v30 }
0x2f94   : > { %v6120_v15 = vsel %vm674_vm0, %v6114_v14, 0.0 }
0x2f95   : > { %v6115_v34 = vsel %vm674_vm0, %v6113_v18, %v6114_v14  ;;  %v6119_v36 = vsel %vm674_vm0, 0.0, %v6113_v18  ;;  %6103 = vrot.lane.b32.xlu1 %v6100_v58, %s8974_s14  ;;  %v6137_v4 = vrot.slane %v6120_v15, 2  ;;  %v6126_v6 = vrot.slane %v6120_v15, 1 }
0x2f96   : > { %v6123_v37 = vrot.slane %v6119_v36, 1  ;;  %v6134_v44 = vrot.slane %v6119_v36, 2  ;;  %6092 = vrot.lane.b32.xlu0 %v6089_v47, %s8971_s13  ;;  %v6135_v7 = vrot.slane %v6115_v34, 2  ;;  %v6124_v28 = vrot.slane %v6115_v34, 1 }
0x2f97   : > { %vm3652_vm0 = vcmask 257024  }
0x2f98   : > { %v6136_v5 = vsel %vm710_vm3, %v6134_v44, %v6135_v7  ;;  %v6125_v9 = vsel %vm695_vm2, %v6123_v37, %v6124_v28  ;;  %v6138_v59 = vsel %vm710_vm3, %v6135_v7, %v6137_v4  ;;  %v6127_v10 = vsel %vm695_vm2, %v6124_v28, %v6126_v6 }
0x2f99   : > { %6139 = vrot.lane.b32.xlu1 %v6136_v5, %s8974_s14  ;;  %v3653_v63 = vsel %vm3652_vm0, %v3651_v61, 0.0  ;;  %vm6269_vm2 = vcmask 0  }
0x2f9a   : > { %6128 = vrot.lane.b32.xlu0 %v6125_v9, %s8971_s13 }
0x2f9d   : > { %6141 = vrot.lane.b32.xlu1 %v6138_v59, %s8974_s14 }
0x2f9e   : > { %6130 = vrot.lane.b32.xlu0 %v6127_v10, %s8971_s13 }
0x2fbd   : > { %3654 = vadd.xlane.f32.xlu0 %v3653_v63 }
0x2fc1   : > { %3679 = vadd.xlane.f32.xlu1 %v3678_v13 }
0x3003   : > { %v6102_v42 = vpop.permute.xlu1 %6101 }
0x3004   : > { %v6091_v22 = vpop.permute.xlu0 %6090 }
0x3005   : > { %v6107_v27 = vsel %vm1107_vm6, %v6081_v11, %v6091_v22 }
0x3006   : > { %v6109_v56 = vsel %vm1110_vm7, %v6107_v27, %v6102_v42 }
0x3007   : > { %6854 = vmatmul.mubr.msk.f32.vlgmr.msra.gmra.mrb[52].mxu0 %vm1113_vm8, %v6109_v56  ;;  %v6104_v29 = vpop.permute.xlu1 %6103 }
0x3008   : > { %v6093_v32 = vpop.permute.xlu0 %6092  ;;  %6242 = vmatprep.mubr.f32.mxu0 %v8973_v60 }
0x3009   : > { %v6108_v50 = vsel %vm1107_vm6, %v10548_v20, %v6093_v32 }
0x300a   : > { %v6110_v62 = vsel %vm1110_vm7, %v6108_v50, %v6104_v29 }
0x300b   : > { %6855 = vmatmul.mubr.msk.f32.gmra.mrb[54].mxu0 %vm1113_vm8, %v6110_v62  ;;  %v6140_v53 = vpop.permute.xlu1 %6139 }
0x300c   : > { %v6129_v52 = vpop.permute.xlu0 %6128  ;;  %6248 = vmatprep.mubr.f32.mxu0 %v8973_v60 }
0x300d   : > { %v6145_v19 = vsel %vm1107_vm6, %v6119_v36, %v6129_v52 }
0x300e   : > { %v6147_v1 = vsel %vm1110_vm7, %v6145_v19, %v6140_v53 }
0x300f   : > { %6856 = vmatmul.mubr.msk.f32.gmra.mrb[56].mxu0 %vm1113_vm8, %v6147_v1  ;;  %v6142_v57 = vpop.permute.xlu1 %6141 }
0x3010   : > { %v6131_v2 = vpop.permute.xlu0 %6130  ;;  %6254 = vmatprep.mubr.f32.mxu0 %v8973_v60 }
0x3011   : > { %v6146_v20 = vsel %vm1107_vm6, %v6115_v34, %v6131_v2 }
0x3012   : > { %v6148_v11 = vsel %vm1110_vm7, %v6146_v20, %v6142_v57 }
0x3013   : > { %6857 = vmatmul.mubr.msk.f32.gmra.mrb[58].mxu0 %vm1113_vm8, %v6148_v11 }
0x304a   : > { %v3655_v45 = vpop.xlane.xlu0 %3654 }
0x304b   : > { %v3656_v33 = vsel %vm2087_vm1, %v3655_v45, 0.0 }
0x304c   : > { %v3657_v38 = vrot.slane %v3656_v33, 4 }
0x304e   : > { %v3658_v39 = vadd.f32 %v3657_v38, %v3656_v33  ;;  %v3680_v41 = vpop.xlane.xlu1 %3679 }
0x304f   : > { %v3681_v35 = vsub.f32 0.0, %v3680_v41 }
0x3050   : > { %v3659_v48 = vrot.slane %v3658_v39, 2 }
0x3051   : > { %v3682_v43 = vmul.f32 1.442695, %v3681_v35 }
0x3052   : > { %v3660_v46 = vadd.f32 %v3659_v48, %v3658_v39 }
0x3053   : > { %8958 = vpow2.f32 %v3682_v43 }
0x3054   : > { %v3661_v60 = vrot.slane %v3660_v46, 1 }
0x3056   : > { %v3662_v49 = vadd.f32 %v3661_v60, %v3660_v46 }
0x3058   : > { %v3664_v26 = vmul.f32 0.0078125, %v3662_v49 }
0x305a   : > { %6270 = vst.msk [vmem:[%s557_s22] sm:$0x1] %vm6269_vm2, %v3664_v26 }
0x305d   : > { %v8959_v51 = vpop.eup %8958 }
0x305e   : > { %6271 = vst.msk [vmem:[%s560_s25] sm:$0x1] %vm6269_vm2, %v8959_v51 }
0x30da   : > { %v6238_v14 = vpop.f32.mrb[52].mxu0 }
0x30db   : > { %v6239_v31 = vadd.f32 %v6238_v14, %v6153_v55  ;;  %v6240_v18 = vpop.f32.mrb[53].mxu0 }
0x30dc   : > { %v6241_v58 = vadd.f32 %v6240_v18, %v6157_v17 }
0x30dd   : > { %6261 = vst [vmem:[%s554_s30] sm:$0xff] %v6239_v31 }
0x30de   : > { %6262 = vst [vmem:[%s554_s30 + $0x8] sm:$0xff] %v6241_v58  ;;  %v6244_v15 = vpop.f32.mrb[54].mxu0 }
0x30df   : > { %v6245_v34 = vadd.f32 %v6244_v15, %v6153_v55  ;;  %v6246_v36 = vpop.f32.mrb[55].mxu0 }
0x30e0   : > { %v6247_v47 = vadd.f32 %v6246_v36, %v6157_v17 }
0x30e1   : > { %6263 = vst [vmem:[%s554_s30 + $0x10] sm:$0xff] %v6245_v34 }
0x30e2   : > { %6264 = vst [vmem:[%s554_s30 + $0x18] sm:$0xff] %v6247_v47  ;;  %v6250_v37 = vpop.f32.mrb[56].mxu0 }
0x30e3   : > { %v6251_v30 = vadd.f32 %v6250_v37, %v6153_v55  ;;  %v6252_v44 = vpop.f32.mrb[57].mxu0 }
0x30e4   : > { %v6253_v21 = vadd.f32 %v6252_v44, %v6157_v17 }
0x30e5   : > { %6265 = vst [vmem:[%s554_s30 + $0x20] sm:$0xff] %v6251_v30 }
0x30e6   : > { %6266 = vst [vmem:[%s554_s30 + $0x28] sm:$0xff] %v6253_v21  ;;  %v6256_v7 = vpop.f32.mrb[58].mxu0 }
0x30e7   : > { %v6257_v28 = vadd.f32 %v6256_v7, %v6153_v55  ;;  %v6258_v3 = vpop.f32.mrb[59].mxu0 }
0x30e8   : > { %v6259_v4 = vadd.f32 %v6258_v3, %v6157_v17 }
0x30e9   : > { %6267 = vst [vmem:[%s554_s30 + $0x30] sm:$0xff] %v6257_v28 }
0x30ea   : > { %6268 = vst [vmem:[%s554_s30 + $0x38] sm:$0xff] %v6259_v4 }
0x30eb PF: > { %s22_s17 = sadd.s32 1, %s8967_s17  }
0x30ec   : > { %p19_p4 = scmp.ge.s32.totalorder %s22_s17, 4  }
0x30ee   :  { %21 = sbr.rel (!%p19_p4) target bundleno = 1 (0x1), region = 164 }

</bundles_post_ra>
